<compile_context>
chip_gen: v6e
topology: v6e:2x2x1
jax: 0.10.0
libtpu: 0.0.40
codegen_flags: <defaults>
</compile_context>

<pallas_src>
import jax
import jax.numpy as jnp
from jax.experimental import pallas as pl
from jax.experimental.pallas import tpu as pltpu

D_MODEL = 32
NHEAD = 4
HEAD_DIM = D_MODEL // NHEAD
LN_EPS = 1e-5


def _shortcut_cross_attn_kernel(
    tgt_ref,    # (B, Lt, E)
    qadd_ref,   # (B, Lt, E)   query positional add
    mem_ref,    # (B, S,  E)
    kadd_ref,   # (B, S,  E)   key positional add
    w_ref,      # (3+H, E, E)  [Wq^T*scale, Wk^T, Wm^T, Wvo_0..Wvo_{H-1}]
    vec_ref,    # (H+6, 1, E)  [mask_0..mask_{H-1}, bq*scale, bk, bo', bm, gamma, beta]
    out_ref):   # (B, Lt, E)
  B, Lt, E = tgt_ref.shape
  S = mem_ref.shape[1]
  H = NHEAD

  tgt = tgt_ref[...]                                    # (B, Lt, E)
  q_in = (tgt + qadd_ref[...]).reshape(B * Lt, E)       # batch folded into M
  mem = mem_ref[...]
  k_in = (mem + kadd_ref[...]).reshape(B * S, E)
  v_in = mem.reshape(B * S, E)

  vec = vec_ref[...]                                    # (H+6, 1, E)
  head_mask = vec[0:H]                                  # (H, 1, E) per-head lane masks
  b_q, b_k = vec[H], vec[H + 1]                         # (1, E) each
  b_o, b_m = vec[H + 2], vec[H + 3]
  gamma, beta = vec[H + 4], vec[H + 5]

  # Full-width Q/K projections (1 matmul each; 1/sqrt(hd) folded into weights/bias).
  q = jnp.dot(q_in, w_ref[0], preferred_element_type=jnp.float32) + b_q  # (B*Lt, E)
  k = jnp.dot(k_in, w_ref[1], preferred_element_type=jnp.float32) + b_k  # (B*S,  E)

  # Per-head separation without lane slicing: zero the lanes of the other heads
  # in Q, then contract scores over the full E lanes (only head-h lanes survive).
  qh = (head_mask * q[None]).reshape(H * B, Lt, E)      # (H*B, Lt, E)
  kb = jnp.broadcast_to(k[None], (H, B * S, E)).reshape(H * B, S, E)

  # V projection fused with out_proj (host-folded W_vo_h): full 32-lane outputs,
  # out_proj matmuls eliminated.
  vos = [jnp.dot(v_in, w_ref[3 + h], preferred_element_type=jnp.float32)
         for h in range(H)]
  vo = jnp.stack(vos, axis=0).reshape(H * B, S, E)      # (H*B, S, E)

  # Attention over the merged (head, batch) leading dim.
  s = jnp.einsum('nle,nse->nls', qh, kb, preferred_element_type=jnp.float32)
  s = s - jnp.max(s, axis=-1, keepdims=True)
  p = jnp.exp(s)
  # TODO(synk): on hardware, pl.reciprocal(denom, approx=True) would move this
  # divide to the EUP slot; kept exact so interpret-mode tolerances also hold.
  p = p / jnp.sum(p, axis=-1, keepdims=True)
  o = jnp.einsum('nls,nse->nle', p, vo, preferred_element_type=jnp.float32)

  # Head accumulation (replaces concat + out_proj) and bias (bv folded in).
  o = o.reshape(H, B * Lt, E)
  tgt2 = o[0]
  for h in range(1, H):
    tgt2 = tgt2 + o[h]
  tgt2 = tgt2 + b_o

  # MLP + residual + LayerNorm (batch still folded into rows).
  mlp = jnp.dot(tgt2, w_ref[2], preferred_element_type=jnp.float32) + b_m
  res = tgt.reshape(B * Lt, E) + mlp
  mean = jnp.mean(res, axis=-1, keepdims=True)
  cent = res - mean
  var = jnp.mean(cent * cent, axis=-1, keepdims=True)
  out = cent * jax.lax.rsqrt(var + LN_EPS) * gamma + beta
  out_ref[...] = out.reshape(B, Lt, E).astype(out_ref.dtype)


def pack_params(params, d_model=D_MODEL, nhead=NHEAD):
  """Pre-transpose / pre-scale / fuse the module parameters for the kernel."""
  hd = d_model // nhead
  scale = 1.0 / (hd ** 0.5)

  wq_t = params['wq'].T * scale                  # (E, E), 1/sqrt(hd) folded in
  wk_t = params['wk'].T
  wv_t = params['wv'].T
  wo_t = params['wo'].T
  wm_t = params['wm'].T

  # Fuse V projection with out_proj per head: W_vo_h = Wv_h^T @ Wo_h^T  (E, E).
  wvo = jnp.stack(
      [wv_t[:, h * hd:(h + 1) * hd] @ wo_t[h * hd:(h + 1) * hd, :]
       for h in range(nhead)], axis=0)                               # (H, E, E)
  weights = jnp.concatenate([wq_t[None], wk_t[None], wm_t[None], wvo], axis=0)

  # Per-head lane masks (which of the E lanes belong to head h).
  lane = jnp.arange(d_model)
  masks = jnp.stack(
      [((lane // hd) == h).astype(jnp.float32)[None, :] for h in range(nhead)],
      axis=0)                                                        # (H, 1, E)

  bq = params['bq'] * scale
  bk = params['bk']
  # Fold bv through out_proj (softmax rows sum to 1): bo' = bo + bv @ Wo^T.
  bo_fused = params['bo'] + params['bv'] @ wo_t
  vecs = jnp.concatenate(
      [masks, bq[None], bk[None], bo_fused[None], params['bm'][None],
       params['gamma'][None], params['beta'][None]], axis=0)         # (H+6, 1, E)

  return dict(weights=weights.astype(jnp.float32),
              vecs=vecs.astype(jnp.float32))


def shortcut_cross_attention(packed, tgt, memory, flat,
                             pos=None, query_pos=None, b_tile=None):
  """tgt: (Lt, N, E); memory: (S, N, E); returns (Lt, N, E)."""
  # TODO(synk): memory_mask / memory_key_padding_mask are not supported (None path only).
  Lt, N, E = tgt.shape
  S = memory.shape[0]
  assert E == D_MODEL

  # Role assignment: whatever is added to the QUERY must match tgt's shape,
  # whatever is added to the KEY must match memory's shape.
  if flat == 'text':
    q_add = query_pos if query_pos is not None else jnp.zeros_like(tgt)
    k_add = pos if pos is not None else jnp.zeros_like(memory)
  elif flat == 'vision':
    q_add = pos if pos is not None else jnp.zeros_like(tgt)
    k_add = query_pos if query_pos is not None else jnp.zeros_like(memory)
  else:
    raise ValueError("flat must be 'text' or 'vision'")
  assert q_add.shape == tgt.shape, (
      f"query positional add must match tgt shape {tgt.shape}, got {q_add.shape}")
  assert k_add.shape == memory.shape, (
      f"key positional add must match memory shape {memory.shape}, got {k_add.shape}")

  if b_tile is None:
    # Single grid step: best on single-TC v5e/v6e and for overhead-dominated
    # sizes.  On v7x pass b_tile=N//2 to split across the two TensorCores.
    b_tile = N
  assert N % b_tile == 0, "batch must be divisible by b_tile"
  grid_n = N // b_tile

  # VMEM guard: attention is unblocked over S; keep the per-step working set
  # small vs v7x's 64 MiB physical VMEM.  Add an S-tile (flash) loop before
  # scaling S into the thousands.
  vmem_est = 4 * (2 * b_tile * (2 * Lt * E + 2 * S * E + Lt * E)
                  + packed['weights'].size + packed['vecs'].size
                  + NHEAD * b_tile * (3 * Lt * S + 2 * Lt * E + 2 * S * E))
  assert vmem_est < 24 * 1024 * 1024, (
      "working set too large for unblocked-S attention; tile S (flash-style)")

  # Batch-major inside the kernel so batch folds into the matmul M dimension.
  tgt_b = jnp.transpose(tgt, (1, 0, 2))
  qadd_b = jnp.transpose(q_add, (1, 0, 2))
  mem_b = jnp.transpose(memory, (1, 0, 2))
  kadd_b = jnp.transpose(k_add, (1, 0, 2))

  act = lambda L: pl.BlockSpec((b_tile, L, E), lambda b: (b, 0, 0))
  full = lambda shape: pl.BlockSpec(shape, lambda b: tuple(0 for _ in shape))

  out_b = pl.pallas_call(
      _shortcut_cross_attn_kernel,
      out_shape=jax.ShapeDtypeStruct((N, Lt, E), tgt.dtype),
      grid_spec=pltpu.PrefetchScalarGridSpec(
          num_scalar_prefetch=0,
          grid=(grid_n,),
          in_specs=[act(Lt), act(Lt), act(S), act(S),
                    full(packed['weights'].shape), full(packed['vecs'].shape)],
          out_specs=act(Lt)),
      compiler_params=pltpu.CompilerParams(
          dimension_semantics=("parallel",)),
  )(tgt_b, qadd_b, mem_b, kadd_b, packed['weights'], packed['vecs'])

  return jnp.transpose(out_b, (1, 0, 2))


def init_params(key, d_model):
  """Synthetic init mirroring the module's parameter shapes.

  The real module zero-initializes the attention biases; here they are small
  random values so the host-side bias folding (bo' = bo + bv @ Wo^T, q-scale
  folded into bq) is actually exercised by the self-test.
  """
  ks = jax.random.split(key, 10)

  def xavier(k, shape):
    fan_out, fan_in = shape
    limit = (6.0 / (fan_in + fan_out)) ** 0.5
    return jax.random.uniform(k, shape, jnp.float32, -limit, limit)

  in_proj_w = xavier(ks[0], (3 * d_model, d_model))      # nn.MultiheadAttention.in_proj_weight
  small = lambda k: 0.1 * jax.random.normal(k, (1, d_model), jnp.float32)
  return dict(
      wq=in_proj_w[:d_model],
      wk=in_proj_w[d_model:2 * d_model],
      wv=in_proj_w[2 * d_model:],
      bq=small(ks[1]),
      bk=small(ks[2]),
      bv=small(ks[3]),
      wo=xavier(ks[4], (d_model, d_model)),              # out_proj.weight
      bo=small(ks[5]),                                   # out_proj.bias
      wm=xavier(ks[6], (d_model, d_model)),              # self.MLP.weight
      bm=small(ks[7]),                                   # self.MLP.bias
      gamma=1.0 + 0.1 * jax.random.normal(ks[8], (1, d_model), jnp.float32),
      beta=small(ks[9]),
  )


def _reference(params, tgt, memory, flat, pos, query_pos):
  """Pure-JAX reference mirroring PyTorch MultiheadAttention + MLP + LayerNorm."""
  Lt, N, E = tgt.shape
  S = memory.shape[0]
  if flat == 'text':
    q_in, k_in = tgt + query_pos, memory + pos
  else:
    q_in, k_in = tgt + pos, memory + query_pos
  v_in = memory

  q = jnp.einsum('lne,fe->lnf', q_in, params['wq']) + params['bq'][0]
  k = jnp.einsum('sne,fe->snf', k_in, params['wk']) + params['bk'][0]
  v = jnp.einsum('sne,fe->snf', v_in, params['wv']) + params['bv'][0]
  q = q * (1.0 / (HEAD_DIM ** 0.5))

  qh = q.reshape(Lt, N, NHEAD, HEAD_DIM)
  kh = k.reshape(S, N, NHEAD, HEAD_DIM)
  vh = v.reshape(S, N, NHEAD, HEAD_DIM)
  scores = jnp.einsum('lnhd,snhd->nhls', qh, kh)
  p = jax.nn.softmax(scores, axis=-1)
  o = jnp.einsum('nhls,snhd->lnhd', p, vh).reshape(Lt, N, E)

  tgt2 = jnp.einsum('lne,fe->lnf', o, params['wo']) + params['bo'][0]
  res = tgt + jnp.einsum('lne,fe->lnf', tgt2, params['wm']) + params['bm'][0]
  mean = jnp.mean(res, axis=-1, keepdims=True)
  var = jnp.mean((res - mean) ** 2, axis=-1, keepdims=True)
  return (res - mean) * jax.lax.rsqrt(var + LN_EPS) * params['gamma'][0] + params['beta'][0]


if __name__ == "__main__":
  key = jax.random.PRNGKey(0)
  k_p, k_t, k_m, k_pm, k_pt = jax.random.split(key, 5)

  N = 16           # batch (folded into matmul M; single grid step by default)
  Lt = 8           # tgt sequence length
  S = 16           # memory sequence length
  E = D_MODEL      # d_model = 32, nhead = 4

  raw = init_params(k_p, E)
  packed = pack_params(raw)

  tgt = jax.random.normal(k_t, (Lt, N, E), jnp.float32)
  memory = jax.random.normal(k_m, (S, N, E), jnp.float32)
  pos_mem = jax.random.normal(k_pm, (S, N, E), jnp.float32)   # added to memory (key)
  pos_tgt = jax.random.normal(k_pt, (Lt, N, E), jnp.float32)  # added to tgt (query)

  for flat in ('text', 'vision'):
    if flat == 'text':
      pos, query_pos = pos_mem, pos_tgt        # query += query_pos, key += pos
    else:
      pos, query_pos = pos_tgt, pos_mem        # query += pos, key += query_pos
    out = shortcut_cross_attention(packed, tgt, memory, flat,
                                   pos=pos, query_pos=query_pos)
    out = jax.block_until_ready(out)
    ref = _reference(raw, tgt, memory, flat, pos, query_pos)
    assert out.shape == (Lt, N, E)
    assert jnp.allclose(out, ref, atol=5e-4, rtol=5e-4), f"mismatch vs reference ({flat})"

  print("KERNEL_OK")
</pallas_src>

<mosaic_0001>
module attributes {stable_mosaic.version = 11 : i64} {
  func.func @_shortcut_cross_attn_kernel(%arg0: i32, %arg1: memref<16x8x32xf32, #tpu.memory_space<vmem>>, %arg2: memref<16x8x32xf32, #tpu.memory_space<vmem>>, %arg3: memref<16x16x32xf32, #tpu.memory_space<vmem>>, %arg4: memref<16x16x32xf32, #tpu.memory_space<vmem>>, %arg5: memref<7x32x32xf32, #tpu.memory_space<vmem>>, %arg6: memref<10x1x32xf32, #tpu.memory_space<vmem>>, %arg7: memref<16x8x32xf32, #tpu.memory_space<vmem>>) attributes {dimension_semantics = [#tpu.dimension_semantics<parallel>], iteration_bounds = array<i64: 1>, scalar_prefetch = 0 : i64, scratch_operands = 0 : i64, tpu.core_type = #tpu.core_type<tc>, window_params = [{transform_indices = @transform_0, window_bounds = array<i64: 16, 8, 32>}, {transform_indices = @transform_1, window_bounds = array<i64: 16, 8, 32>}, {transform_indices = @transform_2, window_bounds = array<i64: 16, 16, 32>}, {transform_indices = @transform_3, window_bounds = array<i64: 16, 16, 32>}, {pipeline_mode = #tpu.pipeline_mode<synchronous>, transform_indices = @transform_4, window_bounds = array<i64: 7, 32, 32>}, {pipeline_mode = #tpu.pipeline_mode<synchronous>, transform_indices = @transform_5, window_bounds = array<i64: 10, 1, 32>}, {transform_indices = @transform_6, window_bounds = array<i64: 16, 8, 32>}]} {
    %c0 = arith.constant 0 : index
    %c0_0 = arith.constant 0 : index
    %c0_1 = arith.constant 0 : index
    %0 = vector.load %arg1[%c0, %c0_0, %c0_1] : memref<16x8x32xf32, #tpu.memory_space<vmem>>, vector<16x8x32xf32>
    %c0_2 = arith.constant 0 : index
    %c0_3 = arith.constant 0 : index
    %c0_4 = arith.constant 0 : index
    %1 = vector.load %arg2[%c0_2, %c0_3, %c0_4] : memref<16x8x32xf32, #tpu.memory_space<vmem>>, vector<16x8x32xf32>
    %2 = arith.addf %0, %1 : vector<16x8x32xf32>
    %3 = vector.shape_cast %2 : vector<16x8x32xf32> to vector<128x32xf32>
    %c0_5 = arith.constant 0 : index
    %c0_6 = arith.constant 0 : index
    %c0_7 = arith.constant 0 : index
    %4 = vector.load %arg3[%c0_5, %c0_6, %c0_7] : memref<16x16x32xf32, #tpu.memory_space<vmem>>, vector<16x16x32xf32>
    %c0_8 = arith.constant 0 : index
    %c0_9 = arith.constant 0 : index
    %c0_10 = arith.constant 0 : index
    %5 = vector.load %arg4[%c0_8, %c0_9, %c0_10] : memref<16x16x32xf32, #tpu.memory_space<vmem>>, vector<16x16x32xf32>
    %6 = arith.addf %4, %5 : vector<16x16x32xf32>
    %7 = vector.shape_cast %6 : vector<16x16x32xf32> to vector<256x32xf32>
    %8 = vector.shape_cast %4 : vector<16x16x32xf32> to vector<256x32xf32>
    %c0_11 = arith.constant 0 : index
    %c0_12 = arith.constant 0 : index
    %c0_13 = arith.constant 0 : index
    %9 = vector.load %arg6[%c0_11, %c0_12, %c0_13] : memref<10x1x32xf32, #tpu.memory_space<vmem>>, vector<10x1x32xf32>
    %10 = vector.extract_strided_slice %9 {offsets = [0, 0, 0], sizes = [4, 1, 32], strides = [1, 1, 1]} : vector<10x1x32xf32> to vector<4x1x32xf32>
    %11 = vector.extract_strided_slice %9 {offsets = [4, 0, 0], sizes = [1, 1, 32], strides = [1, 1, 1]} : vector<10x1x32xf32> to vector<1x1x32xf32>
    %12 = vector.shape_cast %11 : vector<1x1x32xf32> to vector<1x32xf32>
    %13 = vector.extract_strided_slice %9 {offsets = [5, 0, 0], sizes = [1, 1, 32], strides = [1, 1, 1]} : vector<10x1x32xf32> to vector<1x1x32xf32>
    %14 = vector.shape_cast %13 : vector<1x1x32xf32> to vector<1x32xf32>
    %15 = vector.extract_strided_slice %9 {offsets = [6, 0, 0], sizes = [1, 1, 32], strides = [1, 1, 1]} : vector<10x1x32xf32> to vector<1x1x32xf32>
    %16 = vector.shape_cast %15 : vector<1x1x32xf32> to vector<1x32xf32>
    %17 = vector.extract_strided_slice %9 {offsets = [7, 0, 0], sizes = [1, 1, 32], strides = [1, 1, 1]} : vector<10x1x32xf32> to vector<1x1x32xf32>
    %18 = vector.shape_cast %17 : vector<1x1x32xf32> to vector<1x32xf32>
    %19 = vector.extract_strided_slice %9 {offsets = [8, 0, 0], sizes = [1, 1, 32], strides = [1, 1, 1]} : vector<10x1x32xf32> to vector<1x1x32xf32>
    %20 = vector.shape_cast %19 : vector<1x1x32xf32> to vector<1x32xf32>
    %21 = vector.extract_strided_slice %9 {offsets = [9, 0, 0], sizes = [1, 1, 32], strides = [1, 1, 1]} : vector<10x1x32xf32> to vector<1x1x32xf32>
    %22 = vector.shape_cast %21 : vector<1x1x32xf32> to vector<1x32xf32>
    %c0_14 = arith.constant 0 : index
    %c0_15 = arith.constant 0 : index
    %c0_16 = arith.constant 0 : index
    %23 = vector.load %arg5[%c0_14, %c0_15, %c0_16] : memref<7x32x32xf32, #tpu.memory_space<vmem>>, vector<1x32x32xf32>
    %24 = vector.shape_cast %23 : vector<1x32x32xf32> to vector<32x32xf32>
    %cst = arith.constant dense<0.000000e+00> : vector<128x32xf32>
    %25 = tpu.matmul %3, %24, %cst {dimension_numbers = #tpu.dot_dimension_numbers<[1], [0], [0], [1], [0, 0, 1, 1], [], []>} : vector<128x32xf32>, vector<32x32xf32>, vector<128x32xf32> -> vector<128x32xf32>
    %26 = vector.broadcast %12 : vector<1x32xf32> to vector<128x32xf32>
    %27 = arith.addf %25, %26 : vector<128x32xf32>
    %c1 = arith.constant 1 : index
    %c0_17 = arith.constant 0 : index
    %c0_18 = arith.constant 0 : index
    %28 = vector.load %arg5[%c1, %c0_17, %c0_18] : memref<7x32x32xf32, #tpu.memory_space<vmem>>, vector<1x32x32xf32>
    %29 = vector.shape_cast %28 : vector<1x32x32xf32> to vector<32x32xf32>
    %cst_19 = arith.constant dense<0.000000e+00> : vector<256x32xf32>
    %30 = tpu.matmul %7, %29, %cst_19 {dimension_numbers = #tpu.dot_dimension_numbers<[1], [0], [0], [1], [0, 0, 1, 1], [], []>} : vector<256x32xf32>, vector<32x32xf32>, vector<256x32xf32> -> vector<256x32xf32>
    %31 = vector.broadcast %14 : vector<1x32xf32> to vector<256x32xf32>
    %32 = arith.addf %30, %31 : vector<256x32xf32>
    %33 = vector.shape_cast %27 : vector<128x32xf32> to vector<1x128x32xf32>
    %34 = vector.broadcast %10 : vector<4x1x32xf32> to vector<4x128x32xf32>
    %35 = vector.broadcast %33 : vector<1x128x32xf32> to vector<4x128x32xf32>
    %36 = arith.mulf %34, %35 : vector<4x128x32xf32>
    %37 = vector.shape_cast %36 : vector<4x128x32xf32> to vector<64x8x32xf32>
    %38 = vector.shape_cast %32 : vector<256x32xf32> to vector<1x256x32xf32>
    %39 = vector.shape_cast %38 : vector<1x256x32xf32> to vector<1x256x32xf32>
    %40 = vector.broadcast %39 : vector<1x256x32xf32> to vector<4x256x32xf32>
    %41 = vector.shape_cast %40 : vector<4x256x32xf32> to vector<64x16x32xf32>
    %c3 = arith.constant 3 : index
    %c0_20 = arith.constant 0 : index
    %c0_21 = arith.constant 0 : index
    %42 = vector.load %arg5[%c3, %c0_20, %c0_21] : memref<7x32x32xf32, #tpu.memory_space<vmem>>, vector<1x32x32xf32>
    %43 = vector.shape_cast %42 : vector<1x32x32xf32> to vector<32x32xf32>
    %cst_22 = arith.constant dense<0.000000e+00> : vector<256x32xf32>
    %44 = tpu.matmul %8, %43, %cst_22 {dimension_numbers = #tpu.dot_dimension_numbers<[1], [0], [0], [1], [0, 0, 1, 1], [], []>} : vector<256x32xf32>, vector<32x32xf32>, vector<256x32xf32> -> vector<256x32xf32>
    %c4 = arith.constant 4 : index
    %c0_23 = arith.constant 0 : index
    %c0_24 = arith.constant 0 : index
    %45 = vector.load %arg5[%c4, %c0_23, %c0_24] : memref<7x32x32xf32, #tpu.memory_space<vmem>>, vector<1x32x32xf32>
    %46 = vector.shape_cast %45 : vector<1x32x32xf32> to vector<32x32xf32>
    %cst_25 = arith.constant dense<0.000000e+00> : vector<256x32xf32>
    %47 = tpu.matmul %8, %46, %cst_25 {dimension_numbers = #tpu.dot_dimension_numbers<[1], [0], [0], [1], [0, 0, 1, 1], [], []>} : vector<256x32xf32>, vector<32x32xf32>, vector<256x32xf32> -> vector<256x32xf32>
    %c5 = arith.constant 5 : index
    %c0_26 = arith.constant 0 : index
    %c0_27 = arith.constant 0 : index
    %48 = vector.load %arg5[%c5, %c0_26, %c0_27] : memref<7x32x32xf32, #tpu.memory_space<vmem>>, vector<1x32x32xf32>
    %49 = vector.shape_cast %48 : vector<1x32x32xf32> to vector<32x32xf32>
    %cst_28 = arith.constant dense<0.000000e+00> : vector<256x32xf32>
    %50 = tpu.matmul %8, %49, %cst_28 {dimension_numbers = #tpu.dot_dimension_numbers<[1], [0], [0], [1], [0, 0, 1, 1], [], []>} : vector<256x32xf32>, vector<32x32xf32>, vector<256x32xf32> -> vector<256x32xf32>
    %c6 = arith.constant 6 : index
    %c0_29 = arith.constant 0 : index
    %c0_30 = arith.constant 0 : index
    %51 = vector.load %arg5[%c6, %c0_29, %c0_30] : memref<7x32x32xf32, #tpu.memory_space<vmem>>, vector<1x32x32xf32>
    %52 = vector.shape_cast %51 : vector<1x32x32xf32> to vector<32x32xf32>
    %cst_31 = arith.constant dense<0.000000e+00> : vector<256x32xf32>
    %53 = tpu.matmul %8, %52, %cst_31 {dimension_numbers = #tpu.dot_dimension_numbers<[1], [0], [0], [1], [0, 0, 1, 1], [], []>} : vector<256x32xf32>, vector<32x32xf32>, vector<256x32xf32> -> vector<256x32xf32>
    %54 = vector.shape_cast %44 : vector<256x32xf32> to vector<1x256x32xf32>
    %55 = vector.shape_cast %47 : vector<256x32xf32> to vector<1x256x32xf32>
    %56 = vector.shape_cast %50 : vector<256x32xf32> to vector<1x256x32xf32>
    %57 = vector.shape_cast %53 : vector<256x32xf32> to vector<1x256x32xf32>
    %58 = tpu.concatenate %54, %55, %56, %57 in 0 : vector<1x256x32xf32>, vector<1x256x32xf32>, vector<1x256x32xf32>, vector<1x256x32xf32> -> vector<4x256x32xf32>
    %59 = vector.shape_cast %58 : vector<4x256x32xf32> to vector<64x16x32xf32>
    "tpu.trace_start"() <{level = 10 : i32, message = "nle,nse->nls"}> : () -> ()
    %cst_32 = arith.constant dense<0.000000e+00> : vector<64x8x16xf32>
    %60 = tpu.matmul %37, %41, %cst_32 {dimension_numbers = #tpu.dot_dimension_numbers<[2], [2], [1], [1], [0, 0, 0, 1, 1, 1], [0], [0]>} : vector<64x8x32xf32>, vector<64x16x32xf32>, vector<64x8x16xf32> -> vector<64x8x16xf32>
    "tpu.trace_stop"() : () -> ()
    %cst_33 = arith.constant dense<0xFF800000> : vector<64x8xf32>
    %61 = vector.multi_reduction <maximumf>, %60, %cst_33 [2] : vector<64x8x16xf32> to vector<64x8xf32>
    %62 = vector.shape_cast %61 : vector<64x8xf32> to vector<64x8x1xf32>
    %63 = vector.broadcast %62 : vector<64x8x1xf32> to vector<64x8x16xf32>
    %64 = arith.subf %60, %63 : vector<64x8x16xf32>
    %65 = math.exp %64 : vector<64x8x16xf32>
    %cst_34 = arith.constant dense<0.000000e+00> : vector<64x8xf32>
    %66 = vector.multi_reduction <add>, %65, %cst_34 [2] : vector<64x8x16xf32> to vector<64x8xf32>
    %67 = vector.shape_cast %66 : vector<64x8xf32> to vector<64x8x1xf32>
    %68 = vector.broadcast %67 : vector<64x8x1xf32> to vector<64x8x16xf32>
    %69 = arith.divf %65, %68 : vector<64x8x16xf32>
    "tpu.trace_start"() <{level = 10 : i32, message = "nls,nse->nle"}> : () -> ()
    %cst_35 = arith.constant dense<0.000000e+00> : vector<64x8x32xf32>
    %70 = tpu.matmul %69, %59, %cst_35 {dimension_numbers = #tpu.dot_dimension_numbers<[2], [1], [1], [2], [0, 0, 0, 1, 1, 2], [0], [0]>} : vector<64x8x16xf32>, vector<64x16x32xf32>, vector<64x8x32xf32> -> vector<64x8x32xf32>
    "tpu.trace_stop"() : () -> ()
    %71 = vector.shape_cast %70 : vector<64x8x32xf32> to vector<4x128x32xf32>
    %72 = vector.extract_strided_slice %71 {offsets = [0, 0, 0], sizes = [1, 128, 32], strides = [1, 1, 1]} : vector<4x128x32xf32> to vector<1x128x32xf32>
    %73 = vector.shape_cast %72 : vector<1x128x32xf32> to vector<128x32xf32>
    %74 = vector.extract_strided_slice %71 {offsets = [1, 0, 0], sizes = [1, 128, 32], strides = [1, 1, 1]} : vector<4x128x32xf32> to vector<1x128x32xf32>
    %75 = vector.shape_cast %74 : vector<1x128x32xf32> to vector<128x32xf32>
    %76 = arith.addf %73, %75 : vector<128x32xf32>
    %77 = vector.extract_strided_slice %71 {offsets = [2, 0, 0], sizes = [1, 128, 32], strides = [1, 1, 1]} : vector<4x128x32xf32> to vector<1x128x32xf32>
    %78 = vector.shape_cast %77 : vector<1x128x32xf32> to vector<128x32xf32>
    %79 = arith.addf %76, %78 : vector<128x32xf32>
    %80 = vector.extract_strided_slice %71 {offsets = [3, 0, 0], sizes = [1, 128, 32], strides = [1, 1, 1]} : vector<4x128x32xf32> to vector<1x128x32xf32>
    %81 = vector.shape_cast %80 : vector<1x128x32xf32> to vector<128x32xf32>
    %82 = arith.addf %79, %81 : vector<128x32xf32>
    %83 = vector.broadcast %16 : vector<1x32xf32> to vector<128x32xf32>
    %84 = arith.addf %82, %83 : vector<128x32xf32>
    %c2 = arith.constant 2 : index
    %c0_36 = arith.constant 0 : index
    %c0_37 = arith.constant 0 : index
    %85 = vector.load %arg5[%c2, %c0_36, %c0_37] : memref<7x32x32xf32, #tpu.memory_space<vmem>>, vector<1x32x32xf32>
    %86 = vector.shape_cast %85 : vector<1x32x32xf32> to vector<32x32xf32>
    %cst_38 = arith.constant dense<0.000000e+00> : vector<128x32xf32>
    %87 = tpu.matmul %84, %86, %cst_38 {dimension_numbers = #tpu.dot_dimension_numbers<[1], [0], [0], [1], [0, 0, 1, 1], [], []>} : vector<128x32xf32>, vector<32x32xf32>, vector<128x32xf32> -> vector<128x32xf32>
    %88 = vector.broadcast %18 : vector<1x32xf32> to vector<128x32xf32>
    %89 = arith.addf %87, %88 : vector<128x32xf32>
    %90 = vector.shape_cast %0 : vector<16x8x32xf32> to vector<128x32xf32>
    %91 = arith.addf %90, %89 : vector<128x32xf32>
    %cst_39 = arith.constant dense<0.000000e+00> : vector<128xf32>
    %92 = vector.multi_reduction <add>, %91, %cst_39 [1] : vector<128x32xf32> to vector<128xf32>
    %93 = vector.shape_cast %92 : vector<128xf32> to vector<128x1xf32>
    %cst_40 = arith.constant 3.200000e+01 : f32
    %94 = vector.broadcast %cst_40 : f32 to vector<128x1xf32>
    %95 = arith.divf %93, %94 : vector<128x1xf32>
    %96 = vector.broadcast %95 : vector<128x1xf32> to vector<128x32xf32>
    %97 = arith.subf %91, %96 : vector<128x32xf32>
    %98 = arith.mulf %97, %97 : vector<128x32xf32>
    %cst_41 = arith.constant dense<0.000000e+00> : vector<128xf32>
    %99 = vector.multi_reduction <add>, %98, %cst_41 [1] : vector<128x32xf32> to vector<128xf32>
    %100 = vector.shape_cast %99 : vector<128xf32> to vector<128x1xf32>
    %cst_42 = arith.constant 3.200000e+01 : f32
    %101 = vector.broadcast %cst_42 : f32 to vector<128x1xf32>
    %102 = arith.divf %100, %101 : vector<128x1xf32>
    %cst_43 = arith.constant 9.99999974E-6 : f32
    %103 = vector.broadcast %cst_43 : f32 to vector<128x1xf32>
    %104 = arith.addf %102, %103 : vector<128x1xf32>
    %105 = math.rsqrt %104 : vector<128x1xf32>
    %106 = vector.broadcast %105 : vector<128x1xf32> to vector<128x32xf32>
    %107 = arith.mulf %97, %106 : vector<128x32xf32>
    %108 = vector.broadcast %20 : vector<1x32xf32> to vector<128x32xf32>
    %109 = arith.mulf %107, %108 : vector<128x32xf32>
    %110 = vector.broadcast %22 : vector<1x32xf32> to vector<128x32xf32>
    %111 = arith.addf %109, %110 : vector<128x32xf32>
    %112 = vector.shape_cast %111 : vector<128x32xf32> to vector<16x8x32xf32>
    %c0_44 = arith.constant 0 : index
    %c0_45 = arith.constant 0 : index
    %c0_46 = arith.constant 0 : index
    %113 = vector.load %arg7[%c0_44, %c0_45, %c0_46] : memref<16x8x32xf32, #tpu.memory_space<vmem>>, vector<16x8x32xf32>
    tpu.vector_store %arg7[%c0_44, %c0_45, %c0_46], %112 {strides = array<i32>} : memref<16x8x32xf32, #tpu.memory_space<vmem>>, vector<16x8x32xf32>,
    return
  }
  func.func @transform_0(%arg0: i32) -> (i32, i32, i32) {
    %c0_i32 = arith.constant 0 : i32
    %c0_i32_0 = arith.constant 0 : i32
    %c0_i32_1 = arith.constant 0 : i32
    return %arg0, %c0_i32, %c0_i32_0 : i32, i32, i32
  }
  func.func @transform_1(%arg0: i32) -> (i32, i32, i32) {
    %c0_i32 = arith.constant 0 : i32
    %c0_i32_0 = arith.constant 0 : i32
    %c0_i32_1 = arith.constant 0 : i32
    return %arg0, %c0_i32, %c0_i32_0 : i32, i32, i32
  }
  func.func @transform_2(%arg0: i32) -> (i32, i32, i32) {
    %c0_i32 = arith.constant 0 : i32
    %c0_i32_0 = arith.constant 0 : i32
    %c0_i32_1 = arith.constant 0 : i32
    return %arg0, %c0_i32, %c0_i32_0 : i32, i32, i32
  }
  func.func @transform_3(%arg0: i32) -> (i32, i32, i32) {
    %c0_i32 = arith.constant 0 : i32
    %c0_i32_0 = arith.constant 0 : i32
    %c0_i32_1 = arith.constant 0 : i32
    return %arg0, %c0_i32, %c0_i32_0 : i32, i32, i32
  }
  func.func @transform_4(%arg0: i32) -> (i32, i32, i32) {
    %c0_i32 = arith.constant 0 : i32
    %c0_i32_0 = arith.constant 0 : i32
    %c0_i32_1 = arith.constant 0 : i32
    %c0_i32_2 = arith.constant 0 : i32
    return %c0_i32, %c0_i32_0, %c0_i32_1 : i32, i32, i32
  }
  func.func @transform_5(%arg0: i32) -> (i32, i32, i32) {
    %c0_i32 = arith.constant 0 : i32
    %c0_i32_0 = arith.constant 0 : i32
    %c0_i32_1 = arith.constant 0 : i32
    %c0_i32_2 = arith.constant 0 : i32
    return %c0_i32, %c0_i32_0, %c0_i32_1 : i32, i32, i32
  }
  func.func @transform_6(%arg0: i32) -> (i32, i32, i32) {
    %c0_i32 = arith.constant 0 : i32
    %c0_i32_0 = arith.constant 0 : i32
    %c0_i32_1 = arith.constant 0 : i32
    return %arg0, %c0_i32, %c0_i32_0 : i32, i32, i32
  }
}

</mosaic_0001>

<bundles_post_ra>
// kernel: tpu_custom_call.1
= control target key start
LH: loop header
LB: loop body
LE: loop exit
PB: predicated region body
PF: predicated region fallthrough
CT: control target
= control target key end

     0   :  { %11 = vsyncpa [#allocation3], 0  ;;  %s18518_s0 = inlined_call_operand.hbm [shape: f32[16,8,32], index: 0, kind: input, shape index: {}]   ;;  %s18519_s1 = inlined_call_operand.hbm [shape: f32[16,8,32], index: 1, kind: input, shape index: {}]   ;;  %s18520_s2 = inlined_call_operand.hbm [shape: f32[16,16,32], index: 2, kind: input, shape index: {}]   ;;  %s18521_s3 = inlined_call_operand.hbm [shape: f32[16,16,32], index: 3, kind: input, shape index: {}]   ;;  %s18522_s4 = inlined_call_operand.hbm [shape: f32[7,32,32], index: 4, kind: input, shape index: {}]   ;;  %s18523_s5 = inlined_call_operand.hbm [shape: f32[10,1,32], index: 5, kind: input, shape index: {}]   ;;  %s18524_s6 = inlined_call_operand.hbm [shape: f32[16,8,32], index: 6, kind: output, shape index: {}]  }
   0x1   :  { %12 = vsyncpa [#allocation6], 0 }
   0x2   :  { %13 = vsyncpa [#allocation9], 0 }
   0x3   :  { %14 = vsyncpa [#allocation12], 0 }
   0x4   :  { %15 = vsyncpa [#allocation4], 0  ;;  %s15403_s21 = smov [#allocation5]   ;;  %s15404_s23 = smov [#allocation8]  }
   0x5   :  { %s33_s22 = sshll.u32 %s15403_s21, 4  ;;  %s57_s24 = sshll.u32 %s15404_s23, 4  ;;  %s34_s22 = int_to_ptr.vmem [resolvable:$true] %s33_s22  ;;  %s58_s24 = int_to_ptr.vmem [resolvable:$true] %s57_s24 }
   0x6   :  { %s15261_s25 = scalar_lea.vmem %s34_s22, 2048  ;;  %p15266_p1 = scmp.lt.s32.totalorder %s34_s22, %s34_s22 }
   0x7   :  { %p15262_p0 = scmp.ne.s32.totalorder %s34_s22, %s15261_s25  ;;  %p15267_p2 = scmp.lt.s32.totalorder %s15261_s25, %s15261_s25 }
   0x9   :  { %p15268_p3 = por %p15267_p2, %p15266_p1 }
   0xb   :  { %p15269_p4 = pnand %p15268_p3, %p15262_p0 }
   0xd   :  { %15272 = shalt.err (!%p15269_p4)
}
   0xe   :  { %s15405_s26 = smov 128   ;;  %s15406_s27 = smov 8  }
   0xf   :  { %39 = dma.hbm_to_vmem [thread:$0]  %s18519_s1, 2048, %s34_s22, [#allocation6], %s15405_s26, %s15405_s26, %s15406_s27  }
  0x10   :  { %s15281_s30 = scalar_lea.vmem %s58_s24, 4096  ;;  %p15286_p6 = scmp.lt.s32.totalorder %s58_s24, %s58_s24 }
  0x11   :  { %p15282_p5 = scmp.ne.s32.totalorder %s58_s24, %s15281_s30  ;;  %p15287_p7 = scmp.lt.s32.totalorder %s15281_s30, %s15281_s30 }
  0x13   :  { %p15288_p8 = por %p15287_p7, %p15286_p6 }
  0x15   :  { %p15289_p9 = pnand %p15288_p8, %p15282_p5 }
  0x17   :  { %15292 = shalt.err (!%p15289_p9)
}
  0x18   :  { %63 = dma.hbm_to_vmem [thread:$0]  %s18521_s3, 4096, %s58_s24, [#allocation9], %s15405_s26, %s15405_s26, %s15406_s27  }
  0x19   :  { %s15407_s9 = smov [#allocation2]   ;;  %s15408_s11 = smov [#allocation7]  }
  0x1a   :  { %s21_s10 = sshll.u32 %s15407_s9, 4  ;;  %s45_s12 = sshll.u32 %s15408_s11, 4  ;;  %s22_s10 = int_to_ptr.vmem [resolvable:$true] %s21_s10  ;;  %s46_s12 = int_to_ptr.vmem [resolvable:$true] %s45_s12 }
  0x1b   :  { %s15301_s1 = scalar_lea.vmem %s22_s10, 2048  ;;  %p15306_p11 = scmp.lt.s32.totalorder %s22_s10, %s22_s10 }
  0x1c   :  { %p15302_p10 = scmp.ne.s32.totalorder %s22_s10, %s15301_s1  ;;  %p15307_p12 = scmp.lt.s32.totalorder %s15301_s1, %s15301_s1 }
  0x1e   :  { %p15308_p13 = por %p15307_p12, %p15306_p11 }
  0x20   :  { %p15309_p0 = pnand %p15308_p13, %p15302_p10 }
  0x22   :  { %15312 = shalt.err (!%p15309_p0)
}
  0x23   :  { %27 = dma.hbm_to_vmem [thread:$0]  %s18518_s0, 2048, %s22_s10, [#allocation3], %s15405_s26, %s15405_s26, %s15406_s27  }
  0x24   :  { %s15321_s3 = scalar_lea.vmem %s46_s12, 4096  ;;  %p15326_p2 = scmp.lt.s32.totalorder %s46_s12, %s46_s12 }
  0x25   :  { %p15322_p1 = scmp.ne.s32.totalorder %s46_s12, %s15321_s3  ;;  %p15327_p3 = scmp.lt.s32.totalorder %s15321_s3, %s15321_s3 }
  0x27   :  { %p15328_p4 = por %p15327_p3, %p15326_p2 }
  0x29   :  { %p15329_p5 = pnand %p15328_p4, %p15322_p1 }
  0x2b   :  { %15332 = shalt.err (!%p15329_p5)
}
  0x2c   :  { %51 = dma.hbm_to_vmem [thread:$0]  %s18520_s2, 4096, %s46_s12, [#allocation6], %s15405_s26, %s15405_s26, %s15406_s27  }
  0x2d   :  { %s15409_s17 = smov [#allocation10]   ;;  %s15410_s19 = smov [#allocation11]  }
  0x2e   :  { %s69_s18 = sshll.u32 %s15409_s17, 4  ;;  %s81_s20 = sshll.u32 %s15410_s19, 4  ;;  %s70_s18 = int_to_ptr.vmem [resolvable:$true] %s69_s18  ;;  %s82_s20 = int_to_ptr.vmem [resolvable:$true] %s81_s20 }
  0x2f   :  { %s15341_s0 = scalar_lea.vmem %s70_s18, 3584  ;;  %p15346_p7 = scmp.lt.s32.totalorder %s70_s18, %s70_s18 }
  0x30   :  { %p15342_p6 = scmp.ne.s32.totalorder %s70_s18, %s15341_s0  ;;  %p15347_p8 = scmp.lt.s32.totalorder %s15341_s0, %s15341_s0 }
  0x32   :  { %p15348_p9 = por %p15347_p8, %p15346_p7 }
  0x34   :  { %p15349_p10 = pnand %p15348_p9, %p15342_p6 }
  0x36   :  { %15352 = shalt.err (!%p15349_p10)
}
  0x37   :  { %75 = dma.hbm_to_vmem [thread:$0]  %s18522_s4, 3584, %s70_s18, [#allocation9], %s15405_s26, %s15405_s26, %s15406_s27  }
  0x38   :  { %s15361_s2 = scalar_lea.vmem %s82_s20, 160  ;;  %p15366_p12 = scmp.lt.s32.totalorder %s82_s20, %s82_s20 }
  0x39   :  { %p15362_p11 = scmp.ne.s32.totalorder %s82_s20, %s15361_s2  ;;  %p15367_p13 = scmp.lt.s32.totalorder %s15361_s2, %s15361_s2 }
  0x3b   :  { %p15368_p0 = por %p15367_p13, %p15366_p12 }
  0x3d   :  { %p15369_p1 = pnand %p15368_p0, %p15362_p11 }
  0x3f   :  { %15372 = shalt.err (!%p15369_p1)
}
  0x40   :  { %s15411_s23 = smov 16   ;;  %s15412_s24 = smov 1  }
  0x41   :  { %87 = dma.hbm_to_vmem [thread:$0]  %s18523_s5, 160, %s82_s20, [#allocation12], %s15411_s23, %s15411_s23, %s15412_s24  }
  0x42   :  { %15393 = dma.done.wait [#allocation3], 2048  }
  0x43   :  { %15394 = vsyncadd [#allocation3], 4294965248 }
  0x44   :  { %15395 = dma.done.wait [#allocation6], 6144  }
  0x45   :  { %15396 = vsyncadd [#allocation6], 4294961152 }
  0x46   :  { %15397 = dma.done.wait [#allocation9], 7680  }
  0x47   :  { %15398 = vsyncadd [#allocation9], 4294959616 }
  0x48   :  { %15399 = dma.done.wait [#allocation12], 160  }
  0x49   :  { %15400 = vsyncadd [#allocation12], 4294967136  ;;  %v263_v0 = vld [vmem:[#allocation10 + $0x18] sm:$0xff]  ;;  %v262_v1 = vld [vmem:[#allocation10 + $0x10] sm:$0xff]  ;;  %vm270_vm0 = vcmask 261120   ;;  %vm15414_vm1 = vmmov 0  }
  0x4a   :  { %14926 = vmatprep.subr.mxu1 %v263_v0  ;;  %v114_v2 = vld [vmem:[#allocation2 + $0x40] sm:$0xff]  ;;  %13686 = vmatprep.subr.mxu0 %v263_v0  ;;  %v261_v4 = vld [vmem:[#allocation10 + $0x8] sm:$0xff]  ;;  %v116_v8 = vld [vmem:[#allocation2 + $0x50] sm:$0xff]  ;;  %vm6668_vm2 = vcmask 130048   ;;  %s15415_s4 = smov [#allocation13]  }
  0x4b   :  { %v130_v3 = vld [vmem:[#allocation5 + $0x40] sm:$0xff]  ;;  %14930 = vmatpush3.msra.mxu1 %v263_v0  ;;  %v115_v6 = vld [vmem:[#allocation2 + $0x48] sm:$0xff]  ;;  %13687 = vmatpush3.msra.mxu0 %v263_v0  ;;  %v132_v9 = vld [vmem:[#allocation5 + $0x50] sm:$0xff]  ;;  %s12609_s5 = sshll.u32 %s15415_s4, 4  ;;  %s12610_s5 = int_to_ptr.vmem [resolvable:$true] %s12609_s5 }
  0x4c   :  { %v146_v5 = vadd.f32 %v130_v3, %v114_v2  ;;  %v131_v7 = vld [vmem:[#allocation5 + $0x48] sm:$0xff]  ;;  %14927 = vmatprep.subr.mxu1 %v262_v1  ;;  %13688 = vmatprep.subr.mxu0 %v262_v1  ;;  %v260_v10 = vld [vmem:[#allocation10] sm:$0xff]  ;;  %v148_v12 = vadd.f32 %v132_v9, %v116_v8  ;;  %v117_v13 = vld [vmem:[#allocation2 + $0x58] sm:$0xff]  ;;  %s15373_s29 = scalar_lea.vmem %s12610_s5, 2048  ;;  %p15378_p3 = scmp.lt.s32.totalorder %s12610_s5, %s12610_s5 }
  0x4d   :  { %14931 = vmatpush3.msra.mxu1 %v262_v1  ;;  %v147_v11 = vadd.f32 %v131_v7, %v115_v6  ;;  %13689 = vmatpush3.msra.mxu0 %v262_v1  ;;  %v133_v14 = vld [vmem:[#allocation5 + $0x58] sm:$0xff]  ;;  %v118_v16 = vld [vmem:[#allocation2 + $0x60] sm:$0xff]  ;;  %v119_v18 = vld [vmem:[#allocation2 + $0x68] sm:$0xff]  ;;  %p15374_p2 = scmp.ne.s32.totalorder %s12610_s5, %s15373_s29  ;;  %p15379_p4 = scmp.lt.s32.totalorder %s15373_s29, %s15373_s29 }
  0x4e   :  { %13706 = vmatprep.mubr.msk.f32.mxu1 %vm270_vm0, %v146_v5  ;;  %14928 = vmatprep.subr.mxu1 %v261_v4  ;;  %v468_v15 = vld [vmem:[#allocation10 + $0x38] sm:$0xff]  ;;  %v134_v17 = vld [vmem:[#allocation5 + $0x60] sm:$0xff]  ;;  %v467_v19 = vld [vmem:[#allocation10 + $0x30] sm:$0xff]  ;;  %v149_v20 = vadd.f32 %v133_v14, %v117_v13 }
  0x4f   :  { %14932 = vmatpush3.msra.mxu1 %v261_v4  ;;  %13690 = vmatprep.subr.mxu0 %v261_v4  ;;  %v135_v21 = vld [vmem:[#allocation5 + $0x68] sm:$0xff]  ;;  %v106_v22 = vld [vmem:[#allocation2] sm:$0xff]  ;;  %v150_v24 = vadd.f32 %v134_v17, %v118_v16  ;;  %v120_v29 = vld [vmem:[#allocation2 + $0x70] sm:$0xff]  ;;  %p15380_p5 = por %p15379_p4, %p15378_p3 }
  0x50   :  { %14929 = vmatprep.subr.mxu1 %v260_v10  ;;  %13691 = vmatpush3.msra.mxu0 %v261_v4  ;;  %v122_v23 = vld [vmem:[#allocation5] sm:$0xff]  ;;  %v466_v25 = vld [vmem:[#allocation10 + $0x28] sm:$0xff]  ;;  %v136_v30 = vld [vmem:[#allocation5 + $0x70] sm:$0xff]  ;;  %v151_v33 = vadd.f32 %v135_v21, %v119_v18 }
  0x51   :  { %14933 = vmatpush3.msra.mxu1 %v260_v10  ;;  %13692 = vmatprep.subr.mxu0 %v260_v10  ;;  %v138_v26 = vadd.f32 %v122_v23, %v106_v22  ;;  %v107_v27 = vld [vmem:[#allocation2 + $0x8] sm:$0xff]  ;;  %v465_v32 = vld [vmem:[#allocation10 + $0x20] sm:$0xff]  ;;  %v152_v34 = vadd.f32 %v136_v30, %v120_v29  ;;  %v121_v35 = vld [vmem:[#allocation2 + $0x78] sm:$0xff]  ;;  %p15381_p6 = pnand %p15380_p5, %p15374_p2 }
  0x52   :  { %13707 = vmatmul.mubr.msk.f32.vlgmr.msra.gmra.mxu1 %vm270_vm0, %v147_v11  ;;  %13718 = vmatprep.subr.mxu1 %v468_v15  ;;  %v123_v28 = vld [vmem:[#allocation5 + $0x8] sm:$0xff]  ;;  %v137_v36 = vld [vmem:[#allocation5 + $0x78] sm:$0xff]  ;;  %v15490_v37 = vld [vmem:[#allocation7] sm:$0xff] }
  0x53   :  { %13709 = vmatprep.mubr.msk.f32.mxu1 %vm270_vm0, %v148_v12  ;;  %13719 = vmatpush3.msra.mxu1 %v468_v15  ;;  %v139_v31 = vadd.f32 %v123_v28, %v107_v27  ;;  %v186_v38 = vld [vmem:[#allocation8] sm:$0xff]  ;;  %v108_v39 = vld [vmem:[#allocation2 + $0x10] sm:$0xff]  ;;  %v109_v41 = vld [vmem:[#allocation2 + $0x18] sm:$0xff]  ;;  %v153_v42 = vadd.f32 %v137_v36, %v121_v35 }
  0x54   :  { %13720 = vmatprep.subr.mxu1 %v467_v19  ;;  %13693 = vmatpush3.msra.mxu0 %v260_v10  ;;  %v124_v40 = vld [vmem:[#allocation5 + $0x10] sm:$0xff]  ;;  %v125_v44 = vld [vmem:[#allocation5 + $0x18] sm:$0xff]  ;;  %v218_v45 = vadd.f32 %v186_v38, %v15490_v37  ;;  %v15496_v46 = vld [vmem:[#allocation7 + $0x8] sm:$0xff] }
  0x55   :  { %13721 = vmatpush3.msra.mxu1 %v467_v19  ;;  %13694 = vmatprep.mubr.msk.f32.mxu0 %vm270_vm0, %v138_v26  ;;  %v140_v43 = vadd.f32 %v124_v40, %v108_v39  ;;  %v187_v47 = vld [vmem:[#allocation8 + $0x8] sm:$0xff]  ;;  %v15498_v48 = vld [vmem:[#allocation7 + $0x10] sm:$0xff]  ;;  %v141_v49 = vadd.f32 %v125_v44, %v109_v41  ;;  %v110_v51 = vld [vmem:[#allocation2 + $0x20] sm:$0xff] }
  0x56   :  { %13710 = vmatmul.mubr.msk.f32.gmra.mxu1 %vm270_vm0, %v149_v20  ;;  %13722 = vmatprep.subr.mxu1 %v466_v25  ;;  %v188_v50 = vld [vmem:[#allocation8 + $0x10] sm:$0xff]  ;;  %v126_v52 = vld [vmem:[#allocation5 + $0x20] sm:$0xff]  ;;  %v111_v54 = vld [vmem:[#allocation2 + $0x28] sm:$0xff]  ;;  %v219_v55 = vadd.f32 %v187_v47, %v15496_v46 }
  0x57   :  { %13712 = vmatprep.mubr.msk.f32.mxu1 %vm270_vm0, %v150_v24  ;;  %13723 = vmatpush3.msra.mxu1 %v466_v25  ;;  %v142_v53 = vadd.f32 %v126_v52, %v110_v51  ;;  %v127_v56 = vld [vmem:[#allocation5 + $0x28] sm:$0xff]  ;;  %v220_v57 = vadd.f32 %v188_v50, %v15498_v48  ;;  %v15506_v58 = vld [vmem:[#allocation7 + $0x18] sm:$0xff]  ;;  %v15508_v60 = vld [vmem:[#allocation7 + $0x20] sm:$0xff] }
  0x58   :  { %13724 = vmatprep.subr.mxu1 %v465_v32  ;;  %13695 = vmatmul.mubr.msk.f32.vlgmr.msra.gmra.mxu0 %vm270_vm0, %v139_v31  ;;  %v189_v59 = vld [vmem:[#allocation8 + $0x18] sm:$0xff]  ;;  %v143_v61 = vadd.f32 %v127_v56, %v111_v54  ;;  %v190_v62 = vld [vmem:[#allocation8 + $0x20] sm:$0xff]  ;;  %v112_v63 = vld [vmem:[#allocation2 + $0x30] sm:$0xff] }
  0x59   :  { %13725 = vmatpush3.msra.mxu1 %v465_v32  ;;  %13697 = vmatprep.mubr.msk.f32.mxu0 %vm270_vm0, %v140_v43  ;;  %v128_v0 = vld [vmem:[#allocation5 + $0x30] sm:$0xff]  ;;  %v113_v2 = vld [vmem:[#allocation2 + $0x38] sm:$0xff]  ;;  %v221_v3 = vadd.f32 %v189_v59, %v15506_v58  ;;  %v222_v5 = vadd.f32 %v190_v62, %v15508_v60  ;;  %v15516_v6 = vld [vmem:[#allocation7 + $0x28] sm:$0xff] }
  0x5a   :  { %13713 = vmatmul.mubr.msk.f32.gmra.mxu1 %vm270_vm0, %v151_v33  ;;  %v144_v1 = vadd.f32 %v128_v0, %v112_v63  ;;  %v129_v4 = vld [vmem:[#allocation5 + $0x38] sm:$0xff]  ;;  %v191_v7 = vld [vmem:[#allocation8 + $0x28] sm:$0xff]  ;;  %v15519_v9 = vld [vmem:[#allocation7 + $0x30] sm:$0xff] }
  0x5b   :  { %13715 = vmatprep.mubr.msk.f32.mxu1 %vm270_vm0, %v152_v34  ;;  %v145_v8 = vadd.f32 %v129_v4, %v113_v2  ;;  %v192_v10 = vld [vmem:[#allocation8 + $0x30] sm:$0xff]  ;;  %v223_v11 = vadd.f32 %v191_v7, %v15516_v6  ;;  %v15528_v13 = vld [vmem:[#allocation7 + $0x38] sm:$0xff]  ;;  %v15530_v15 = vld [vmem:[#allocation7 + $0x40] sm:$0xff] }
  0x5c   :  { %13698 = vmatmul.mubr.msk.f32.gmra.mxu0 %vm270_vm0, %v141_v49  ;;  %v224_v12 = vadd.f32 %v192_v10, %v15519_v9  ;;  %v193_v14 = vld [vmem:[#allocation8 + $0x38] sm:$0xff]  ;;  %v194_v16 = vld [vmem:[#allocation8 + $0x40] sm:$0xff]  ;;  %v15536_v19 = vld [vmem:[#allocation7 + $0x48] sm:$0xff] }
  0x5d   :  { %13700 = vmatprep.mubr.msk.f32.mxu0 %vm270_vm0, %v142_v53  ;;  %v225_v17 = vadd.f32 %v193_v14, %v15528_v13  ;;  %v226_v18 = vadd.f32 %v194_v16, %v15530_v15  ;;  %v195_v20 = vld [vmem:[#allocation8 + $0x48] sm:$0xff]  ;;  %v888_v21 = vld [vmem:[#allocation10 + $0x78] sm:$0xff]  ;;  %v15538_v22 = vld [vmem:[#allocation7 + $0x50] sm:$0xff] }
  0x5e   :  { %13716 = vmatmul.mubr.msk.f32.gmra.mxu1 %vm270_vm0, %v153_v42  ;;  %v196_v23 = vld [vmem:[#allocation8 + $0x50] sm:$0xff]  ;;  %13774 = vmatprep.subr.mxu0 %v888_v21  ;;  %v886_v25 = vld [vmem:[#allocation10 + $0x68] sm:$0xff]  ;;  %v1214_v26 = vld [vmem:[#allocation10 + $0x98] sm:$0xff]  ;;  %v227_v27 = vadd.f32 %v195_v20, %v15536_v19 }
  0x5f   :  { %13726 = vmatprep.mubr.msk.f32.mxu1 %vm270_vm0, %v218_v45  ;;  %v887_v24 = vld [vmem:[#allocation10 + $0x70] sm:$0xff]  ;;  %13775 = vmatpush3.msra.mxu0 %v888_v21  ;;  %v228_v28 = vadd.f32 %v196_v23, %v15538_v22  ;;  %v15544_v29 = vld [vmem:[#allocation7 + $0x58] sm:$0xff]  ;;  %v885_v31 = vld [vmem:[#allocation10 + $0x60] sm:$0xff] }
  0x60   :  { %13701 = vmatmul.mubr.msk.f32.gmra.mxu0 %vm270_vm0, %v143_v61  ;;  %13776 = vmatprep.subr.mxu0 %v887_v24  ;;  %v197_v30 = vld [vmem:[#allocation8 + $0x58] sm:$0xff]  ;;  %v15546_v32 = vld [vmem:[#allocation7 + $0x60] sm:$0xff]  ;;  %v1213_v34 = vld [vmem:[#allocation10 + $0x90] sm:$0xff] }
  0x61   :  { %13703 = vmatprep.mubr.msk.f32.mxu0 %vm270_vm0, %v144_v1  ;;  %13777 = vmatpush3.msra.mxu0 %v887_v24  ;;  %v198_v33 = vld [vmem:[#allocation8 + $0x60] sm:$0xff]  ;;  %v229_v35 = vadd.f32 %v197_v30, %v15544_v29  ;;  %v15552_v38 = vld [vmem:[#allocation7 + $0x68] sm:$0xff]  ;;  %v15554_v41 = vld [vmem:[#allocation7 + $0x70] sm:$0xff] }
  0x62   :  { %13727 = vmatmul.mubr.msk.f32.vlgmr.msra.gmra.mxu1 %vm270_vm0, %v219_v55  ;;  %13778 = vmatprep.subr.mxu0 %v886_v25  ;;  %v230_v36 = vadd.f32 %v198_v33, %v15546_v32  ;;  %v199_v39 = vld [vmem:[#allocation8 + $0x68] sm:$0xff]  ;;  %v200_v42 = vld [vmem:[#allocation8 + $0x70] sm:$0xff]  ;;  %v1211_v43 = vld [vmem:[#allocation10 + $0x80] sm:$0xff] }
  0x63   :  { %13729 = vmatprep.mubr.msk.f32.mxu1 %vm270_vm0, %v220_v57  ;;  %13830 = vmatprep.subr.mxu1 %v1214_v26  ;;  %v1212_v40 = vld [vmem:[#allocation10 + $0x88] sm:$0xff]  ;;  %v231_v44 = vadd.f32 %v199_v39, %v15552_v38  ;;  %v232_v45 = vadd.f32 %v200_v42, %v15554_v41  ;;  %v15564_v47 = vld [vmem:[#allocation7 + $0x78] sm:$0xff]  ;;  %v15566_v51 = vld [vmem:[#allocation7 + $0x80] sm:$0xff] }
  0x64   :  { %13704 = vmatmul.mubr.msk.f32.gmra.mxu0 %vm270_vm0, %v145_v8  ;;  %13831 = vmatpush3.msra.mxu1 %v1214_v26  ;;  %v201_v49 = vld [vmem:[#allocation8 + $0x78] sm:$0xff]  ;;  %v202_v52 = vld [vmem:[#allocation8 + $0x80] sm:$0xff]  ;;  %v1443_v53 = vld [vmem:[#allocation10 + $0xb0] sm:$0xff] }
  0x65   :  { %13782 = vmatprep.mubr.msk.f32.mxu0 %vm270_vm0, %v15490_v37  ;;  %13779 = vmatpush3.msra.mxu0 %v886_v25  ;;  %v1444_v50 = vld [vmem:[#allocation10 + $0xb8] sm:$0xff]  ;;  %v233_v54 = vadd.f32 %v201_v49, %v15564_v47  ;;  %v234_v55 = vadd.f32 %v202_v52, %v15566_v51  ;;  %v15576_v56 = vld [vmem:[#allocation7 + $0x88] sm:$0xff]  ;;  %v15578_v61 = vld [vmem:[#allocation7 + $0x90] sm:$0xff] }
  0x66   :  { %13730 = vmatmul.mubr.msk.f32.gmra.mxu1 %vm270_vm0, %v221_v3  ;;  %13780 = vmatprep.subr.mxu0 %v885_v31  ;;  %v203_v57 = vld [vmem:[#allocation8 + $0x88] sm:$0xff]  ;;  %v204_v62 = vld [vmem:[#allocation8 + $0x90] sm:$0xff]  ;;  %v1441_v63 = vld [vmem:[#allocation10 + $0xa0] sm:$0xff] }
  0x67   :  { %13732 = vmatprep.mubr.msk.f32.mxu1 %vm270_vm0, %v222_v5  ;;  %13781 = vmatpush3.msra.mxu0 %v885_v31  ;;  %v1442_v59 = vld [vmem:[#allocation10 + $0xa8] sm:$0xff]  ;;  %v235_v0 = vadd.f32 %v203_v57, %v15576_v56  ;;  %v236_v1 = vadd.f32 %v204_v62, %v15578_v61  ;;  %v15588_v2 = vld [vmem:[#allocation7 + $0x98] sm:$0xff]  ;;  %v15592_v5 = vld [vmem:[#allocation7 + $0xa0] sm:$0xff] }
  0x68   :  { %13783 = vmatmul.mubr.msk.f32.vlgmr.msra.gmra.mxu0 %vm270_vm0, %v15496_v46  ;;  %13832 = vmatprep.subr.mxu1 %v1213_v34  ;;  %v205_v3 = vld [vmem:[#allocation8 + $0x98] sm:$0xff]  ;;  %v206_v7 = vld [vmem:[#allocation8 + $0xa0] sm:$0xff]  ;;  %v15605_v14 = vld [vmem:[#allocation7 + $0xb0] sm:$0xff] }
  0x69   :  { %13785 = vmatprep.mubr.msk.f32.mxu0 %vm270_vm0, %v15498_v48  ;;  %13833 = vmatpush3.msra.mxu1 %v1213_v34  ;;  %v15590_v4 = vld [vmem:[#allocation10 + $0xd8] sm:$0xff]  ;;  %v237_v8 = vadd.f32 %v205_v3, %v15588_v2  ;;  %v238_v10 = vadd.f32 %v206_v7, %v15592_v5  ;;  %v208_v16 = vld [vmem:[#allocation8 + $0xb0] sm:$0xff]  ;;  %v15617_v23 = vld [vmem:[#allocation7 + $0xc0] sm:$0xff] }
  0x6a   :  { %13733 = vmatmul.mubr.msk.f32.gmra.mxu1 %vm270_vm0, %v223_v11  ;;  %13834 = vmatprep.subr.mxu1 %v1212_v40  ;;  %v15603_v11 = vld [vmem:[#allocation7 + $0xa8] sm:$0xff]  ;;  %v15615_v20 = vld [vmem:[#allocation7 + $0xb8] sm:$0xff]  ;;  %v210_v24 = vld [vmem:[#allocation8 + $0xc0] sm:$0xff] }
  0x6b   :  { %13735 = vmatprep.mubr.msk.f32.mxu1 %vm270_vm0, %v224_v12  ;;  %13835 = vmatpush3.msra.mxu1 %v1212_v40  ;;  %v207_v12 = vld [vmem:[#allocation8 + $0xa8] sm:$0xff]  ;;  %v209_v21 = vld [vmem:[#allocation8 + $0xb8] sm:$0xff]  ;;  %v242_v26 = vadd.f32 %v210_v24, %v15617_v23  ;;  %v15629_v30 = vld [vmem:[#allocation7 + $0xd0] sm:$0xff] }
  0x6c   :  { %13786 = vmatmul.mubr.msk.f32.gmra.mxu0 %vm270_vm0, %v15506_v58  ;;  %13836 = vmatprep.subr.mxu1 %v1211_v43  ;;  %v241_v25 = vadd.f32 %v209_v21, %v15615_v20  ;;  %v212_v31 = vld [vmem:[#allocation8 + $0xd0] sm:$0xff]  ;;  %v15641_v39 = vld [vmem:[#allocation7 + $0xe0] sm:$0xff]  ;;  %v1672_v62 = vld [vmem:[#allocation10 + $0xc8] sm:$0xff] }
  0x6d   :  { %13788 = vmatprep.mubr.msk.f32.mxu0 %vm270_vm0, %v15508_v60  ;;  %13837 = vmatpush3.msra.mxu1 %v1211_v43  ;;  %v244_v34 = vadd.f32 %v212_v31, %v15629_v30  ;;  %v214_v40 = vld [vmem:[#allocation8 + $0xe0] sm:$0xff]  ;;  %v15653_v49 = vld [vmem:[#allocation7 + $0xf0] sm:$0xff] }
  0x6e   :  { %13736 = vmatmul.mubr.msk.f32.gmra.mxu1 %vm270_vm0, %v225_v17  ;;  %13886 = vmatprep.subr.mxu0 %v1444_v50  ;;  %v239_v17 = vadd.f32 %v207_v12, %v15603_v11  ;;  %v246_v43 = vadd.f32 %v214_v40, %v15641_v39 }
  0x6f   :  { %13738 = vmatprep.mubr.msk.f32.mxu1 %vm270_vm0, %v226_v18  ;;  %13887 = vmatpush3.msra.mxu0 %v1444_v50  ;;  %v240_v18 = vadd.f32 %v208_v16, %v15605_v14  ;;  %v216_v50 = vld [vmem:[#allocation8 + $0xf0] sm:$0xff] }
  0x70   :  { %13789 = vmatmul.mubr.msk.f32.gmra.mxu0 %vm270_vm0, %v15516_v6  ;;  %13888 = vmatprep.subr.mxu0 %v1443_v53 }
  0x71   :  { %13791 = vmatprep.mubr.msk.f32.mxu0 %vm270_vm0, %v15519_v9  ;;  %13889 = vmatpush3.msra.mxu0 %v1443_v53  ;;  %v248_v53 = vadd.f32 %v216_v50, %v15653_v49 }
  0x72   :  { %13739 = vmatmul.mubr.msk.f32.gmra.mxu1 %vm270_vm0, %v227_v27  ;;  %13890 = vmatprep.subr.mxu0 %v1442_v59  ;;  %v15627_v27 = vld [vmem:[#allocation7 + $0xc8] sm:$0xff] }
  0x73   :  { %13741 = vmatprep.mubr.msk.f32.mxu1 %vm270_vm0, %v228_v28  ;;  %13891 = vmatpush3.msra.mxu0 %v1442_v59  ;;  %v211_v28 = vld [vmem:[#allocation8 + $0xc8] sm:$0xff]  ;;  %v1673_v59 = vld [vmem:[#allocation10 + $0xd0] sm:$0xff] }
  0x74   :  { %13792 = vmatmul.mubr.msk.f32.gmra.mxu0 %vm270_vm0, %v15528_v13  ;;  %13892 = vmatprep.subr.mxu0 %v1441_v63  ;;  %v243_v33 = vadd.f32 %v211_v28, %v15627_v27 }
  0x75   :  { %13794 = vmatprep.mubr.msk.f32.mxu0 %vm270_vm0, %v15530_v15  ;;  %13893 = vmatpush3.msra.mxu0 %v1441_v63  ;;  %v1671_v63 = vld [vmem:[#allocation10 + $0xc0] sm:$0xff] }
  0x76   :  { %13742 = vmatmul.mubr.msk.f32.gmra.mxu1 %vm270_vm0, %v229_v35  ;;  %13942 = vmatprep.subr.mxu1 %v15590_v4  ;;  %v15639_v35 = vld [vmem:[#allocation7 + $0xd8] sm:$0xff] }
  0x77   :  { %13744 = vmatprep.mubr.msk.f32.mxu1 %vm270_vm0, %v230_v36  ;;  %v213_v36 = vld [vmem:[#allocation8 + $0xd8] sm:$0xff] }
  0x78   :  { %13795 = vmatmul.mubr.msk.f32.gmra.mxu0 %vm270_vm0, %v15536_v19  ;;  %v245_v42 = vadd.f32 %v213_v36, %v15639_v35 }
  0x79   :  { %13797 = vmatprep.mubr.msk.f32.mxu0 %vm270_vm0, %v15538_v22 }
  0x7a   :  { %13745 = vmatmul.mubr.msk.f32.gmra.mxu1 %vm270_vm0, %v231_v44  ;;  %v15651_v44 = vld [vmem:[#allocation7 + $0xe8] sm:$0xff] }
  0x7b   :  { %13747 = vmatprep.mubr.msk.f32.mxu1 %vm270_vm0, %v232_v45  ;;  %v215_v45 = vld [vmem:[#allocation8 + $0xe8] sm:$0xff] }
  0x7c   :  { %13798 = vmatmul.mubr.msk.f32.gmra.mxu0 %vm270_vm0, %v15544_v29  ;;  %v247_v52 = vadd.f32 %v215_v45, %v15651_v44 }
  0x7d   :  { %13800 = vmatprep.mubr.msk.f32.mxu0 %vm270_vm0, %v15546_v32 }
  0x7e   :  { %13748 = vmatmul.mubr.msk.f32.gmra.mxu1 %vm270_vm0, %v233_v54  ;;  %v15663_v54 = vld [vmem:[#allocation7 + $0xf8] sm:$0xff] }
  0x7f   :  { %13750 = vmatprep.mubr.msk.f32.mxu1 %vm270_vm0, %v234_v55  ;;  %v217_v55 = vld [vmem:[#allocation8 + $0xf8] sm:$0xff] }
  0x80   :  { %13801 = vmatmul.mubr.msk.f32.gmra.mxu0 %vm270_vm0, %v15552_v38  ;;  %v249_v57 = vadd.f32 %v217_v55, %v15663_v54 }
  0x81   :  { %13803 = vmatprep.mubr.msk.f32.mxu0 %vm270_vm0, %v15554_v41 }
  0x82   :  { %13751 = vmatmul.mubr.msk.f32.gmra.mxu1 %vm270_vm0, %v235_v0  ;;  %v18525_v0 = vmov 0.0  }
  0x83   :  { %13753 = vmatprep.mubr.msk.f32.mxu1 %vm270_vm0, %v236_v1  ;;  %13998 = vmatprep.subr.mxu0 %v18525_v0  ;;  %v12677_v1 = vld [vmem:[#allocation11 + $0x3] ss:$0 sm:$0xff] }
  0x84   :  { %13804 = vmatmul.mubr.msk.f32.gmra.mxu0 %vm270_vm0, %v15564_v47 }
  0x85   :  { %13806 = vmatprep.mubr.msk.f32.mxu0 %vm270_vm0, %v15566_v51 }
  0x86   :  { %13754 = vmatmul.mubr.msk.f32.gmra.mxu1 %vm270_vm0, %v237_v8 }
  0x87   :  { %13756 = vmatprep.mubr.msk.f32.mxu1 %vm270_vm0, %v238_v10 }
  0x88   :  { %13807 = vmatmul.mubr.msk.f32.gmra.mxu0 %vm270_vm0, %v15576_v56 }
  0x89   :  { %13809 = vmatprep.mubr.msk.f32.mxu0 %vm270_vm0, %v15578_v61 }
  0x8a   :  { %13757 = vmatmul.mubr.msk.f32.gmra.mxu1 %vm270_vm0, %v239_v17 }
  0x8b   :  { %13759 = vmatprep.mubr.msk.f32.mxu1 %vm270_vm0, %v240_v18 }
  0x8c   :  { %13810 = vmatmul.mubr.msk.f32.gmra.mxu0 %vm270_vm0, %v15588_v2 }
  0x8d   :  { %13812 = vmatprep.mubr.msk.f32.mxu0 %vm270_vm0, %v15592_v5 }
  0x8e   :  { %13760 = vmatmul.mubr.msk.f32.gmra.mxu1 %vm270_vm0, %v241_v25 }
  0x8f   :  { %13762 = vmatprep.mubr.msk.f32.mxu1 %vm270_vm0, %v242_v26 }
  0x90   :  { %13813 = vmatmul.mubr.msk.f32.gmra.mxu0 %vm270_vm0, %v15603_v11 }
  0x91   :  { %13815 = vmatprep.mubr.msk.f32.mxu0 %vm270_vm0, %v15605_v14 }
  0x92   :  { %13763 = vmatmul.mubr.msk.f32.gmra.mxu1 %vm270_vm0, %v243_v33 }
  0x93   :  { %13765 = vmatprep.mubr.msk.f32.mxu1 %vm270_vm0, %v244_v34 }
  0x94   :  { %13816 = vmatmul.mubr.msk.f32.gmra.mxu0 %vm270_vm0, %v15615_v20 }
  0x95   :  { %13818 = vmatprep.mubr.msk.f32.mxu0 %vm270_vm0, %v15617_v23 }
  0x96   :  { %13766 = vmatmul.mubr.msk.f32.gmra.mxu1 %vm270_vm0, %v245_v42 }
  0x97   :  { %13768 = vmatprep.mubr.msk.f32.mxu1 %vm270_vm0, %v246_v43 }
  0x98   :  { %13819 = vmatmul.mubr.msk.f32.gmra.mxu0 %vm270_vm0, %v15627_v27 }
  0x99   :  { %13821 = vmatprep.mubr.msk.f32.mxu0 %vm270_vm0, %v15629_v30 }
  0x9a   :  { %13769 = vmatmul.mubr.msk.f32.gmra.mxu1 %vm270_vm0, %v247_v52 }
  0x9b   :  { %13771 = vmatprep.mubr.msk.f32.mxu1 %vm270_vm0, %v248_v53 }
  0x9c   :  { %13822 = vmatmul.mubr.msk.f32.gmra.mxu0 %vm270_vm0, %v15639_v35 }
  0x9d   :  { %13824 = vmatprep.mubr.msk.f32.mxu0 %vm270_vm0, %v15641_v39 }
  0x9e   :  { %13772 = vmatmul.mubr.msk.f32.gmra.mxu1 %vm270_vm0, %v249_v57 }
  0x9f   :  { %13838 = vmatprep.mubr.msk.f32.mxu1 %vm270_vm0, %v15490_v37 }
  0xa0   :  { %13825 = vmatmul.mubr.msk.f32.gmra.mxu0 %vm270_vm0, %v15651_v44 }
  0xa1   :  { %13827 = vmatprep.mubr.msk.f32.mxu0 %vm270_vm0, %v15653_v49 }
  0xa2   :  { %13839 = vmatmul.mubr.msk.f32.vlgmr.msra.gmra.mxu1 %vm270_vm0, %v15496_v46 }
  0xa3   :  { %13841 = vmatprep.mubr.msk.f32.mxu1 %vm270_vm0, %v15498_v48  ;;  %13943 = vmatpush3.msra.mxu1 %v15590_v4 }
  0xa4   :  { %13944 = vmatprep.subr.mxu1 %v1673_v59  ;;  %13828 = vmatmul.mubr.msk.f32.gmra.mxu0 %vm270_vm0, %v15663_v54 }
  0xa5   :  { %13945 = vmatpush3.msra.mxu1 %v1673_v59  ;;  %13894 = vmatprep.mubr.msk.f32.mxu0 %vm270_vm0, %v15490_v37 }
  0xa6   :  { %13842 = vmatmul.mubr.msk.f32.gmra.mxu1 %vm270_vm0, %v15506_v58  ;;  %13946 = vmatprep.subr.mxu1 %v1672_v62 }
  0xa7   :  { %13844 = vmatprep.mubr.msk.f32.mxu1 %vm270_vm0, %v15508_v60  ;;  %13947 = vmatpush3.msra.mxu1 %v1672_v62 }
  0xa8   :  { %13948 = vmatprep.subr.mxu1 %v1671_v63  ;;  %13895 = vmatmul.mubr.msk.f32.vlgmr.msra.gmra.mxu0 %vm270_vm0, %v15496_v46 }
  0xa9   :  { %13949 = vmatpush3.msra.mxu1 %v1671_v63  ;;  %13897 = vmatprep.mubr.msk.f32.mxu0 %vm270_vm0, %v15498_v48 }
  0xaa   :  { %13845 = vmatmul.mubr.msk.f32.gmra.mxu1 %vm270_vm0, %v15516_v6  ;;  %14033 = vmatprep.subr.mxu1 %v18525_v0 }
  0xab   :  { %13847 = vmatprep.mubr.msk.f32.mxu1 %vm270_vm0, %v15519_v9 }
  0xac   :  { %13898 = vmatmul.mubr.msk.f32.gmra.mxu0 %vm270_vm0, %v15506_v58 }
  0xad   :  { %13900 = vmatprep.mubr.msk.f32.mxu0 %vm270_vm0, %v15508_v60 }
  0xae   :  { %13848 = vmatmul.mubr.msk.f32.gmra.mxu1 %vm270_vm0, %v15528_v13 }
  0xaf   :  { %13850 = vmatprep.mubr.msk.f32.mxu1 %vm270_vm0, %v15530_v15 }
  0xb0   :  { %13901 = vmatmul.mubr.msk.f32.gmra.mxu0 %vm270_vm0, %v15516_v6 }
  0xb1   :  { %13903 = vmatprep.mubr.msk.f32.mxu0 %vm270_vm0, %v15519_v9 }
  0xb2   :  { %13851 = vmatmul.mubr.msk.f32.gmra.mxu1 %vm270_vm0, %v15536_v19 }
  0xb3   :  { %13853 = vmatprep.mubr.msk.f32.mxu1 %vm270_vm0, %v15538_v22 }
  0xb4   :  { %13904 = vmatmul.mubr.msk.f32.gmra.mxu0 %vm270_vm0, %v15528_v13 }
  0xb5   :  { %13906 = vmatprep.mubr.msk.f32.mxu0 %vm270_vm0, %v15530_v15 }
  0xb6   :  { %13854 = vmatmul.mubr.msk.f32.gmra.mxu1 %vm270_vm0, %v15544_v29 }
  0xb7   :  { %13856 = vmatprep.mubr.msk.f32.mxu1 %vm270_vm0, %v15546_v32 }
  0xb8   :  { %13907 = vmatmul.mubr.msk.f32.gmra.mxu0 %vm270_vm0, %v15536_v19 }
  0xb9   :  { %13909 = vmatprep.mubr.msk.f32.mxu0 %vm270_vm0, %v15538_v22 }
  0xba   :  { %13857 = vmatmul.mubr.msk.f32.gmra.mxu1 %vm270_vm0, %v15552_v38 }
  0xbb   :  { %13859 = vmatprep.mubr.msk.f32.mxu1 %vm270_vm0, %v15554_v41 }
  0xbc   :  { %13910 = vmatmul.mubr.msk.f32.gmra.mxu0 %vm270_vm0, %v15544_v29 }
  0xbd   :  { %13912 = vmatprep.mubr.msk.f32.mxu0 %vm270_vm0, %v15546_v32 }
  0xbe   :  { %13860 = vmatmul.mubr.msk.f32.gmra.mxu1 %vm270_vm0, %v15564_v47 }
  0xbf   :  { %13862 = vmatprep.mubr.msk.f32.mxu1 %vm270_vm0, %v15566_v51 }
  0xc0   :  { %13913 = vmatmul.mubr.msk.f32.gmra.mxu0 %vm270_vm0, %v15552_v38 }
  0xc1   :  { %13915 = vmatprep.mubr.msk.f32.mxu0 %vm270_vm0, %v15554_v41 }
  0xc2   :  { %13863 = vmatmul.mubr.msk.f32.gmra.mxu1 %vm270_vm0, %v15576_v56 }
  0xc3   :  { %13865 = vmatprep.mubr.msk.f32.mxu1 %vm270_vm0, %v15578_v61 }
  0xc4   :  { %13916 = vmatmul.mubr.msk.f32.gmra.mxu0 %vm270_vm0, %v15564_v47 }
  0xc5   :  { %13918 = vmatprep.mubr.msk.f32.mxu0 %vm270_vm0, %v15566_v51 }
  0xc6   :  { %13866 = vmatmul.mubr.msk.f32.gmra.mxu1 %vm270_vm0, %v15588_v2 }
  0xc7   :  { %13868 = vmatprep.mubr.msk.f32.mxu1 %vm270_vm0, %v15592_v5 }
  0xc8   :  { %13919 = vmatmul.mubr.msk.f32.gmra.mxu0 %vm270_vm0, %v15576_v56 }
  0xc9   :  { %13921 = vmatprep.mubr.msk.f32.mxu0 %vm270_vm0, %v15578_v61 }
  0xca   :  { %13869 = vmatmul.mubr.msk.f32.gmra.mxu1 %vm270_vm0, %v15603_v11 }
  0xcb   :  { %13871 = vmatprep.mubr.msk.f32.mxu1 %vm270_vm0, %v15605_v14 }
  0xcc   :  { %13922 = vmatmul.mubr.msk.f32.gmra.mxu0 %vm270_vm0, %v15588_v2 }
  0xcd   :  { %13924 = vmatprep.mubr.msk.f32.mxu0 %vm270_vm0, %v15592_v5 }
  0xce   :  { %13872 = vmatmul.mubr.msk.f32.gmra.mxu1 %vm270_vm0, %v15615_v20 }
  0xcf   :  { %13874 = vmatprep.mubr.msk.f32.mxu1 %vm270_vm0, %v15617_v23 }
  0xd0   :  { %13925 = vmatmul.mubr.msk.f32.gmra.mxu0 %vm270_vm0, %v15603_v11 }
  0xd1   :  { %13927 = vmatprep.mubr.msk.f32.mxu0 %vm270_vm0, %v15605_v14 }
  0xd2   :  { %13875 = vmatmul.mubr.msk.f32.gmra.mxu1 %vm270_vm0, %v15627_v27 }
  0xd3   :  { %13877 = vmatprep.mubr.msk.f32.mxu1 %vm270_vm0, %v15629_v30 }
  0xd4   :  { %13928 = vmatmul.mubr.msk.f32.gmra.mxu0 %vm270_vm0, %v15615_v20 }
  0xd5   :  { %13930 = vmatprep.mubr.msk.f32.mxu0 %vm270_vm0, %v15617_v23 }
  0xd6   :  { %13878 = vmatmul.mubr.msk.f32.gmra.mxu1 %vm270_vm0, %v15639_v35 }
  0xd7   :  { %13880 = vmatprep.mubr.msk.f32.mxu1 %vm270_vm0, %v15641_v39 }
  0xd8   :  { %13931 = vmatmul.mubr.msk.f32.gmra.mxu0 %vm270_vm0, %v15627_v27 }
  0xd9   :  { %13933 = vmatprep.mubr.msk.f32.mxu0 %vm270_vm0, %v15629_v30 }
  0xda   :  { %13881 = vmatmul.mubr.msk.f32.gmra.mxu1 %vm270_vm0, %v15651_v44 }
  0xdb   :  { %13883 = vmatprep.mubr.msk.f32.mxu1 %vm270_vm0, %v15653_v49 }
  0xdc   :  { %13934 = vmatmul.mubr.msk.f32.gmra.mxu0 %vm270_vm0, %v15639_v35 }
  0xdd   :  { %13936 = vmatprep.mubr.msk.f32.mxu0 %vm270_vm0, %v15641_v39 }
  0xde   :  { %13884 = vmatmul.mubr.msk.f32.gmra.mxu1 %vm270_vm0, %v15663_v54 }
  0xdf   :  { %13950 = vmatprep.mubr.msk.f32.mxu1 %vm270_vm0, %v15490_v37 }
  0xe0   :  { %13937 = vmatmul.mubr.msk.f32.gmra.mxu0 %vm270_vm0, %v15651_v44 }
  0xe1   :  { %13939 = vmatprep.mubr.msk.f32.mxu0 %vm270_vm0, %v15653_v49 }
  0xe2   :  { %13951 = vmatmul.mubr.msk.f32.vlgmr.msra.gmra.mxu1 %vm270_vm0, %v15496_v46 }
  0xe3   :  { %13953 = vmatprep.mubr.msk.f32.mxu1 %vm270_vm0, %v15498_v48 }
  0xe4   :  { %13940 = vmatmul.mubr.msk.f32.gmra.mxu0 %vm270_vm0, %v15663_v54 }
  0xe5   :  { %14002 = vmatprep.mubr.msk.f32.mxu0 %vm15414_vm1, %v18525_v0 }
  0xe6   :  { %13954 = vmatmul.mubr.msk.f32.gmra.mxu1 %vm270_vm0, %v15506_v58 }
  0xe7   :  { %13956 = vmatprep.mubr.msk.f32.mxu1 %vm270_vm0, %v15508_v60 }
  0xea   :  { %13957 = vmatmul.mubr.msk.f32.gmra.mxu1 %vm270_vm0, %v15516_v6 }
  0xeb   :  { %13959 = vmatprep.mubr.msk.f32.mxu1 %vm270_vm0, %v15519_v9 }
  0xee   :  { %13960 = vmatmul.mubr.msk.f32.gmra.mxu1 %vm270_vm0, %v15528_v13  ;;  %v15900_v13 = vld [vmem:[#allocation11 + $0x4] ss:$0 sm:$0xff] }
  0xef   :  { %13962 = vmatprep.mubr.msk.f32.mxu1 %vm270_vm0, %v15530_v15 }
  0xf2   :  { %13963 = vmatmul.mubr.msk.f32.gmra.mxu1 %vm270_vm0, %v15536_v19 }
  0xf3   :  { %13965 = vmatprep.mubr.msk.f32.mxu1 %vm270_vm0, %v15538_v22  ;;  %v15909_v22 = vld [vmem:[#allocation11] ss:$0 sm:$0xff] }
  0xf6   :  { %13966 = vmatmul.mubr.msk.f32.gmra.mxu1 %vm270_vm0, %v15544_v29 }
  0xf7   :  { %13968 = vmatprep.mubr.msk.f32.mxu1 %vm270_vm0, %v15546_v32 }
  0xfa   :  { %13969 = vmatmul.mubr.msk.f32.gmra.mxu1 %vm270_vm0, %v15552_v38  ;;  %v15917_v38 = vld [vmem:[#allocation11 + $0x5] ss:$0 sm:$0xff] }
  0xfb   :  { %13971 = vmatprep.mubr.msk.f32.mxu1 %vm270_vm0, %v15554_v41 }
  0xfe   :  { %13972 = vmatmul.mubr.msk.f32.gmra.mxu1 %vm270_vm0, %v15564_v47 }
  0xff   :  { %13974 = vmatprep.mubr.msk.f32.mxu1 %vm270_vm0, %v15566_v51 }
 0x102   :  { %13975 = vmatmul.mubr.msk.f32.gmra.mxu1 %vm270_vm0, %v15576_v56  ;;  %v15920_v56 = vld [vmem:[#allocation11 + $0x1] ss:$0 sm:$0xff] }
 0x103   :  { %13977 = vmatprep.mubr.msk.f32.mxu1 %vm270_vm0, %v15578_v61  ;;  %v15922_v61 = vld [vmem:[#allocation11 + $0x2] ss:$0 sm:$0xff] }
 0x106   :  { %13978 = vmatmul.mubr.msk.f32.gmra.mxu1 %vm270_vm0, %v15588_v2 }
 0x107   :  { %13980 = vmatprep.mubr.msk.f32.mxu1 %vm270_vm0, %v15592_v5 }
 0x10a   :  { %13981 = vmatmul.mubr.msk.f32.gmra.mxu1 %vm270_vm0, %v15603_v11 }
 0x10b   :  { %13983 = vmatprep.mubr.msk.f32.mxu1 %vm270_vm0, %v15605_v14 }
 0x10e   :  { %13984 = vmatmul.mubr.msk.f32.gmra.mxu1 %vm270_vm0, %v15615_v20 }
 0x10f   :  { %13986 = vmatprep.mubr.msk.f32.mxu1 %vm270_vm0, %v15617_v23 }
 0x112   :  { %v15878_v37 = vpop.f32.mrf.mxu1  ;;  %13987 = vmatmul.mubr.msk.f32.gmra.mxu1 %vm270_vm0, %v15627_v27 }
 0x113   :  { %13989 = vmatprep.mubr.msk.f32.mxu1 %vm270_vm0, %v15629_v30 }
 0x114   :  { %v15884_v46 = vpop.f32.mrf.mxu1 }
 0x116   :  { %v15886_v48 = vpop.f32.mrf.mxu1  ;;  %13990 = vmatmul.mubr.msk.f32.gmra.mxu1 %vm270_vm0, %v15639_v35 }
 0x117   :  { %13992 = vmatprep.mubr.msk.f32.mxu1 %vm270_vm0, %v15641_v39 }
 0x118   :  { %v15892_v58 = vpop.f32.mrf.mxu1  ;;  %v13696_v9 = vpop.f32.mrf.mxu0 }
 0x119   :  { %v15963_v26 = vadd.f32 %v13696_v9, %v15900_v13 }
 0x11a   :  { %v15894_v60 = vpop.f32.mrf.mxu1  ;;  %13993 = vmatmul.mubr.msk.f32.gmra.mxu1 %vm270_vm0, %v15651_v44  ;;  %v385_v41 = vpop.f32.mrf.mxu0 }
 0x11b   :  { %13995 = vmatprep.mubr.msk.f32.mxu1 %vm270_vm0, %v15653_v49  ;;  %v15928_v3 = vadd.f32 %v15900_v13, %v385_v41  ;;  %v821_v34 = vmul.f32 %v15909_v22, %v15963_v26 }
 0x11c   :  { %v445_v6 = vpop.f32.mrf.mxu1  ;;  %v13699_v11 = vpop.f32.mrf.mxu0 }
 0x11d   :  { %v15903_v15 = vadd.f32 %v15900_v13, %v445_v6  ;;  %v820_v16 = vmul.f32 %v15909_v22, %v15928_v3 }
 0x11e   :  { %v15905_v19 = vpop.f32.mrf.mxu1  ;;  %13996 = vmatmul.mubr.msk.f32.gmra.mxu1 %vm270_vm0, %v15663_v54  ;;  %v395_v18 = vpop.f32.mrf.mxu0 }
 0x11f   :  { %14037 = vmatprep.mubr.msk.f32.mxu1 %vm15414_vm1, %v18525_v0  ;;  %v15915_v29 = vmul.f32 %v15909_v22, %v15903_v15  ;;  %v15981_v40 = vadd.f32 %v15900_v13, %v395_v18 }
 0x120   :  { %v455_v32 = vpop.f32.mrf.mxu1  ;;  %v13702_v23 = vpop.f32.mrf.mxu0 }
 0x121   :  { %v456_v47 = vadd.f32 %v15900_v13, %v455_v32  ;;  %v822_v50 = vmul.f32 %v15909_v22, %v15981_v40  ;;  %v16001_v53 = vadd.f32 %v13702_v23, %v15900_v13  ;;  %v16031_v32 = vadd.f32 %v13699_v11, %v15900_v13 }
 0x122   :  { %v13728_v51 = vpop.f32.mrf.mxu1  ;;  %v15956_v25 = vpop.f32.mrf.mxu0 }
 0x123   :  { %v15925_v2 = vadd.f32 %v13728_v51, %v15917_v38  ;;  %v15931_v4 = vmul.f32 %v15909_v22, %v456_v47  ;;  %v15934_v5 = vmul.f32 %v15920_v56, %v456_v47  ;;  %v15937_v7 = vmul.f32 %v15922_v61, %v456_v47 }
 0x124   :  { %v15939_v8 = vmul.f32 %v12677_v1, %v456_v47  ;;  %v637_v10 = vpop.f32.mrf.mxu1  ;;  %v13705_v31 = vpop.f32.mrf.mxu0  ;;  %v825_v63 = vmul.f32 %v15909_v22, %v16001_v53 }
 0x125   :  { %13999 = vmatpush3.xpose.msk.msra.mxu0 %vm270_vm0, %v15925_v2  ;;  %v15945_v14 = vadd.f32 %v15917_v38, %v637_v10  ;;  %v16047_v11 = vadd.f32 %v13705_v31, %v15900_v13 }
 0x126   :  { %18539 = vst [vmem:[#allocation19_spill] sm:$0xff] %v15939_v8  ;;  %v13731_v12 = vpop.f32.mrf.mxu1  ;;  %14000 = vmatprep.subr.mxu0 %v18525_v0  ;;  %v15977_v36 = vpop.f32.mrf.mxu0 }
 0x127   :  { %v15950_v20 = vadd.f32 %v13731_v12, %v15917_v38 }
 0x128   :  { %v647_v17 = vpop.f32.mrf.mxu1  ;;  %v15983_v42 = vpop.f32.mrf.mxu0 }
 0x129   :  { %14001 = vmatpush3.xpose.msk.msra.mxu0 %vm270_vm0, %v15945_v14  ;;  %v15967_v28 = vadd.f32 %v15917_v38, %v647_v17  ;;  %18540 = vst [vmem:[#allocation20_spill] sm:$0xff] %v15983_v42  ;;  %v823_v17 = vmul.f32 %v15909_v22, %v16031_v32 }
 0x12a   :  { %v13734_v21 = vpop.f32.mrf.mxu1  ;;  %14005 = vmatprep.subr.mxu0 %v18525_v0  ;;  %v15990_v44 = vpop.f32.mrf.mxu0 }
 0x12b   :  { %v15970_v33 = vadd.f32 %v13734_v21, %v15917_v38  ;;  %18541 = vst [vmem:[#allocation21_spill] sm:$0xff] %v15990_v44 }
 0x12c   :  { %v657_v24 = vpop.f32.mrf.mxu1  ;;  %14003 = vmatmul.mubr.msk.f32.vlgmr.msra.gmra.mxu0 %vm270_vm0, %v820_v16  ;;  %v16003_v54 = vpop.f32.mrf.mxu0 }
 0x12d   :  { %14006 = vmatpush3.xpose.msk.msra.mxu0 %vm270_vm0, %v15950_v20  ;;  %14009 = vmatprep.mubr.msk.f32.mxu0 %vm15414_vm1, %v18525_v0  ;;  %v15993_v45 = vadd.f32 %v15917_v38, %v657_v24  ;;  %v16071_v24 = vadd.f32 %v15900_v13, %v15956_v25 }
 0x12e   :  { %v13737_v27 = vpop.f32.mrf.mxu1  ;;  %14007 = vmatprep.subr.mxu0 %v18525_v0  ;;  %v16017_v62 = vpop.f32.mrf.mxu0 }
 0x12f   :  { %v16006_v55 = vadd.f32 %v13737_v27, %v15917_v38  ;;  %18542 = vst [vmem:[#allocation22_spill] sm:$0xff] %v16017_v62  ;;  %v827_v27 = vmul.f32 %v15909_v22, %v16047_v11 }
 0x130   :  { %v667_v30 = vpop.f32.mrf.mxu1  ;;  %v16024_v9 = vpop.f32.mrf.mxu0 }
 0x131   :  { %14008 = vmatpush3.xpose.msk.msra.mxu0 %vm270_vm0, %v15967_v28  ;;  %18543 = vst [vmem:[#allocation23_spill] sm:$0xff] %v16024_v9  ;;  %v16038_v51 = vadd.f32 %v15917_v38, %v667_v30 }
 0x132   :  { %v13740_v35 = vpop.f32.mrf.mxu1  ;;  %14012 = vmatprep.subr.mxu0 %v18525_v0  ;;  %v16035_v47 = vpop.f32.mrf.mxu0 }
 0x133   :  { %18544 = vst [vmem:[#allocation24_spill] sm:$0xff] %v16035_v47  ;;  %v16065_v23 = vadd.f32 %v13740_v35, %v15917_v38 }
 0x134   :  { %v677_v39 = vpop.f32.mrf.mxu1  ;;  %14010 = vmatmul.mubr.msk.f32.vlgmr.msra.gmra.mxu0 %vm270_vm0, %v821_v34  ;;  %v16049_v12 = vpop.f32.mrf.mxu0 }
 0x135   :  { %14013 = vmatpush3.xpose.msk.msra.mxu0 %vm270_vm0, %v15970_v33  ;;  %14016 = vmatprep.mubr.msk.f32.mxu0 %vm15414_vm1, %v18525_v0  ;;  %18545 = vst [vmem:[#allocation25_spill] sm:$0xff] %v16049_v12  ;;  %v16089_v35 = vadd.f32 %v15917_v38, %v677_v39  ;;  %v16110_v39 = vadd.f32 %v15878_v37, %v15900_v13 }
 0x136   :  { %v13743_v43 = vpop.f32.mrf.mxu1  ;;  %14014 = vmatprep.subr.mxu0 %v18525_v0  ;;  %v16062_v21 = vpop.f32.mrf.mxu0  ;;  %v16126_v37 = vadd.f32 %v15900_v13, %v15977_v36 }
 0x137   :  { %v15996_v49 = vadd.f32 %v13743_v43, %v15917_v38  ;;  %18546 = vst [vmem:[#allocation26_spill] sm:$0xff] %v16062_v21 }
 0x138   :  { %v687_v52 = vpop.f32.mrf.mxu1  ;;  %v16078_v31 = vpop.f32.mrf.mxu0 }
 0x139   :  { %v16009_v57 = vadd.f32 %v15917_v38, %v687_v52  ;;  %14015 = vmatpush3.xpose.msk.msra.mxu0 %vm270_vm0, %v15993_v45  ;;  %14034 = vmatpush3.xpose.msk.msra.mxu1 %vm270_vm0, %v15996_v49  ;;  %18547 = vst [vmem:[#allocation27_spill] sm:$0xff] %v16078_v31 }
 0x13a   :  { %v13746_v59 = vpop.f32.mrf.mxu1  ;;  %14019 = vmatprep.subr.mxu0 %v18525_v0  ;;  %14035 = vmatprep.subr.mxu1 %v18525_v0  ;;  %v16086_v25 = vpop.f32.mrf.mxu0 }
 0x13b   :  { %18548 = vst [vmem:[#allocation28_spill] sm:$0xff] %v16086_v25 }
 0x13c   :  { %v16021_v6 = vpop.f32.mrf.mxu1  ;;  %14017 = vmatmul.mubr.msk.f32.vlgmr.msra.gmra.mxu0 %vm270_vm0, %v822_v50  ;;  %v824_v50 = vmul.f32 %v15909_v22, %v16071_v24 }
 0x13d   :  { %14020 = vmatpush3.xpose.msk.msra.mxu0 %vm270_vm0, %v16006_v55  ;;  %14036 = vmatpush3.xpose.msk.msra.mxu1 %vm270_vm0, %v16009_v57  ;;  %v16142_v36 = vadd.f32 %v15917_v38, %v16021_v6 }
 0x13e   :  { %v13749_v41 = vpop.f32.mrf.mxu1  ;;  %14021 = vmatprep.subr.mxu0 %v18525_v0  ;;  %14047 = vmatprep.subr.mxu1 %v18525_v0 }
 0x13f   :  { %v16041_v1 = vadd.f32 %v13749_v41, %v15917_v38  ;;  %14023 = vmatprep.mubr.msk.f32.mxu0 %vm15414_vm1, %v18525_v0 }
 0x140   :  { %v707_v10 = vpop.f32.mrf.mxu1  ;;  %14038 = vmatmul.mubr.msk.f32.vlgmr.msra.gmra.mxu1 %vm270_vm0, %v825_v63  ;;  %v16099_v63 = vpop.f32.mrf.mxu0 }
 0x141   :  { %v16052_v16 = vadd.f32 %v15917_v38, %v707_v10  ;;  %14022 = vmatpush3.xpose.msk.msra.mxu0 %vm270_vm0, %v16038_v51  ;;  %14048 = vmatpush3.xpose.msk.msra.mxu1 %vm270_vm0, %v16041_v1  ;;  %18549 = vst [vmem:[#allocation29_spill] sm:$0xff] %v16099_v63  ;;  %v826_v63 = vmul.f32 %v15909_v22, %v16126_v37 }
 0x142   :  { %v13752_v18 = vpop.f32.mrf.mxu1  ;;  %14026 = vmatprep.subr.mxu0 %v18525_v0  ;;  %14049 = vmatprep.subr.mxu1 %v18525_v0 }
 0x143   :  { %14051 = vmatprep.mubr.msk.f32.mxu1 %vm15414_vm1, %v18525_v0 }
 0x144   :  { %v16075_v30 = vpop.f32.mrf.mxu1  ;;  %14024 = vmatmul.mubr.msk.f32.vlgmr.msra.gmra.mxu0 %vm270_vm0, %v823_v17  ;;  %v16114_v17 = vpop.f32.mrf.mxu0 }
 0x145   :  { %14027 = vmatpush3.xpose.msk.msra.mxu0 %vm270_vm0, %v16065_v23  ;;  %14050 = vmatpush3.xpose.msk.msra.mxu1 %vm270_vm0, %v16052_v16  ;;  %18550 = vst [vmem:[#allocation30_spill] sm:$0xff] %v16114_v17  ;;  %v18552_v17 = vmov 0.0  }
 0x146   :  { %v13755_v34 = vpop.f32.mrf.mxu1  ;;  %14028 = vmatprep.subr.mxu0 %v18525_v0  ;;  %14061 = vmatprep.subr.mxu1 %v18525_v0 }
 0x147   :  { %v16092_v43 = vadd.f32 %v13755_v34, %v15917_v38  ;;  %14030 = vmatprep.mubr.msk.f32.mxu0 %vm15414_vm1, %v18525_v0 }
 0x148   :  { %v727_v52 = vpop.f32.mrf.mxu1  ;;  %14052 = vmatmul.mubr.msk.f32.vlgmr.msra.gmra.mxu1 %vm270_vm0, %v827_v27  ;;  %v16117_v27 = vadd.f32 %v13746_v59, %v15917_v38  ;;  %v829_v59 = vmul.f32 %v15909_v22, %v16110_v39 }
 0x149   :  { %v16102_v41 = vadd.f32 %v15917_v38, %v727_v52  ;;  %14029 = vmatpush3.xpose.msk.msra.mxu0 %vm270_vm0, %v16089_v35  ;;  %14062 = vmatpush3.xpose.msk.msra.mxu1 %vm270_vm0, %v16092_v43  ;;  %v16128_v52 = vpop.f32.mrf.mxu0 }
 0x14a   :  { %v13758_v10 = vpop.f32.mrf.mxu1  ;;  %14040 = vmatprep.subr.mxu0 %v18525_v0  ;;  %14063 = vmatprep.subr.mxu1 %v18525_v0  ;;  %18551 = vst [vmem:[#allocation31_spill] sm:$0xff] %v16128_v52 }
 0x14b   :  { %14065 = vmatprep.mubr.msk.f32.mxu1 %vm15414_vm1, %v18525_v0 }
 0x14c   :  { %v16121_v34 = vpop.f32.mrf.mxu1  ;;  %14031 = vmatmul.mubr.msk.f32.vlgmr.msra.gmra.mxu0 %vm270_vm0, %v824_v50  ;;  %v16138_v50 = vpop.f32.mrf.mxu0 }
 0x14d   :  { %14041 = vmatpush3.xpose.msk.msra.mxu0 %vm270_vm0, %v16117_v27  ;;  %14064 = vmatpush3.xpose.msk.msra.mxu1 %vm270_vm0, %v16102_v41  ;;  %18553 = vst [vmem:[#allocation32_spill] sm:$0xff] %v16138_v50 }
 0x14e   :  { %v13761_v0 = vpop.f32.mrf.mxu1  ;;  %14042 = vmatprep.subr.mxu0 %v18552_v17  ;;  %14075 = vmatprep.subr.mxu1 %v18552_v17  ;;  %v16152_v31 = vpop.f32.mrf.mxu0 }
 0x14f   :  { %v16145_v52 = vadd.f32 %v13761_v0, %v15917_v38  ;;  %14044 = vmatprep.mubr.msk.f32.mxu0 %vm15414_vm1, %v18552_v17  ;;  %18554 = vst [vmem:[#allocation33_spill] sm:$0xff] %v16152_v31  ;;  %v16163_v0 = vadd.f32 %v15886_v48, %v15900_v13  ;;  %v16185_v48 = vadd.f32 %v15900_v13, %v15884_v46 }
 0x150   :  { %v747_v25 = vpop.f32.mrf.mxu1  ;;  %14066 = vmatmul.mubr.msk.f32.vlgmr.msra.gmra.mxu1 %vm270_vm0, %v829_v59  ;;  %v16167_v59 = vpop.f32.mrf.mxu0 }
 0x151   :  { %v16155_v50 = vadd.f32 %v15917_v38, %v747_v25  ;;  %14043 = vmatpush3.xpose.msk.msra.mxu0 %vm270_vm0, %v16142_v36  ;;  %14076 = vmatpush3.xpose.msk.msra.mxu1 %vm270_vm0, %v16145_v52  ;;  %18555 = vst [vmem:[#allocation34_spill] sm:$0xff] %v16167_v59  ;;  %v16170_v25 = vadd.f32 %v13752_v18, %v15917_v38 }
 0x152   :  { %v13764_v6 = vpop.f32.mrf.mxu1  ;;  %14054 = vmatprep.subr.mxu0 %v18552_v17  ;;  %14077 = vmatprep.subr.mxu1 %v18552_v17  ;;  %v16177_v21 = vpop.f32.mrf.mxu0  ;;  %v831_v18 = vmul.f32 %v15909_v22, %v16163_v0 }
 0x153   :  { %14079 = vmatprep.mubr.msk.f32.mxu1 %vm15414_vm1, %v18552_v17  ;;  %18556 = vst [vmem:[#allocation35_spill] sm:$0xff] %v16177_v21  ;;  %v16195_v21 = vadd.f32 %v15917_v38, %v16075_v30  ;;  %v828_v30 = vmul.f32 %v15909_v22, %v16185_v48  ;;  %v16276_v62 = vadd.f32 %v13764_v6, %v15917_v38 }
 0x154   :  { %v16174_v31 = vpop.f32.mrf.mxu1  ;;  %14045 = vmatmul.mubr.msk.f32.vlgmr.msra.gmra.mxu0 %vm270_vm0, %v826_v63  ;;  %v16191_v63 = vpop.f32.mrf.mxu0 }
 0x155   :  { %14055 = vmatpush3.xpose.msk.msra.mxu0 %vm270_vm0, %v16170_v25  ;;  %14078 = vmatpush3.xpose.msk.msra.mxu1 %vm270_vm0, %v16155_v50  ;;  %18557 = vst [vmem:[#allocation36_spill] sm:$0xff] %v16191_v63 }
 0x156   :  { %v13767_v59 = vpop.f32.mrf.mxu1  ;;  %14056 = vmatprep.subr.mxu0 %v18552_v17  ;;  %14089 = vmatprep.subr.mxu1 %v18552_v17  ;;  %v16203_v47 = vpop.f32.mrf.mxu0 }
 0x157   :  { %v16198_v12 = vadd.f32 %v13767_v59, %v15917_v38  ;;  %14058 = vmatprep.mubr.msk.f32.mxu0 %vm15414_vm1, %v18552_v17  ;;  %18558 = vst [vmem:[#allocation37_spill] sm:$0xff] %v16203_v47  ;;  %v16216_v59 = vadd.f32 %v15894_v60, %v15900_v13  ;;  %v16236_v60 = vadd.f32 %v15900_v13, %v15892_v58 }
 0x158   :  { %v767_v46 = vpop.f32.mrf.mxu1  ;;  %14080 = vmatmul.mubr.msk.f32.vlgmr.msra.gmra.mxu1 %vm270_vm0, %v831_v18  ;;  %v16220_v18 = vpop.f32.mrf.mxu0 }
 0x159   :  { %v16206_v9 = vadd.f32 %v15917_v38, %v767_v46  ;;  %14057 = vmatpush3.xpose.msk.msra.mxu0 %vm270_vm0, %v16195_v21  ;;  %14090 = vmatpush3.xpose.msk.msra.mxu1 %vm270_vm0, %v16198_v12  ;;  %18559 = vst [vmem:[#allocation38_spill] sm:$0xff] %v16220_v18  ;;  %v16223_v46 = vadd.f32 %v13758_v10, %v15917_v38 }
 0x15a   :  { %v13770_v63 = vpop.f32.mrf.mxu1  ;;  %14068 = vmatprep.subr.mxu0 %v18552_v17  ;;  %14091 = vmatprep.subr.mxu1 %v18552_v17  ;;  %v16228_v44 = vpop.f32.mrf.mxu0  ;;  %v833_v10 = vmul.f32 %v15909_v22, %v16216_v59 }
 0x15b   :  { %14093 = vmatprep.mubr.msk.f32.mxu1 %vm15414_vm1, %v18552_v17  ;;  %18560 = vst [vmem:[#allocation39_spill] sm:$0xff] %v16228_v44  ;;  %v16246_v44 = vadd.f32 %v15917_v38, %v16121_v34 }
 0x15c   :  { %v777_v47 = vpop.f32.mrf.mxu1  ;;  %14059 = vmatmul.mubr.msk.f32.vlgmr.msra.gmra.mxu0 %vm270_vm0, %v828_v30  ;;  %v16242_v30 = vpop.f32.mrf.mxu0 }
 0x15d   :  { %14069 = vmatpush3.xpose.msk.msra.mxu0 %vm270_vm0, %v16223_v46  ;;  %14092 = vmatpush3.xpose.msk.msra.mxu1 %vm270_vm0, %v16206_v9  ;;  %18561 = vst [vmem:[#allocation40_spill] sm:$0xff] %v16242_v30  ;;  %v16267_v30 = vadd.f32 %v15905_v19, %v15900_v13 }
 0x15e   :  { %v13773_v18 = vpop.f32.mrf.mxu1  ;;  %14070 = vmatprep.subr.mxu0 %v18552_v17  ;;  %14103 = vmatprep.subr.mxu1 %v18552_v17  ;;  %v16254_v8 = vpop.f32.mrf.mxu0 }
 0x15f   :  { %v16249_v42 = vadd.f32 %v13773_v18, %v15917_v38  ;;  %14072 = vmatprep.mubr.msk.f32.mxu0 %vm15414_vm1, %v18552_v17  ;;  %18562 = vst [vmem:[#allocation41_spill] sm:$0xff] %v16254_v8  ;;  %v830_v18 = vmul.f32 %v15909_v22, %v16236_v60  ;;  %v835_v19 = vmul.f32 %v15909_v22, %v16267_v30 }
 0x160   :  { %14094 = vmatmul.mubr.msk.f32.vlgmr.msra.gmra.mxu1 %vm270_vm0, %v833_v10  ;;  %v787_v58 = vpop.f32.mrf.mxu1  ;;  %v16273_v8 = vpop.f32.mrf.mxu0 }
 0x161   :  { %14071 = vmatpush3.xpose.msk.msra.mxu0 %vm270_vm0, %v16246_v44  ;;  %14104 = vmatpush3.xpose.msk.msra.mxu1 %vm270_vm0, %v16249_v42  ;;  %v16261_v34 = vadd.f32 %v15917_v38, %v787_v58 }
 0x162   :  { %14082 = vmatprep.subr.mxu0 %v18552_v17  ;;  %14105 = vmatprep.subr.mxu1 %v18552_v17  ;;  %v16271_v10 = vpop.f32.mrf.mxu1  ;;  %v16283_v13 = vpop.f32.mrf.mxu0 }
 0x163   :  { %18563 = vst [vmem:[#allocation42_spill] sm:$0xff] %v16271_v10  ;;  %14107 = vmatprep.mubr.msk.f32.mxu1 %vm15414_vm1, %v18552_v17  ;;  %18565 = vst [vmem:[#allocation44_spill] sm:$0xff] %v16283_v13 }
 0x164   :  { %14073 = vmatmul.mubr.msk.f32.vlgmr.msra.gmra.mxu0 %vm270_vm0, %v830_v18  ;;  %v16281_v58 = vpop.f32.mrf.mxu1  ;;  %v16295_v18 = vpop.f32.mrf.mxu0 }
 0x165   :  { %18564 = vst [vmem:[#allocation43_spill] sm:$0xff] %v16281_v58  ;;  %14083 = vmatpush3.xpose.msk.msra.mxu0 %vm270_vm0, %v16276_v62  ;;  %14106 = vmatpush3.xpose.msk.msra.mxu1 %vm270_vm0, %v16261_v34  ;;  %18567 = vst [vmem:[#allocation46_spill] sm:$0xff] %v16295_v18  ;;  %v16299_v58 = vadd.f32 %v15917_v38, %v16174_v31 }
 0x166   :  { %14084 = vmatprep.subr.mxu0 %v18552_v17  ;;  %14117 = vmatprep.subr.mxu1 %v18552_v17  ;;  %v16293_v6 = vpop.f32.mrf.mxu1  ;;  %v16306_v22 = vpop.f32.mrf.mxu0 }
 0x167   :  { %18566 = vst [vmem:[#allocation45_spill] sm:$0xff] %v16293_v6  ;;  %14086 = vmatprep.mubr.msk.f32.mxu0 %vm15414_vm1, %v18552_v17 }
 0x168   :  { %14108 = vmatmul.mubr.msk.f32.vlgmr.msra.gmra.mxu1 %vm270_vm0, %v835_v19  ;;  %v16304_v10 = vpop.f32.mrf.mxu1  ;;  %v16316_v6 = vpop.f32.mrf.mxu0  ;;  %v16319_v19 = vadd.f32 %v13770_v63, %v15917_v38  ;;  %v837_v63 = vmul.f32 %v15920_v56, %v15963_v26 }
 0x169   :  { %18568 = vst [vmem:[#allocation47_spill] sm:$0xff] %v16304_v10  ;;  %14085 = vmatpush3.xpose.msk.msra.mxu0 %vm270_vm0, %v16299_v58  ;;  %14118 = vmatpush3.xpose.msk.msra.mxu1 %vm270_vm0, %v15950_v20  ;;  %18570 = vst [vmem:[#allocation49_spill] sm:$0xff] %v16316_v6 }
 0x16a   :  { %14096 = vmatprep.subr.mxu0 %v18552_v17  ;;  %14119 = vmatprep.subr.mxu1 %v18552_v17  ;;  %v16314_v31 = vpop.f32.mrf.mxu1  ;;  %v16327_v18 = vpop.f32.mrf.mxu0 }
 0x16b   :  { %18569 = vst [vmem:[#allocation48_spill] sm:$0xff] %v16314_v31  ;;  %14121 = vmatprep.mubr.msk.f32.mxu1 %vm15414_vm1, %v18552_v17  ;;  %18572 = vst [vmem:[#allocation51_spill] sm:$0xff] %v16327_v18 }
 0x16c   :  { %14087 = vmatmul.mubr.msk.f32.vlgmr.msra.gmra.mxu0 %vm270_vm0, %v15915_v29  ;;  %v16325_v10 = vpop.f32.mrf.mxu1  ;;  %v16339_v29 = vpop.f32.mrf.mxu0 }
 0x16d   :  { %18571 = vst [vmem:[#allocation50_spill] sm:$0xff] %v16325_v10  ;;  %14097 = vmatpush3.xpose.msk.msra.mxu0 %vm270_vm0, %v16319_v19  ;;  %14120 = vmatpush3.xpose.msk.msra.mxu1 %vm270_vm0, %v15967_v28  ;;  %18574 = vst [vmem:[#allocation53_spill] sm:$0xff] %v16339_v29  ;;  %v16342_v10 = vadd.f32 %v15917_v38, %v777_v47 }
 0x16e   :  { %14098 = vmatprep.subr.mxu0 %v18552_v17  ;;  %14131 = vmatprep.subr.mxu1 %v18552_v17  ;;  %v16337_v31 = vpop.f32.mrf.mxu1  ;;  %v16349_v13 = vpop.f32.mrf.mxu0 }
 0x16f   :  { %18573 = vst [vmem:[#allocation52_spill] sm:$0xff] %v16337_v31  ;;  %14100 = vmatprep.mubr.msk.f32.mxu0 %vm15414_vm1, %v18552_v17  ;;  %18576 = vst [vmem:[#allocation55_spill] sm:$0xff] %v16349_v13 }
 0x170   :  { %14122 = vmatmul.mubr.msk.f32.vlgmr.msra.gmra.mxu1 %vm270_vm0, %v837_v63  ;;  %v16347_v18 = vpop.f32.mrf.mxu1  ;;  %v16359_v47 = vpop.f32.mrf.mxu0 }
 0x171   :  { %18575 = vst [vmem:[#allocation54_spill] sm:$0xff] %v16347_v18  ;;  %14099 = vmatpush3.xpose.msk.msra.mxu0 %vm270_vm0, %v16342_v10  ;;  %14132 = vmatpush3.xpose.msk.msra.mxu1 %vm270_vm0, %v16006_v55  ;;  %18578 = vst [vmem:[#allocation57_spill] sm:$0xff] %v16359_v47 }
 0x172   :  { %14110 = vmatprep.subr.mxu0 %v18552_v17  ;;  %14133 = vmatprep.subr.mxu1 %v18552_v17  ;;  %v16357_v38 = vpop.f32.mrf.mxu1  ;;  %v16367_v18 = vpop.f32.mrf.mxu0 }
 0x173   :  { %18577 = vst [vmem:[#allocation56_spill] sm:$0xff] %v16357_v38  ;;  %14135 = vmatprep.mubr.msk.f32.mxu1 %vm15414_vm1, %v18552_v17  ;;  %18580 = vst [vmem:[#allocation59_spill] sm:$0xff] %v16367_v18  ;;  %v839_v38 = vmul.f32 %v15920_v56, %v16031_v32 }
 0x174   :  { %14101 = vmatmul.mubr.msk.f32.vlgmr.msra.gmra.mxu0 %vm270_vm0, %v15931_v4  ;;  %v16365_v63 = vpop.f32.mrf.mxu1  ;;  %v16379_v4 = vpop.f32.mrf.mxu0 }
 0x175   :  { %18579 = vst [vmem:[#allocation58_spill] sm:$0xff] %v16365_v63  ;;  %14111 = vmatpush3.xpose.msk.msra.mxu0 %vm270_vm0, %v15925_v2  ;;  %14134 = vmatpush3.xpose.msk.msra.mxu1 %vm270_vm0, %v16038_v51  ;;  %18582 = vst [vmem:[#allocation61_spill] sm:$0xff] %v16379_v4 }
 0x176   :  { %14112 = vmatprep.subr.mxu0 %v18552_v17  ;;  %14145 = vmatprep.subr.mxu1 %v18552_v17  ;;  %v16377_v31 = vpop.f32.mrf.mxu1  ;;  %v16386_v63 = vpop.f32.mrf.mxu0 }
 0x177   :  { %18581 = vst [vmem:[#allocation60_spill] sm:$0xff] %v16377_v31  ;;  %14114 = vmatprep.mubr.msk.f32.mxu0 %vm15414_vm1, %v18552_v17  ;;  %18584 = vst [vmem:[#allocation63_spill] sm:$0xff] %v16386_v63  ;;  %v836_v31 = vmul.f32 %v15920_v56, %v15928_v3 }
 0x178   :  { %14136 = vmatmul.mubr.msk.f32.vlgmr.msra.gmra.mxu1 %vm270_vm0, %v839_v38  ;;  %v16384_v18 = vpop.f32.mrf.mxu1  ;;  %v16398_v38 = vpop.f32.mrf.mxu0 }
 0x179   :  { %18583 = vst [vmem:[#allocation62_spill] sm:$0xff] %v16384_v18  ;;  %14113 = vmatpush3.xpose.msk.msra.mxu0 %vm270_vm0, %v15945_v14  ;;  %14146 = vmatpush3.xpose.msk.msra.mxu1 %vm270_vm0, %v15996_v49  ;;  %18586 = vst [vmem:[#allocation65_spill] sm:$0xff] %v16398_v38 }
 0x17a   :  { %14124 = vmatprep.subr.mxu0 %v18552_v17  ;;  %14147 = vmatprep.subr.mxu1 %v18552_v17  ;;  %v16396_v4 = vpop.f32.mrf.mxu1  ;;  %v16405_v18 = vpop.f32.mrf.mxu0 }
 0x17b   :  { %18585 = vst [vmem:[#allocation64_spill] sm:$0xff] %v16396_v4  ;;  %14149 = vmatprep.mubr.msk.f32.mxu1 %vm15414_vm1, %v18552_v17  ;;  %18588 = vst [vmem:[#allocation67_spill] sm:$0xff] %v16405_v18  ;;  %v841_v4 = vmul.f32 %v15920_v56, %v16001_v53 }
 0x17c   :  { %14115 = vmatmul.mubr.msk.f32.vlgmr.msra.gmra.mxu0 %vm270_vm0, %v836_v31  ;;  %v16403_v63 = vpop.f32.mrf.mxu1  ;;  %v16422_v18 = vpop.f32.mrf.mxu0 }
 0x17d   :  { %18587 = vst [vmem:[#allocation66_spill] sm:$0xff] %v16403_v63  ;;  %14125 = vmatpush3.xpose.msk.msra.mxu0 %vm270_vm0, %v15970_v33  ;;  %14148 = vmatpush3.xpose.msk.msra.mxu1 %vm270_vm0, %v16009_v57  ;;  %18591 = vst [vmem:[#allocation70_spill] sm:$0xff] %v16422_v18  ;;  %v838_v63 = vmul.f32 %v15920_v56, %v15981_v40 }
 0x17e   :  { %14126 = vmatprep.subr.mxu0 %v18552_v17  ;;  %14159 = vmatprep.subr.mxu1 %v18552_v17  ;;  %v16415_v38 = vpop.f32.mrf.mxu1  ;;  %v16439_v18 = vpop.f32.mrf.mxu0 }
 0x17f   :  { %18589 = vst [vmem:[#allocation68_spill] sm:$0xff] %v16415_v38  ;;  %14128 = vmatprep.mubr.msk.f32.mxu0 %vm15414_vm1, %v18552_v17  ;;  %18594 = vst [vmem:[#allocation73_spill] sm:$0xff] %v16439_v18 }
 0x180   :  { %14150 = vmatmul.mubr.msk.f32.vlgmr.msra.gmra.mxu1 %vm270_vm0, %v841_v4  ;;  %v16420_v31 = vpop.f32.mrf.mxu1  ;;  %v16456_v18 = vpop.f32.mrf.mxu0 }
 0x181   :  { %18590 = vst [vmem:[#allocation69_spill] sm:$0xff] %v16420_v31  ;;  %14127 = vmatpush3.xpose.msk.msra.mxu0 %vm270_vm0, %v15993_v45  ;;  %14160 = vmatpush3.xpose.msk.msra.mxu1 %vm270_vm0, %v16041_v1  ;;  %v843_v31 = vmul.f32 %v15920_v56, %v16047_v11  ;;  %18597 = vst [vmem:[#allocation76_spill] sm:$0xff] %v16456_v18 }
 0x182   :  { %14138 = vmatprep.subr.mxu0 %v18552_v17  ;;  %14161 = vmatprep.subr.mxu1 %v18552_v17  ;;  %v16432_v38 = vpop.f32.mrf.mxu1  ;;  %v16473_v18 = vpop.f32.mrf.mxu0 }
 0x183   :  { %18592 = vst [vmem:[#allocation71_spill] sm:$0xff] %v16432_v38  ;;  %14163 = vmatprep.mubr.msk.f32.mxu1 %vm15414_vm1, %v18552_v17  ;;  %18600 = vst [vmem:[#allocation79_spill] sm:$0xff] %v16473_v18 }
 0x184   :  { %14129 = vmatmul.mubr.msk.f32.vlgmr.msra.gmra.mxu0 %vm270_vm0, %v838_v63  ;;  %v16437_v4 = vpop.f32.mrf.mxu1  ;;  %v16490_v18 = vpop.f32.mrf.mxu0 }
 0x185   :  { %18593 = vst [vmem:[#allocation72_spill] sm:$0xff] %v16437_v4  ;;  %14139 = vmatpush3.xpose.msk.msra.mxu0 %vm270_vm0, %v16065_v23  ;;  %14162 = vmatpush3.xpose.msk.msra.mxu1 %vm270_vm0, %v16052_v16  ;;  %v840_v4 = vmul.f32 %v15920_v56, %v16071_v24  ;;  %18603 = vst [vmem:[#allocation82_spill] sm:$0xff] %v16490_v18 }
 0x186   :  { %14140 = vmatprep.subr.mxu0 %v18552_v17  ;;  %14173 = vmatprep.subr.mxu1 %v18552_v17  ;;  %v16449_v38 = vpop.f32.mrf.mxu1  ;;  %v16507_v18 = vpop.f32.mrf.mxu0 }
 0x187   :  { %18595 = vst [vmem:[#allocation74_spill] sm:$0xff] %v16449_v38  ;;  %14142 = vmatprep.mubr.msk.f32.mxu0 %vm15414_vm1, %v18552_v17  ;;  %18606 = vst [vmem:[#allocation85_spill] sm:$0xff] %v16507_v18 }
 0x188   :  { %14164 = vmatmul.mubr.msk.f32.vlgmr.msra.gmra.mxu1 %vm270_vm0, %v843_v31  ;;  %v16454_v63 = vpop.f32.mrf.mxu1  ;;  %v16524_v18 = vpop.f32.mrf.mxu0 }
 0x189   :  { %18596 = vst [vmem:[#allocation75_spill] sm:$0xff] %v16454_v63  ;;  %14141 = vmatpush3.xpose.msk.msra.mxu0 %vm270_vm0, %v16089_v35  ;;  %14174 = vmatpush3.xpose.msk.msra.mxu1 %vm270_vm0, %v16092_v43  ;;  %v845_v63 = vmul.f32 %v15920_v56, %v16110_v39  ;;  %18609 = vst [vmem:[#allocation88_spill] sm:$0xff] %v16524_v18 }
 0x18a   :  { %14152 = vmatprep.subr.mxu0 %v18552_v17  ;;  %14175 = vmatprep.subr.mxu1 %v18552_v17  ;;  %v16466_v38 = vpop.f32.mrf.mxu1  ;;  %v16541_v18 = vpop.f32.mrf.mxu0 }
 0x18b   :  { %18598 = vst [vmem:[#allocation77_spill] sm:$0xff] %v16466_v38  ;;  %14177 = vmatprep.mubr.msk.f32.mxu1 %vm15414_vm1, %v18552_v17  ;;  %18612 = vst [vmem:[#allocation91_spill] sm:$0xff] %v16541_v18 }
 0x18c   :  { %14143 = vmatmul.mubr.msk.f32.vlgmr.msra.gmra.mxu0 %vm270_vm0, %v840_v4  ;;  %v16471_v31 = vpop.f32.mrf.mxu1  ;;  %v16558_v18 = vpop.f32.mrf.mxu0 }
 0x18d   :  { %18599 = vst [vmem:[#allocation78_spill] sm:$0xff] %v16471_v31  ;;  %14153 = vmatpush3.xpose.msk.msra.mxu0 %vm270_vm0, %v16117_v27  ;;  %14176 = vmatpush3.xpose.msk.msra.mxu1 %vm270_vm0, %v16102_v41  ;;  %v842_v31 = vmul.f32 %v15920_v56, %v16126_v37  ;;  %18615 = vst [vmem:[#allocation94_spill] sm:$0xff] %v16558_v18 }
 0x18e   :  { %14154 = vmatprep.subr.mxu0 %v18552_v17  ;;  %14187 = vmatprep.subr.mxu1 %v18552_v17  ;;  %v16483_v38 = vpop.f32.mrf.mxu1  ;;  %v16575_v18 = vpop.f32.mrf.mxu0 }
 0x18f   :  { %18601 = vst [vmem:[#allocation80_spill] sm:$0xff] %v16483_v38  ;;  %14156 = vmatprep.mubr.msk.f32.mxu0 %vm15414_vm1, %v18552_v17  ;;  %18618 = vst [vmem:[#allocation97_spill] sm:$0xff] %v16575_v18  ;;  %v848_v18 = vmul.f32 %v15920_v56, %v15903_v15 }
 0x190   :  { %14178 = vmatmul.mubr.msk.f32.vlgmr.msra.gmra.mxu1 %vm270_vm0, %v845_v63  ;;  %v16488_v4 = vpop.f32.mrf.mxu1 }
 0x191   :  { %18602 = vst [vmem:[#allocation81_spill] sm:$0xff] %v16488_v4  ;;  %14155 = vmatpush3.xpose.msk.msra.mxu0 %vm270_vm0, %v16142_v36  ;;  %14188 = vmatpush3.xpose.msk.msra.mxu1 %vm270_vm0, %v16145_v52  ;;  %v847_v4 = vmul.f32 %v15920_v56, %v16163_v0 }
 0x192   :  { %14166 = vmatprep.subr.mxu0 %v18552_v17  ;;  %14189 = vmatprep.subr.mxu1 %v18552_v17  ;;  %v16500_v38 = vpop.f32.mrf.mxu1 }
 0x193   :  { %18604 = vst [vmem:[#allocation83_spill] sm:$0xff] %v16500_v38  ;;  %14191 = vmatprep.mubr.msk.f32.mxu1 %vm15414_vm1, %v18552_v17 }
 0x194   :  { %14157 = vmatmul.mubr.msk.f32.vlgmr.msra.gmra.mxu0 %vm270_vm0, %v842_v31  ;;  %v16505_v63 = vpop.f32.mrf.mxu1 }
 0x195   :  { %18605 = vst [vmem:[#allocation84_spill] sm:$0xff] %v16505_v63  ;;  %14167 = vmatpush3.xpose.msk.msra.mxu0 %vm270_vm0, %v16170_v25  ;;  %14190 = vmatpush3.xpose.msk.msra.mxu1 %vm270_vm0, %v16155_v50  ;;  %v844_v63 = vmul.f32 %v15920_v56, %v16185_v48 }
 0x196   :  { %14168 = vmatprep.subr.mxu0 %v18552_v17  ;;  %14201 = vmatprep.subr.mxu1 %v18552_v17  ;;  %v16517_v38 = vpop.f32.mrf.mxu1 }
 0x197   :  { %18607 = vst [vmem:[#allocation86_spill] sm:$0xff] %v16517_v38  ;;  %14170 = vmatprep.mubr.msk.f32.mxu0 %vm15414_vm1, %v18552_v17 }
 0x198   :  { %14192 = vmatmul.mubr.msk.f32.vlgmr.msra.gmra.mxu1 %vm270_vm0, %v847_v4  ;;  %v16522_v31 = vpop.f32.mrf.mxu1 }
 0x199   :  { %18608 = vst [vmem:[#allocation87_spill] sm:$0xff] %v16522_v31  ;;  %14169 = vmatpush3.xpose.msk.msra.mxu0 %vm270_vm0, %v16195_v21  ;;  %14202 = vmatpush3.xpose.msk.msra.mxu1 %vm270_vm0, %v16198_v12  ;;  %v849_v31 = vmul.f32 %v15920_v56, %v16216_v59 }
 0x19a   :  { %14180 = vmatprep.subr.mxu0 %v18552_v17  ;;  %14203 = vmatprep.subr.mxu1 %v18552_v17  ;;  %v16534_v38 = vpop.f32.mrf.mxu1 }
 0x19b   :  { %18610 = vst [vmem:[#allocation89_spill] sm:$0xff] %v16534_v38  ;;  %14205 = vmatprep.mubr.msk.f32.mxu1 %vm15414_vm1, %v18552_v17 }
 0x19c   :  { %14171 = vmatmul.mubr.msk.f32.vlgmr.msra.gmra.mxu0 %vm270_vm0, %v844_v63  ;;  %v16539_v4 = vpop.f32.mrf.mxu1 }
 0x19d   :  { %18611 = vst [vmem:[#allocation90_spill] sm:$0xff] %v16539_v4  ;;  %14181 = vmatpush3.xpose.msk.msra.mxu0 %vm270_vm0, %v16223_v46  ;;  %14204 = vmatpush3.xpose.msk.msra.mxu1 %vm270_vm0, %v16206_v9  ;;  %v846_v4 = vmul.f32 %v15920_v56, %v16236_v60 }
 0x19e   :  { %14182 = vmatprep.subr.mxu0 %v18552_v17  ;;  %14215 = vmatprep.subr.mxu1 %v18552_v17  ;;  %v16551_v38 = vpop.f32.mrf.mxu1 }
 0x19f   :  { %18613 = vst [vmem:[#allocation92_spill] sm:$0xff] %v16551_v38  ;;  %14184 = vmatprep.mubr.msk.f32.mxu0 %vm15414_vm1, %v18552_v17 }
 0x1a0   :  { %14206 = vmatmul.mubr.msk.f32.vlgmr.msra.gmra.mxu1 %vm270_vm0, %v849_v31  ;;  %v16556_v63 = vpop.f32.mrf.mxu1 }
 0x1a1   :  { %18614 = vst [vmem:[#allocation93_spill] sm:$0xff] %v16556_v63  ;;  %14183 = vmatpush3.xpose.msk.msra.mxu0 %vm270_vm0, %v16246_v44  ;;  %14216 = vmatpush3.xpose.msk.msra.mxu1 %vm270_vm0, %v16249_v42  ;;  %v851_v63 = vmul.f32 %v15920_v56, %v16267_v30  ;;  %v853_v56 = vmul.f32 %v15922_v61, %v15963_v26 }
 0x1a2   :  { %14194 = vmatprep.subr.mxu0 %v18552_v17  ;;  %14217 = vmatprep.subr.mxu1 %v18552_v17  ;;  %v16568_v38 = vpop.f32.mrf.mxu1 }
 0x1a3   :  { %18616 = vst [vmem:[#allocation95_spill] sm:$0xff] %v16568_v38  ;;  %14219 = vmatprep.mubr.msk.f32.mxu1 %vm15414_vm1, %v18552_v17 }
 0x1a4   :  { %14185 = vmatmul.mubr.msk.f32.vlgmr.msra.gmra.mxu0 %vm270_vm0, %v846_v4  ;;  %v16573_v31 = vpop.f32.mrf.mxu1 }
 0x1a5   :  { %18617 = vst [vmem:[#allocation96_spill] sm:$0xff] %v16573_v31  ;;  %14195 = vmatpush3.xpose.msk.msra.mxu0 %vm270_vm0, %v16276_v62  ;;  %14218 = vmatpush3.xpose.msk.msra.mxu1 %vm270_vm0, %v16261_v34  ;;  %v16592_v31 = vpop.f32.mrf.mxu0 }
 0x1a6   :  { %14196 = vmatprep.subr.mxu0 %v18552_v17  ;;  %14229 = vmatprep.subr.mxu1 %v18552_v17  ;;  %v16585_v38 = vpop.f32.mrf.mxu1  ;;  %18621 = vst [vmem:[#allocation100_spill] sm:$0xff] %v16592_v31 }
 0x1a7   :  { %18619 = vst [vmem:[#allocation98_spill] sm:$0xff] %v16585_v38  ;;  %14198 = vmatprep.mubr.msk.f32.mxu0 %vm15414_vm1, %v18552_v17 }
 0x1a8   :  { %14220 = vmatmul.mubr.msk.f32.vlgmr.msra.gmra.mxu1 %vm270_vm0, %v851_v63  ;;  %v16590_v4 = vpop.f32.mrf.mxu1 }
 0x1a9   :  { %18620 = vst [vmem:[#allocation99_spill] sm:$0xff] %v16590_v4  ;;  %14197 = vmatpush3.xpose.msk.msra.mxu0 %vm270_vm0, %v16299_v58  ;;  %14230 = vmatpush3.xpose.msk.msra.mxu1 %vm270_vm0, %v15950_v20  ;;  %v16609_v4 = vpop.f32.mrf.mxu0 }
 0x1aa   :  { %14208 = vmatprep.subr.mxu0 %v18552_v17  ;;  %14231 = vmatprep.subr.mxu1 %v18552_v17  ;;  %v16602_v38 = vpop.f32.mrf.mxu1  ;;  %18624 = vst [vmem:[#allocation103_spill] sm:$0xff] %v16609_v4  ;;  %v852_v4 = vmul.f32 %v15922_v61, %v15928_v3 }
 0x1ab   :  { %18622 = vst [vmem:[#allocation101_spill] sm:$0xff] %v16602_v38  ;;  %14233 = vmatprep.mubr.msk.f32.mxu1 %vm15414_vm1, %v18552_v17 }
 0x1ac   :  { %14199 = vmatmul.mubr.msk.f32.vlgmr.msra.gmra.mxu0 %vm270_vm0, %v848_v18  ;;  %v16607_v63 = vpop.f32.mrf.mxu1  ;;  %v16624_v18 = vpop.f32.mrf.mxu0 }
 0x1ad   :  { %18623 = vst [vmem:[#allocation102_spill] sm:$0xff] %v16607_v63  ;;  %14209 = vmatpush3.xpose.msk.msra.mxu0 %vm270_vm0, %v16319_v19  ;;  %14232 = vmatpush3.xpose.msk.msra.mxu1 %vm270_vm0, %v15967_v28  ;;  %18626 = vst [vmem:[#allocation105_spill] sm:$0xff] %v16624_v18  ;;  %v855_v18 = vmul.f32 %v15922_v61, %v16031_v32 }
 0x1ae   :  { %14210 = vmatprep.subr.mxu0 %v18552_v17  ;;  %14243 = vmatprep.subr.mxu1 %v18552_v17  ;;  %v16619_v38 = vpop.f32.mrf.mxu1 }
 0x1af   :  { %18625 = vst [vmem:[#allocation104_spill] sm:$0xff] %v16619_v38  ;;  %14212 = vmatprep.mubr.msk.f32.mxu0 %vm15414_vm1, %v18552_v17 }
 0x1b0   :  { %14234 = vmatmul.mubr.msk.f32.vlgmr.msra.gmra.mxu1 %vm270_vm0, %v853_v56  ;;  %v16626_v63 = vpop.f32.mrf.mxu1  ;;  %v16640_v56 = vpop.f32.mrf.mxu0 }
 0x1b1   :  { %18627 = vst [vmem:[#allocation106_spill] sm:$0xff] %v16626_v63  ;;  %14211 = vmatpush3.xpose.msk.msra.mxu0 %vm270_vm0, %v16342_v10  ;;  %14244 = vmatpush3.xpose.msk.msra.mxu1 %vm270_vm0, %v16006_v55  ;;  %18629 = vst [vmem:[#allocation108_spill] sm:$0xff] %v16640_v56 }
 0x1b2   :  { %14222 = vmatprep.subr.mxu0 %v18552_v17  ;;  %14245 = vmatprep.subr.mxu1 %v18552_v17  ;;  %v16634_v38 = vpop.f32.mrf.mxu1 }
 0x1b3   :  { %18628 = vst [vmem:[#allocation107_spill] sm:$0xff] %v16634_v38  ;;  %14247 = vmatprep.mubr.msk.f32.mxu1 %vm15414_vm1, %v18552_v17 }
 0x1b4   :  { %14213 = vmatmul.mubr.msk.f32.vlgmr.msra.gmra.mxu0 %vm270_vm0, %v15934_v5  ;;  %v16642_v63 = vpop.f32.mrf.mxu1  ;;  %v16657_v5 = vpop.f32.mrf.mxu0 }
 0x1b5   :  { %18630 = vst [vmem:[#allocation109_spill] sm:$0xff] %v16642_v63  ;;  %14223 = vmatpush3.xpose.msk.msra.mxu0 %vm270_vm0, %v15925_v2  ;;  %14246 = vmatpush3.xpose.msk.msra.mxu1 %vm270_vm0, %v16038_v51  ;;  %18632 = vst [vmem:[#allocation111_spill] sm:$0xff] %v16657_v5  ;;  %v857_v5 = vmul.f32 %v15922_v61, %v16001_v53 }
 0x1b6   :  { %14224 = vmatprep.subr.mxu0 %v18552_v17  ;;  %14257 = vmatprep.subr.mxu1 %v18552_v17  ;;  %v16652_v38 = vpop.f32.mrf.mxu1 }
 0x1b7   :  { %18631 = vst [vmem:[#allocation110_spill] sm:$0xff] %v16652_v38  ;;  %14226 = vmatprep.mubr.msk.f32.mxu0 %vm15414_vm1, %v18552_v17 }
 0x1b8   :  { %14248 = vmatmul.mubr.msk.f32.vlgmr.msra.gmra.mxu1 %vm270_vm0, %v855_v18  ;;  %v16659_v63 = vpop.f32.mrf.mxu1  ;;  %v16674_v18 = vpop.f32.mrf.mxu0 }
 0x1b9   :  { %18633 = vst [vmem:[#allocation112_spill] sm:$0xff] %v16659_v63  ;;  %14225 = vmatpush3.xpose.msk.msra.mxu0 %vm270_vm0, %v15945_v14  ;;  %14258 = vmatpush3.xpose.msk.msra.mxu1 %vm270_vm0, %v15996_v49  ;;  %18635 = vst [vmem:[#allocation114_spill] sm:$0xff] %v16674_v18  ;;  %v854_v18 = vmul.f32 %v15922_v61, %v15981_v40 }
 0x1ba   :  { %14236 = vmatprep.subr.mxu0 %v18552_v17  ;;  %14259 = vmatprep.subr.mxu1 %v18552_v17  ;;  %v16669_v38 = vpop.f32.mrf.mxu1 }
 0x1bb   :  { %18634 = vst [vmem:[#allocation113_spill] sm:$0xff] %v16669_v38  ;;  %14261 = vmatprep.mubr.msk.f32.mxu1 %vm15414_vm1, %v18552_v17 }
 0x1bc   :  { %14227 = vmatmul.mubr.msk.f32.vlgmr.msra.gmra.mxu0 %vm270_vm0, %v852_v4  ;;  %v16676_v63 = vpop.f32.mrf.mxu1  ;;  %v16691_v4 = vpop.f32.mrf.mxu0 }
 0x1bd   :  { %18636 = vst [vmem:[#allocation115_spill] sm:$0xff] %v16676_v63  ;;  %14237 = vmatpush3.xpose.msk.msra.mxu0 %vm270_vm0, %v15970_v33  ;;  %14260 = vmatpush3.xpose.msk.msra.mxu1 %vm270_vm0, %v16009_v57  ;;  %18638 = vst [vmem:[#allocation117_spill] sm:$0xff] %v16691_v4  ;;  %v859_v4 = vmul.f32 %v15922_v61, %v16047_v11 }
 0x1be   :  { %14238 = vmatprep.subr.mxu0 %v18552_v17  ;;  %14271 = vmatprep.subr.mxu1 %v18552_v17  ;;  %v16686_v38 = vpop.f32.mrf.mxu1 }
 0x1bf   :  { %18637 = vst [vmem:[#allocation116_spill] sm:$0xff] %v16686_v38  ;;  %14240 = vmatprep.mubr.msk.f32.mxu0 %vm15414_vm1, %v18552_v17 }
 0x1c0   :  { %14262 = vmatmul.mubr.msk.f32.vlgmr.msra.gmra.mxu1 %vm270_vm0, %v857_v5  ;;  %v16693_v63 = vpop.f32.mrf.mxu1  ;;  %v16708_v5 = vpop.f32.mrf.mxu0 }
 0x1c1   :  { %18639 = vst [vmem:[#allocation118_spill] sm:$0xff] %v16693_v63  ;;  %14239 = vmatpush3.xpose.msk.msra.mxu0 %vm270_vm0, %v15993_v45  ;;  %14272 = vmatpush3.xpose.msk.msra.mxu1 %vm270_vm0, %v16041_v1  ;;  %18641 = vst [vmem:[#allocation120_spill] sm:$0xff] %v16708_v5 }
 0x1c2   :  { %14250 = vmatprep.subr.mxu0 %v18552_v17  ;;  %14273 = vmatprep.subr.mxu1 %v18552_v17  ;;  %v16703_v38 = vpop.f32.mrf.mxu1 }
 0x1c3   :  { %18640 = vst [vmem:[#allocation119_spill] sm:$0xff] %v16703_v38  ;;  %14275 = vmatprep.mubr.msk.f32.mxu1 %vm15414_vm1, %v18552_v17  ;;  %v856_v38 = vmul.f32 %v15922_v61, %v16071_v24 }
 0x1c4   :  { %14241 = vmatmul.mubr.msk.f32.vlgmr.msra.gmra.mxu0 %vm270_vm0, %v854_v18  ;;  %v16710_v63 = vpop.f32.mrf.mxu1  ;;  %v16723_v18 = vpop.f32.mrf.mxu0 }
 0x1c5   :  { %18642 = vst [vmem:[#allocation121_spill] sm:$0xff] %v16710_v63  ;;  %14251 = vmatpush3.xpose.msk.msra.mxu0 %vm270_vm0, %v16065_v23  ;;  %14274 = vmatpush3.xpose.msk.msra.mxu1 %vm270_vm0, %v16052_v16  ;;  %18643 = vst [vmem:[#allocation122_spill] sm:$0xff] %v16723_v18  ;;  %v861_v18 = vmul.f32 %v15922_v61, %v16110_v39 }
 0x1c6   :  { %14252 = vmatprep.subr.mxu0 %v18552_v17  ;;  %14285 = vmatprep.subr.mxu1 %v18552_v17  ;;  %v16725_v63 = vpop.f32.mrf.mxu1 }
 0x1c7   :  { %14254 = vmatprep.mubr.msk.f32.mxu0 %vm15414_vm1, %v18552_v17  ;;  %18644 = vst [vmem:[#allocation123_spill] sm:$0xff] %v16725_v63 }
 0x1c8   :  { %14276 = vmatmul.mubr.msk.f32.vlgmr.msra.gmra.mxu1 %vm270_vm0, %v859_v4  ;;  %v16738_v4 = vpop.f32.mrf.mxu0  ;;  %v16740_v63 = vpop.f32.mrf.mxu1 }
 0x1c9   :  { %14253 = vmatpush3.xpose.msk.msra.mxu0 %vm270_vm0, %v16089_v35  ;;  %14286 = vmatpush3.xpose.msk.msra.mxu1 %vm270_vm0, %v16092_v43  ;;  %18645 = vst [vmem:[#allocation124_spill] sm:$0xff] %v16738_v4  ;;  %18646 = vst [vmem:[#allocation125_spill] sm:$0xff] %v16740_v63  ;;  %v858_v4 = vmul.f32 %v15922_v61, %v16126_v37 }
 0x1ca   :  { %14264 = vmatprep.subr.mxu0 %v18552_v17  ;;  %14287 = vmatprep.subr.mxu1 %v18552_v17  ;;  %v16755_v63 = vpop.f32.mrf.mxu1 }
 0x1cb   :  { %14289 = vmatprep.mubr.msk.f32.mxu1 %vm15414_vm1, %v18552_v17  ;;  %18648 = vst [vmem:[#allocation127_spill] sm:$0xff] %v16755_v63 }
 0x1cc   :  { %14255 = vmatmul.mubr.msk.f32.vlgmr.msra.gmra.mxu0 %vm270_vm0, %v856_v38  ;;  %v16753_v38 = vpop.f32.mrf.mxu0  ;;  %v16770_v63 = vpop.f32.mrf.mxu1 }
 0x1cd   :  { %14265 = vmatpush3.xpose.msk.msra.mxu0 %vm270_vm0, %v16117_v27  ;;  %14288 = vmatpush3.xpose.msk.msra.mxu1 %vm270_vm0, %v16102_v41  ;;  %18647 = vst [vmem:[#allocation126_spill] sm:$0xff] %v16753_v38  ;;  %18650 = vst [vmem:[#allocation129_spill] sm:$0xff] %v16770_v63  ;;  %v863_v38 = vmul.f32 %v15922_v61, %v16163_v0 }
 0x1ce   :  { %14266 = vmatprep.subr.mxu0 %v18552_v17  ;;  %14299 = vmatprep.subr.mxu1 %v18552_v17  ;;  %v16785_v63 = vpop.f32.mrf.mxu1 }
 0x1cf   :  { %14268 = vmatprep.mubr.msk.f32.mxu0 %vm15414_vm1, %v18552_v17  ;;  %18652 = vst [vmem:[#allocation131_spill] sm:$0xff] %v16785_v63 }
 0x1d0   :  { %14290 = vmatmul.mubr.msk.f32.vlgmr.msra.gmra.mxu1 %vm270_vm0, %v861_v18  ;;  %v16768_v18 = vpop.f32.mrf.mxu0  ;;  %v16800_v63 = vpop.f32.mrf.mxu1 }
 0x1d1   :  { %14267 = vmatpush3.xpose.msk.msra.mxu0 %vm270_vm0, %v16142_v36  ;;  %14300 = vmatpush3.xpose.msk.msra.mxu1 %vm270_vm0, %v16145_v52  ;;  %18649 = vst [vmem:[#allocation128_spill] sm:$0xff] %v16768_v18  ;;  %v860_v18 = vmul.f32 %v15922_v61, %v16185_v48  ;;  %18654 = vst [vmem:[#allocation133_spill] sm:$0xff] %v16800_v63 }
 0x1d2   :  { %14278 = vmatprep.subr.mxu0 %v18552_v17  ;;  %14301 = vmatprep.subr.mxu1 %v18552_v17  ;;  %v16815_v63 = vpop.f32.mrf.mxu1 }
 0x1d3   :  { %14303 = vmatprep.mubr.msk.f32.mxu1 %vm15414_vm1, %v18552_v17  ;;  %18656 = vst [vmem:[#allocation135_spill] sm:$0xff] %v16815_v63 }
 0x1d4   :  { %14269 = vmatmul.mubr.msk.f32.vlgmr.msra.gmra.mxu0 %vm270_vm0, %v858_v4  ;;  %v16783_v4 = vpop.f32.mrf.mxu0  ;;  %v16829_v63 = vpop.f32.mrf.mxu1 }
 0x1d5   :  { %14279 = vmatpush3.xpose.msk.msra.mxu0 %vm270_vm0, %v16170_v25  ;;  %14302 = vmatpush3.xpose.msk.msra.mxu1 %vm270_vm0, %v16155_v50  ;;  %18651 = vst [vmem:[#allocation130_spill] sm:$0xff] %v16783_v4  ;;  %v865_v4 = vmul.f32 %v15922_v61, %v16216_v59  ;;  %v15235_v61 = vld [vmem:[#allocation11 + $0x2] ss:$0 sm:$0xff]  ;;  %18658 = vst [vmem:[#allocation137_spill] sm:$0xff] %v16829_v63 }
 0x1d6   :  { %14280 = vmatprep.subr.mxu0 %v18552_v17  ;;  %14313 = vmatprep.subr.mxu1 %v18552_v17  ;;  %v16843_v63 = vpop.f32.mrf.mxu1 }
 0x1d7   :  { %14282 = vmatprep.mubr.msk.f32.mxu0 %vm15414_vm1, %v18552_v17  ;;  %18660 = vst [vmem:[#allocation139_spill] sm:$0xff] %v16843_v63 }
 0x1d8   :  { %14304 = vmatmul.mubr.msk.f32.vlgmr.msra.gmra.mxu1 %vm270_vm0, %v863_v38  ;;  %v16798_v38 = vpop.f32.mrf.mxu0  ;;  %v16857_v63 = vpop.f32.mrf.mxu1 }
 0x1d9   :  { %14281 = vmatpush3.xpose.msk.msra.mxu0 %vm270_vm0, %v16195_v21  ;;  %14314 = vmatpush3.xpose.msk.msra.mxu1 %vm270_vm0, %v16198_v12  ;;  %18653 = vst [vmem:[#allocation132_spill] sm:$0xff] %v16798_v38  ;;  %v862_v38 = vmul.f32 %v15235_v61, %v16236_v60  ;;  %18661 = vst [vmem:[#allocation140_spill] sm:$0xff] %v16857_v63 }
 0x1da   :  { %14292 = vmatprep.subr.mxu0 %v18552_v17  ;;  %14315 = vmatprep.subr.mxu1 %v18552_v17 }
 0x1db   :  { %14317 = vmatprep.mubr.msk.f32.mxu1 %vm15414_vm1, %v18552_v17 }
 0x1dc   :  { %14283 = vmatmul.mubr.msk.f32.vlgmr.msra.gmra.mxu0 %vm270_vm0, %v860_v18  ;;  %v16813_v18 = vpop.f32.mrf.mxu0 }
 0x1dd   :  { %14293 = vmatpush3.xpose.msk.msra.mxu0 %vm270_vm0, %v16223_v46  ;;  %14316 = vmatpush3.xpose.msk.msra.mxu1 %vm270_vm0, %v16206_v9  ;;  %18655 = vst [vmem:[#allocation134_spill] sm:$0xff] %v16813_v18  ;;  %v867_v18 = vmul.f32 %v15235_v61, %v16267_v30 }
 0x1de   :  { %14294 = vmatprep.subr.mxu0 %v18552_v17  ;;  %14327 = vmatprep.subr.mxu1 %v18552_v17 }
 0x1df   :  { %14296 = vmatprep.mubr.msk.f32.mxu0 %vm15414_vm1, %v18552_v17 }
 0x1e0   :  { %14318 = vmatmul.mubr.msk.f32.vlgmr.msra.gmra.mxu1 %vm270_vm0, %v865_v4  ;;  %v16827_v4 = vpop.f32.mrf.mxu0 }
 0x1e1   :  { %14295 = vmatpush3.xpose.msk.msra.mxu0 %vm270_vm0, %v16246_v44  ;;  %14328 = vmatpush3.xpose.msk.msra.mxu1 %vm270_vm0, %v16249_v42  ;;  %18657 = vst [vmem:[#allocation136_spill] sm:$0xff] %v16827_v4  ;;  %v864_v4 = vmul.f32 %v15235_v61, %v15903_v15  ;;  %v16865_v61 = vld [vmem:[#allocation11 + $0x3] ss:$0 sm:$0xff] }
 0x1e2   :  { %14306 = vmatprep.subr.mxu0 %v18552_v17  ;;  %14329 = vmatprep.subr.mxu1 %v18552_v17 }
 0x1e3   :  { %14331 = vmatprep.mubr.msk.f32.mxu1 %vm15414_vm1, %v18552_v17 }
 0x1e4   :  { %14297 = vmatmul.mubr.msk.f32.vlgmr.msra.gmra.mxu0 %vm270_vm0, %v862_v38  ;;  %v16841_v38 = vpop.f32.mrf.mxu0 }
 0x1e5   :  { %14307 = vmatpush3.xpose.msk.msra.mxu0 %vm270_vm0, %v16276_v62  ;;  %14330 = vmatpush3.xpose.msk.msra.mxu1 %vm270_vm0, %v16261_v34  ;;  %18659 = vst [vmem:[#allocation138_spill] sm:$0xff] %v16841_v38  ;;  %v869_v38 = vmul.f32 %v16865_v61, %v15963_v26 }
 0x1e6   :  { %14308 = vmatprep.subr.mxu0 %v18552_v17  ;;  %14341 = vmatprep.subr.mxu1 %v18552_v17 }
 0x1e7   :  { %14310 = vmatprep.mubr.msk.f32.mxu0 %vm15414_vm1, %v18552_v17 }
 0x1e8   :  { %14332 = vmatmul.mubr.msk.f32.vlgmr.msra.gmra.mxu1 %vm270_vm0, %v867_v18 }
 0x1e9   :  { %14309 = vmatpush3.xpose.msk.msra.mxu0 %vm270_vm0, %v16299_v58  ;;  %14342 = vmatpush3.xpose.msk.msra.mxu1 %vm270_vm0, %v15950_v20 }
 0x1ea   :  { %14320 = vmatprep.subr.mxu0 %v18552_v17  ;;  %14343 = vmatprep.subr.mxu1 %v18552_v17 }
 0x1eb   :  { %14345 = vmatprep.mubr.msk.f32.mxu1 %vm15414_vm1, %v18552_v17 }
 0x1ec   :  { %v16854_v18 = vpop.f32.mrf.mxu0  ;;  %14311 = vmatmul.mubr.msk.f32.vlgmr.msra.gmra.mxu0 %vm270_vm0, %v864_v4 }
 0x1ed   :  { %14321 = vmatpush3.xpose.msk.msra.mxu0 %vm270_vm0, %v16319_v19  ;;  %14344 = vmatpush3.xpose.msk.msra.mxu1 %vm270_vm0, %v15967_v28  ;;  %v6669_v20 = vsel %vm6668_vm2, %v16854_v18, -inf  ;;  %v16874_v28 = vpop.f32.mrf.mxu1 }
 0x1ee   :  { %6670 = vmax.xlane.f32.xlu0 %v6669_v20  ;;  %14322 = vmatprep.subr.mxu0 %v18552_v17  ;;  %v14004_v4 = vpop.f32.mrf.mxu0  ;;  %18662 = vst [vmem:[#allocation141_spill] sm:$0xff] %v16874_v28  ;;  %v871_v20 = vmul.f32 %v16865_v61, %v16031_v32 }
 0x1ef   :  { %14355 = vmatprep.subr.mxu1 %v18552_v17  ;;  %14324 = vmatprep.mubr.msk.f32.mxu0 %vm15414_vm1, %v18552_v17 }
 0x1f0   :  { %14346 = vmatmul.mubr.msk.f32.vlgmr.msra.gmra.mxu1 %vm270_vm0, %v869_v38  ;;  %v16888_v38 = vpop.f32.mrf.mxu1 }
 0x1f1   :  { %14323 = vmatpush3.xpose.msk.msra.mxu0 %vm270_vm0, %v16342_v10  ;;  %14356 = vmatpush3.xpose.msk.msra.mxu1 %vm270_vm0, %v16006_v55  ;;  %18663 = vst [vmem:[#allocation142_spill] sm:$0xff] %v16888_v38 }
 0x1f2   :  { %14334 = vmatprep.subr.mxu0 %v18552_v17  ;;  %14357 = vmatprep.subr.mxu1 %v18552_v17 }
 0x1f3   :  { %14359 = vmatprep.mubr.msk.f32.mxu1 %vm15414_vm1, %v18552_v17 }
 0x1f4   :  { %v16884_v26 = vpop.f32.mrf.mxu0  ;;  %14325 = vmatmul.mubr.msk.f32.vlgmr.msra.gmra.mxu0 %vm270_vm0, %v15937_v7  ;;  %v868_v7 = vmul.f32 %v16865_v61, %v15928_v3 }
 0x1f5   :  { %14335 = vmatpush3.xpose.msk.msra.mxu0 %vm270_vm0, %v15925_v2  ;;  %14358 = vmatpush3.xpose.msk.msra.mxu1 %vm270_vm0, %v16038_v51  ;;  %v6672_v55 = vsel %vm6668_vm2, %v16884_v26, -inf  ;;  %v16903_v2 = vpop.f32.mrf.mxu1 }
 0x1f6   :  { %6673 = vmax.xlane.f32.xlu0 %v6672_v55  ;;  %14336 = vmatprep.subr.mxu0 %v18552_v17  ;;  %v14011_v4 = vpop.f32.mrf.mxu0  ;;  %18664 = vst [vmem:[#allocation143_spill] sm:$0xff] %v16903_v2 }
 0x1f7   :  { %14369 = vmatprep.subr.mxu1 %v18552_v17  ;;  %14338 = vmatprep.mubr.msk.f32.mxu0 %vm15414_vm1, %v18552_v17  ;;  %v16918_v51 = vpop.f32.mrf.mxu1 }
 0x1f8   :  { %14360 = vmatmul.mubr.msk.f32.vlgmr.msra.gmra.mxu1 %vm270_vm0, %v871_v20  ;;  %18665 = vst [vmem:[#allocation144_spill] sm:$0xff] %v16918_v51 }
 0x1f9   :  { %14337 = vmatpush3.xpose.msk.msra.mxu0 %vm270_vm0, %v15945_v14  ;;  %14370 = vmatpush3.xpose.msk.msra.mxu1 %vm270_vm0, %v15996_v49  ;;  %v873_v14 = vmul.f32 %v16865_v61, %v16001_v53  ;;  %v870_v53 = vmul.f32 %v16865_v61, %v15981_v40 }
 0x1fa   :  { %14348 = vmatprep.subr.mxu0 %v18552_v17  ;;  %14371 = vmatprep.subr.mxu1 %v18552_v17 }
 0x1fb   :  { %14373 = vmatprep.mubr.msk.f32.mxu1 %vm15414_vm1, %v18552_v17 }
 0x1fc   :  { %v16915_v32 = vpop.f32.mrf.mxu0  ;;  %14339 = vmatmul.mubr.msk.f32.vlgmr.msra.gmra.mxu0 %vm270_vm0, %v868_v7 }
 0x1fd   :  { %14349 = vmatpush3.xpose.msk.msra.mxu0 %vm270_vm0, %v15970_v33  ;;  %14372 = vmatpush3.xpose.msk.msra.mxu1 %vm270_vm0, %v16009_v57  ;;  %v6675_v3 = vsel %vm6668_vm2, %v16915_v32, -inf }
 0x1fe   :  { %6676 = vmax.xlane.f32.xlu1 %v6675_v3  ;;  %14350 = vmatprep.subr.mxu0 %v18552_v17  ;;  %v14018_v49 = vpop.f32.mrf.mxu0 }
 0x1ff   :  { %14383 = vmatprep.subr.mxu1 %v18552_v17  ;;  %14352 = vmatprep.mubr.msk.f32.mxu0 %vm15414_vm1, %v18552_v17 }
 0x200   :  { %v16932_v55 = vpop.f32.mrf.mxu1  ;;  %14374 = vmatmul.mubr.msk.f32.vlgmr.msra.gmra.mxu1 %vm270_vm0, %v873_v14 }
 0x201   :  { %14351 = vmatpush3.xpose.msk.msra.mxu0 %vm270_vm0, %v15993_v45  ;;  %14384 = vmatpush3.xpose.msk.msra.mxu1 %vm270_vm0, %v16041_v1  ;;  %v6684_v33 = vsel %vm6668_vm2, %v16932_v55, -inf  ;;  %v875_v45 = vmul.f32 %v16865_v61, %v16047_v11 }
 0x202   :  { %6685 = vmax.xlane.f32.xlu1 %v6684_v33  ;;  %14362 = vmatprep.subr.mxu0 %v18552_v17  ;;  %v14039_v57 = vpop.f32.mrf.mxu1 }
 0x203   :  { %14385 = vmatprep.subr.mxu1 %v18552_v17  ;;  %14387 = vmatprep.mubr.msk.f32.mxu1 %vm15414_vm1, %v18552_v17 }
 0x204   :  { %v16947_v20 = vpop.f32.mrf.mxu0  ;;  %14353 = vmatmul.mubr.msk.f32.vlgmr.msra.gmra.mxu0 %vm270_vm0, %v870_v53 }
 0x205   :  { %14363 = vmatpush3.xpose.msk.msra.mxu0 %vm270_vm0, %v16065_v23  ;;  %14386 = vmatpush3.xpose.msk.msra.mxu1 %vm270_vm0, %v16052_v16  ;;  %v6678_v40 = vsel %vm6668_vm2, %v16947_v20, -inf  ;;  %v872_v16 = vmul.f32 %v16865_v61, %v16071_v24 }
 0x206   :  { %6679 = vmax.xlane.f32.xlu1 %v6678_v40  ;;  %14364 = vmatprep.subr.mxu0 %v18552_v17  ;;  %v14025_v1 = vpop.f32.mrf.mxu0 }
 0x207   :  { %14397 = vmatprep.subr.mxu1 %v18552_v17  ;;  %14366 = vmatprep.mubr.msk.f32.mxu0 %vm15414_vm1, %v18552_v17 }
 0x208   :  { %v16962_v4 = vpop.f32.mrf.mxu1  ;;  %14388 = vmatmul.mubr.msk.f32.vlgmr.msra.gmra.mxu1 %vm270_vm0, %v875_v45  ;;  %v18666_v45 = vld [vmem:[#allocation22_spill] sm:$0xff] }
 0x209   :  { %14365 = vmatpush3.xpose.msk.msra.mxu0 %vm270_vm0, %v16089_v35  ;;  %14398 = vmatpush3.xpose.msk.msra.mxu1 %vm270_vm0, %v16092_v43  ;;  %v6690_v11 = vsel %vm6668_vm2, %v16962_v4, -inf  ;;  %v877_v35 = vmul.f32 %v16865_v61, %v16110_v39  ;;  %v874_v39 = vmul.f32 %v16865_v61, %v16126_v37 }
 0x20a   :  { %6691 = vmax.xlane.f32.xlu1 %v6690_v11  ;;  %14376 = vmatprep.subr.mxu0 %v18552_v17  ;;  %v14053_v23 = vpop.f32.mrf.mxu1 }
 0x20b   :  { %14399 = vmatprep.subr.mxu1 %v18552_v17  ;;  %14401 = vmatprep.mubr.msk.f32.mxu1 %vm15414_vm1, %v18552_v17  ;;  %v18668_v23 = vld [vmem:[#allocation20_spill] sm:$0xff] }
 0x20c   :  { %v16977_v7 = vpop.f32.mrf.mxu0  ;;  %14367 = vmatmul.mubr.msk.f32.vlgmr.msra.gmra.mxu0 %vm270_vm0, %v872_v16  ;;  %v18667_v16 = vld [vmem:[#allocation19_spill] sm:$0xff] }
 0x20d   :  { %14377 = vmatpush3.xpose.msk.msra.mxu0 %vm270_vm0, %v16117_v27  ;;  %14400 = vmatpush3.xpose.msk.msra.mxu1 %vm270_vm0, %v16102_v41  ;;  %v6681_v24 = vsel %vm6668_vm2, %v16977_v7, -inf }
 0x20e   :  { %6682 = vmax.xlane.f32.xlu0 %v6681_v24  ;;  %14378 = vmatprep.subr.mxu0 %v18552_v17  ;;  %v14032_v43 = vpop.f32.mrf.mxu0 }
 0x20f   :  { %14411 = vmatprep.subr.mxu1 %v18552_v17  ;;  %14380 = vmatprep.mubr.msk.f32.mxu0 %vm15414_vm1, %v18552_v17 }
 0x210   :  { %v16992_v3 = vpop.f32.mrf.mxu1  ;;  %14402 = vmatmul.mubr.msk.f32.vlgmr.msra.gmra.mxu1 %vm270_vm0, %v877_v35  ;;  %v18669_v35 = vld [vmem:[#allocation21_spill] sm:$0xff] }
 0x211   :  { %14379 = vmatpush3.xpose.msk.msra.mxu0 %vm270_vm0, %v16142_v36  ;;  %14412 = vmatpush3.xpose.msk.msra.mxu1 %vm270_vm0, %v16145_v52  ;;  %v6696_v41 = vsel %vm6668_vm2, %v16992_v3, -inf  ;;  %v879_v52 = vmul.f32 %v16865_v61, %v16163_v0  ;;  %v876_v0 = vmul.f32 %v16865_v61, %v16185_v48 }
 0x212   :  { %v14067_v27 = vpop.f32.mrf.mxu1  ;;  %6697 = vmax.xlane.f32.xlu1 %v6696_v41  ;;  %14390 = vmatprep.subr.mxu0 %v18552_v17 }
 0x213   :  { %14413 = vmatprep.subr.mxu1 %v18552_v17  ;;  %14415 = vmatprep.mubr.msk.f32.mxu1 %vm15414_vm1, %v18552_v17 }
 0x214   :  { %v17007_v14 = vpop.f32.mrf.mxu0  ;;  %14381 = vmatmul.mubr.msk.f32.vlgmr.msra.gmra.mxu0 %vm270_vm0, %v874_v39 }
 0x215   :  { %14391 = vmatpush3.xpose.msk.msra.mxu0 %vm270_vm0, %v16170_v25  ;;  %14414 = vmatpush3.xpose.msk.msra.mxu1 %vm270_vm0, %v16155_v50  ;;  %v6687_v37 = vsel %vm6668_vm2, %v17007_v14, -inf }
 0x216   :  { %6688 = vmax.xlane.f32.xlu0 %v6687_v37  ;;  %14392 = vmatprep.subr.mxu0 %v18552_v17  ;;  %v14046_v36 = vpop.f32.mrf.mxu0 }
 0x217   :  { %14425 = vmatprep.subr.mxu1 %v18552_v17  ;;  %14394 = vmatprep.mubr.msk.f32.mxu0 %vm15414_vm1, %v18552_v17 }
 0x218   :  { %v17022_v49 = vpop.f32.mrf.mxu1  ;;  %14416 = vmatmul.mubr.msk.f32.vlgmr.msra.gmra.mxu1 %vm270_vm0, %v879_v52 }
 0x219   :  { %14393 = vmatpush3.xpose.msk.msra.mxu0 %vm270_vm0, %v16195_v21  ;;  %14426 = vmatpush3.xpose.msk.msra.mxu1 %vm270_vm0, %v16198_v12  ;;  %v6702_v50 = vsel %vm6668_vm2, %v17022_v49, -inf  ;;  %v881_v21 = vmul.f32 %v16865_v61, %v16216_v59  ;;  %v878_v59 = vmul.f32 %v16865_v61, %v16236_v60 }
 0x21a   :  { %v14081_v25 = vpop.f32.mrf.mxu1  ;;  %6703 = vmax.xlane.f32.xlu1 %v6702_v50  ;;  %14404 = vmatprep.subr.mxu0 %v18552_v17 }
 0x21b   :  { %14427 = vmatprep.subr.mxu1 %v18552_v17  ;;  %14429 = vmatprep.mubr.msk.f32.mxu1 %vm15414_vm1, %v18552_v17 }
 0x21c   :  { %v17037_v33 = vpop.f32.mrf.mxu0  ;;  %14395 = vmatmul.mubr.msk.f32.vlgmr.msra.gmra.mxu0 %vm270_vm0, %v876_v0 }
 0x21d   :  { %14405 = vmatpush3.xpose.msk.msra.mxu0 %vm270_vm0, %v16223_v46  ;;  %14428 = vmatpush3.xpose.msk.msra.mxu1 %vm270_vm0, %v16206_v9  ;;  %v6693_v12 = vsel %vm6668_vm2, %v17037_v33, -inf }
 0x21e   :  { %6694 = vmax.xlane.f32.xlu0 %v6693_v12  ;;  %v14060_v48 = vpop.f32.mrf.mxu0  ;;  %14406 = vmatprep.subr.mxu0 %v18552_v17 }
 0x21f   :  { %14439 = vmatprep.subr.mxu1 %v18552_v17  ;;  %14408 = vmatprep.mubr.msk.f32.mxu0 %vm15414_vm1, %v18552_v17 }
 0x220   :  { %v17052_v53 = vpop.f32.mrf.mxu1  ;;  %14430 = vmatmul.mubr.msk.f32.vlgmr.msra.gmra.mxu1 %vm270_vm0, %v881_v21 }
 0x221   :  { %14407 = vmatpush3.xpose.msk.msra.mxu0 %vm270_vm0, %v16246_v44  ;;  %14440 = vmatpush3.xpose.msk.msra.mxu1 %vm270_vm0, %v16249_v42  ;;  %v6708_v9 = vsel %vm6668_vm2, %v17052_v53, -inf  ;;  %v883_v44 = vmul.f32 %v16865_v61, %v16267_v30  ;;  %v880_v30 = vmul.f32 %v16865_v61, %v15903_v15 }
 0x222   :  { %v14095_v46 = vpop.f32.mrf.mxu1  ;;  %6709 = vmax.xlane.f32.xlu1 %v6708_v9  ;;  %14418 = vmatprep.subr.mxu0 %v18552_v17 }
 0x223   :  { %14441 = vmatprep.subr.mxu1 %v18552_v17  ;;  %14443 = vmatprep.mubr.msk.f32.mxu1 %vm15414_vm1, %v18552_v17 }
 0x224   :  { %v17067_v57 = vpop.f32.mrf.mxu0  ;;  %14409 = vmatmul.mubr.msk.f32.vlgmr.msra.gmra.mxu0 %vm270_vm0, %v878_v59 }
 0x225   :  { %14419 = vmatpush3.xpose.msk.msra.mxu0 %vm270_vm0, %v16276_v62  ;;  %14442 = vmatpush3.xpose.msk.msra.mxu1 %vm270_vm0, %v16261_v34  ;;  %v6699_v42 = vsel %vm6668_vm2, %v17067_v57, -inf }
 0x226   :  { %6700 = vmax.xlane.f32.xlu0 %v6699_v42  ;;  %v14074_v60 = vpop.f32.mrf.mxu0  ;;  %14420 = vmatprep.subr.mxu0 %v18552_v17 }
 0x227   :  { %14453 = vmatprep.subr.mxu1 %v18552_v17  ;;  %14422 = vmatprep.mubr.msk.f32.mxu0 %vm15414_vm1, %v18552_v17 }
 0x228   :  { %v17082_v40 = vpop.f32.mrf.mxu1  ;;  %14444 = vmatmul.mubr.msk.f32.vlgmr.msra.gmra.mxu1 %vm270_vm0, %v883_v44 }
 0x229   :  { %14421 = vmatpush3.xpose.msk.msra.mxu0 %vm270_vm0, %v16299_v58  ;;  %14454 = vmatpush3.msra.mxu1 %v16003_v54  ;;  %v6714_v62 = vsel %vm6668_vm2, %v17082_v40, -inf }
 0x22a   :  { %v14109_v34 = vpop.f32.mrf.mxu1  ;;  %14455 = vmatprep.subr.mxu1 %v18552_v17  ;;  %6715 = vmax.xlane.f32.xlu1 %v6714_v62 }
 0x22b   :  { %14456 = vmatpush3.msra.mxu1 %v18666_v45  ;;  %14432 = vmatprep.subr.mxu0 %v18552_v17 }
 0x22c   :  { %v17095_v1 = vpop.f32.mrf.mxu0  ;;  %14423 = vmatmul.mubr.msk.f32.vlgmr.msra.gmra.mxu0 %vm270_vm0, %v880_v30  ;;  %14457 = vmatprep.mubr.msk.f32.mxu1 %vm15414_vm1, %v18552_v17 }
 0x22d   :  { %14433 = vmatpush3.xpose.msk.msra.mxu0 %vm270_vm0, %v16319_v19  ;;  %v6705_v15 = vsel %vm6668_vm2, %v17095_v1, -inf  ;;  %14436 = vmatprep.mubr.msk.f32.mxu0 %vm15414_vm1, %v18552_v17 }
 0x22e   :  { %6706 = vmax.xlane.f32.xlu0 %v6705_v15  ;;  %v14088_v54 = vpop.f32.mrf.mxu0  ;;  %14434 = vmatprep.subr.mxu0 %v18552_v17 }
 0x22f   :  { %14467 = vmatprep.subr.mxu1 %v18552_v17 }
 0x230   :  { %v17108_v58 = vpop.f32.mrf.mxu1 }
 0x231   :  { %14435 = vmatpush3.xpose.msk.msra.mxu0 %vm270_vm0, %v16342_v10  ;;  %v6720_v19 = vsel %vm6668_vm2, %v17108_v58, -inf }
 0x232   :  { %v14123_v61 = vpop.f32.mrf.mxu1  ;;  %6721 = vmax.xlane.f32.xlu1 %v6720_v19  ;;  %14446 = vmatprep.subr.mxu0 %v18552_v17 }
 0x234   :  { %v17115_v11 = vpop.f32.mrf.mxu0  ;;  %14437 = vmatmul.mubr.msk.f32.vlgmr.msra.gmra.mxu0 %vm270_vm0, %v18667_v16 }
 0x235   :  { %14447 = vmatpush3.msra.mxu0 %v18668_v23  ;;  %v6711_v24 = vsel %vm6668_vm2, %v17115_v11, -inf  ;;  %14450 = vmatprep.mubr.msk.f32.mxu0 %vm15414_vm1, %v18552_v17 }
 0x236   :  { %14448 = vmatprep.subr.mxu0 %v18552_v17  ;;  %6712 = vmax.xlane.f32.xlu0 %v6711_v24  ;;  %v14102_v10 = vpop.f32.mrf.mxu0 }
 0x237   :  { %14449 = vmatpush3.msra.mxu0 %v18669_v35 }
 0x238   :  { %v17126_v43 = vpop.f32.mrf.mxu1  ;;  %14460 = vmatprep.subr.mxu0 %v18552_v17 }
 0x239   :  { %v6726_v41 = vsel %vm6668_vm2, %v17126_v43, -inf }
 0x23a   :  { %v14137_v39 = vpop.f32.mrf.mxu1  ;;  %6727 = vmax.xlane.f32.xlu1 %v6726_v41 }
 0x23c   :  { %v17131_v27 = vpop.f32.mrf.mxu0 }
 0x23d   :  { %v6717_v37 = vsel %vm6668_vm2, %v17131_v27, -inf }
 0x23e   :  { %6718 = vmax.xlane.f32.xlu0 %v6717_v37  ;;  %v14116_v52 = vpop.f32.mrf.mxu0 }
 0x240   :  { %v17135_v36 = vpop.f32.mrf.mxu1 }
 0x241   :  { %v6732_v50 = vsel %vm6668_vm2, %v17135_v36, -inf }
 0x242   :  { %6733 = vmax.xlane.f32.xlu1 %v6732_v50  ;;  %v14151_v0 = vpop.f32.mrf.mxu1 }
 0x244   :  { %v17139_v25 = vpop.f32.mrf.mxu0 }
 0x245   :  { %v6723_v12 = vsel %vm6668_vm2, %v17139_v25, -inf }
 0x246   :  { %6724 = vmax.xlane.f32.xlu0 %v6723_v12  ;;  %v14130_v21 = vpop.f32.mrf.mxu0 }
 0x248   :  { %v17143_v48 = vpop.f32.mrf.mxu1 }
 0x249   :  { %v6738_v9 = vsel %vm6668_vm2, %v17143_v48, -inf }
 0x24a   :  { %6739 = vmax.xlane.f32.xlu1 %v6738_v9  ;;  %v14165_v59 = vpop.f32.mrf.mxu1 }
 0x24c   :  { %v17147_v46 = vpop.f32.mrf.mxu0 }
 0x24d   :  { %v6729_v42 = vsel %vm6668_vm2, %v17147_v46, -inf }
 0x24e   :  { %6730 = vmax.xlane.f32.xlu0 %v6729_v42  ;;  %v14144_v44 = vpop.f32.mrf.mxu0 }
 0x250   :  { %v17151_v60 = vpop.f32.mrf.mxu1 }
 0x251   :  { %v6744_v62 = vsel %vm6668_vm2, %v17151_v60, -inf }
 0x252   :  { %v14179_v30 = vpop.f32.mrf.mxu1  ;;  %6745 = vmax.xlane.f32.xlu1 %v6744_v62 }
 0x254   :  { %v17155_v34 = vpop.f32.mrf.mxu0 }
 0x255   :  { %v6735_v45 = vsel %vm6668_vm2, %v17155_v34, -inf }
 0x256   :  { %6736 = vmax.xlane.f32.xlu0 %v6735_v45  ;;  %v14158_v15 = vpop.f32.mrf.mxu0 }
 0x258   :  { %v17159_v54 = vpop.f32.mrf.mxu1 }
 0x259   :  { %v6750_v19 = vsel %vm6668_vm2, %v17159_v54, -inf }
 0x25a   :  { %v14193_v61 = vpop.f32.mrf.mxu1  ;;  %6751 = vmax.xlane.f32.xlu1 %v6750_v19 }
 0x25c   :  { %v17163_v16 = vpop.f32.mrf.mxu0 }
 0x25d   :  { %v6741_v23 = vsel %vm6668_vm2, %v17163_v16, -inf }
 0x25e   :  { %6742 = vmax.xlane.f32.xlu0 %v6741_v23  ;;  %v14172_v24 = vpop.f32.mrf.mxu0 }
 0x260   :  { %v17167_v10 = vpop.f32.mrf.mxu1 }
 0x261   :  { %v6756_v35 = vsel %vm6668_vm2, %v17167_v10, -inf }
 0x262   :  { %v14207_v41 = vpop.f32.mrf.mxu1  ;;  %6757 = vmax.xlane.f32.xlu1 %v6756_v35 }
 0x264   :  { %v17171_v39 = vpop.f32.mrf.mxu0 }
 0x265   :  { %v6747_v37 = vsel %vm6668_vm2, %v17171_v39, -inf }
 0x266   :  { %6748 = vmax.xlane.f32.xlu0 %v6747_v37  ;;  %v14186_v52 = vpop.f32.mrf.mxu0 }
 0x268   :  { %v17175_v50 = vpop.f32.mrf.mxu1 }
 0x269   :  { %v6762_v0 = vsel %vm6668_vm2, %v17175_v50, -inf }
 0x26a   :  { %v14221_v12 = vpop.f32.mrf.mxu1  ;;  %6763 = vmax.xlane.f32.xlu1 %v6762_v0 }
 0x26c   :  { %v17179_v21 = vpop.f32.mrf.mxu0 }
 0x26d   :  { %v6753_v9 = vsel %vm6668_vm2, %v17179_v21, -inf }
 0x26e   :  { %6754 = vmax.xlane.f32.xlu0 %v6753_v9  ;;  %v14200_v59 = vpop.f32.mrf.mxu0 }
 0x270   :  { %v17183_v42 = vpop.f32.mrf.mxu1 }
 0x271   :  { %v6768_v44 = vsel %vm6668_vm2, %v17183_v42, -inf }
 0x272   :  { %v14235_v62 = vpop.f32.mrf.mxu1  ;;  %6769 = vmax.xlane.f32.xlu1 %v6768_v44 }
 0x274   :  { %v17187_v30 = vpop.f32.mrf.mxu0 }
 0x275   :  { %v6759_v45 = vsel %vm6668_vm2, %v17187_v30, -inf }
 0x276   :  { %6760 = vmax.xlane.f32.xlu0 %v6759_v45  ;;  %v14214_v15 = vpop.f32.mrf.mxu0 }
 0x277   :  { %v6671_v19 = vpop.xlane.xlu0 %6670 }
 0x278   :  { %v6861_v61 = vsub.f32 %v16854_v18, %v6671_v19  ;;  %v17192_v23 = vpop.f32.mrf.mxu1 }
 0x279   :  { %v6774_v24 = vsel %vm6668_vm2, %v17192_v23, -inf }
 0x27a   :  { %v6925_v35 = vmul.f32 1.442695, %v6861_v61  ;;  %v14249_v41 = vpop.f32.mrf.mxu1  ;;  %6775 = vmax.xlane.f32.xlu1 %v6774_v24 }
 0x27c   :  { %14947 = vpow2.f32 %v6925_v35  ;;  %v17196_v37 = vpop.f32.mrf.mxu0 }
 0x27d   :  { %v6765_v52 = vsel %vm6668_vm2, %v17196_v37, -inf }
 0x27e   :  { %6766 = vmax.xlane.f32.xlu0 %v6765_v52  ;;  %v14228_v0 = vpop.f32.mrf.mxu0 }
 0x27f   :  { %v6674_v12 = vpop.xlane.xlu0 %6673 }
 0x280   :  { %v6862_v9 = vsub.f32 %v16884_v26, %v6674_v12  ;;  %v17201_v18 = vpop.f32.mrf.mxu1 }
 0x281   :  { %v6780_v59 = vsel %vm6668_vm2, %v17201_v18, -inf }
 0x282   :  { %v6927_v44 = vmul.f32 1.442695, %v6862_v9  ;;  %v14263_v62 = vpop.f32.mrf.mxu1  ;;  %6781 = vmax.xlane.f32.xlu1 %v6780_v59 }
 0x284   :  { %v17205_v45 = vpop.f32.mrf.mxu0  ;;  %14949 = vpow2.f32 %v6927_v44 }
 0x285   :  { %v6771_v15 = vsel %vm6668_vm2, %v17205_v45, -inf }
 0x286   :  { %6772 = vmax.xlane.f32.xlu0 %v6771_v15  ;;  %v14242_v19 = vpop.f32.mrf.mxu0 }
 0x287   :  { %v6677_v61 = vpop.xlane.xlu1 %6676 }
 0x288   :  { %v6863_v24 = vsub.f32 %v16915_v32, %v6677_v61  ;;  %v17210_v26 = vpop.f32.mrf.mxu1 }
 0x289   :  { %v17212_v35 = vpop.eup %14947  ;;  %v6786_v41 = vsel %vm6668_vm2, %v17210_v26, -inf }
 0x28a   :  { %v6929_v52 = vmul.f32 1.442695, %v6863_v24  ;;  %v14277_v0 = vpop.f32.mrf.mxu1  ;;  %6787 = vmax.xlane.f32.xlu1 %v6786_v41  ;;  %v7053_v12 = vsel %vm6668_vm2, %v17212_v35, 0.0 }
 0x28b   :  { %v6686_v9 = vpop.xlane.xlu1 %6685  ;;  %7054 = vadd.xlane.f32.xlu0 %v7053_v12 }
 0x28c   :  { %14951 = vpow2.f32 %v6929_v52  ;;  %v6866_v59 = vsub.f32 %v16932_v55, %v6686_v9  ;;  %v17219_v44 = vpop.f32.mrf.mxu0 }
 0x28d   :  { %v6777_v32 = vsel %vm6668_vm2, %v17219_v44, -inf }
 0x28e   :  { %v6935_v62 = vmul.f32 1.442695, %v6866_v59  ;;  %v14256_v15 = vpop.f32.mrf.mxu0 }
 0x28f   :  { %v6680_v19 = vpop.xlane.xlu1 %6679  ;;  %6778 = vmax.xlane.f32.xlu0 %v6777_v32 }
 0x290   :  { %14953 = vpow2.f32 %v6935_v62  ;;  %v6864_v61 = vsub.f32 %v16947_v20, %v6680_v19  ;;  %v17224_v24 = vpop.f32.mrf.mxu1 }
 0x291   :  { %v6792_v41 = vsel %vm6668_vm2, %v17224_v24, -inf  ;;  %v17228_v52 = vpop.eup %14949 }
 0x292   :  { %v6931_v55 = vmul.f32 1.442695, %v6864_v61  ;;  %v14291_v0 = vpop.f32.mrf.mxu1  ;;  %6793 = vmax.xlane.f32.xlu1 %v6792_v41  ;;  %v7056_v32 = vsel %vm6668_vm2, %v17228_v52, 0.0 }
 0x293   :  { %v6692_v12 = vpop.xlane.xlu1 %6691 }
 0x294   :  { %v6868_v9 = vsub.f32 %v16962_v4, %v6692_v12  ;;  %v17231_v59 = vpop.f32.mrf.mxu0  ;;  %14955 = vpow2.f32 %v6931_v55 }
 0x295   :  { %v6783_v20 = vsel %vm6668_vm2, %v17231_v59, -inf }
 0x296   :  { %v6939_v62 = vmul.f32 1.442695, %v6868_v9  ;;  %7057 = vadd.xlane.f32.xlu1 %v7056_v32  ;;  %6784 = vmax.xlane.f32.xlu0 %v6783_v20  ;;  %v14270_v15 = vpop.f32.mrf.mxu0 }
 0x297   :  { %v6683_v19 = vpop.xlane.xlu0 %6682 }
 0x298   :  { %v6865_v61 = vsub.f32 %v16977_v7, %v6683_v19  ;;  %v17238_v41 = vpop.f32.mrf.mxu1  ;;  %14957 = vpow2.f32 %v6939_v62 }
 0x299   :  { %v17240_v0 = vpop.eup %14951  ;;  %v6798_v4 = vsel %vm6668_vm2, %v17238_v41, -inf }
 0x29a   :  { %v6933_v12 = vmul.f32 1.442695, %v6865_v61  ;;  %v14305_v38 = vpop.f32.mrf.mxu1  ;;  %6799 = vmax.xlane.f32.xlu1 %v6798_v4  ;;  %v7059_v55 = vsel %vm6668_vm2, %v17240_v0, 0.0 }
 0x29b   :  { %v6698_v9 = vpop.xlane.xlu1 %6697  ;;  %7060 = vadd.xlane.f32.xlu0 %v7059_v55 }
 0x29c   :  { %14959 = vpow2.f32 %v6933_v12  ;;  %v6870_v32 = vsub.f32 %v16992_v3, %v6698_v9  ;;  %v17247_v7 = vpop.f32.mrf.mxu0 }
 0x29d   :  { %v17249_v20 = vpop.eup %14953  ;;  %v6789_v15 = vsel %vm6668_vm2, %v17247_v7, -inf }
 0x29e   :  { %v6943_v19 = vmul.f32 1.442695, %v6870_v32  ;;  %v14284_v62 = vpop.f32.mrf.mxu0  ;;  %v7068_v38 = vsel %vm6668_vm2, %v17249_v20, 0.0 }
 0x29f   :  { %7069 = vadd.xlane.f32.xlu1 %v7068_v38  ;;  %v6689_v61 = vpop.xlane.xlu0 %6688  ;;  %6790 = vmax.xlane.f32.xlu0 %v6789_v15 }
 0x2a0   :  { %v6867_v4 = vsub.f32 %v17007_v14, %v6689_v61  ;;  %v17256_v12 = vpop.f32.mrf.mxu1  ;;  %14961 = vpow2.f32 %v6943_v19 }
 0x2a1   :  { %v6804_v3 = vsel %vm6668_vm2, %v17256_v12, -inf  ;;  %v17260_v28 = vpop.eup %14955 }
 0x2a2   :  { %v6937_v55 = vmul.f32 1.442695, %v6867_v4  ;;  %v14319_v9 = vpop.f32.mrf.mxu1  ;;  %v7062_v19 = vsel %vm6668_vm2, %v17260_v28, 0.0 }
 0x2a3   :  { %6805 = vmax.xlane.f32.xlu1 %v6804_v3  ;;  %v6704_v32 = vpop.xlane.xlu1 %6703 }
 0x2a4   :  { %14963 = vpow2.f32 %v6937_v55  ;;  %v6872_v62 = vsub.f32 %v17022_v49, %v6704_v32  ;;  %v17263_v38 = vpop.f32.mrf.mxu0 }
 0x2a5   :  { %v6795_v14 = vsel %vm6668_vm2, %v17263_v38, -inf  ;;  %v17269_v4 = vpop.eup %14957 }
 0x2a6   :  { %v6947_v15 = vmul.f32 1.442695, %v6872_v62  ;;  %6796 = vmax.xlane.f32.xlu0 %v6795_v14  ;;  %v14298_v61 = vpop.f32.mrf.mxu0  ;;  %v7074_v62 = vsel %vm6668_vm2, %v17269_v4, 0.0 }
 0x2a7   :  { %7063 = vadd.xlane.f32.xlu1 %v7062_v19  ;;  %v6695_v9 = vpop.xlane.xlu0 %6694 }
 0x2a8   :  { %v6869_v3 = vsub.f32 %v17037_v33, %v6695_v9  ;;  %v17272_v55 = vpop.f32.mrf.mxu1  ;;  %14965 = vpow2.f32 %v6947_v15 }
 0x2a9   :  { %v17274_v49 = vpop.eup %14959 }
 0x2aa   :  { %v6941_v32 = vmul.f32 1.442695, %v6869_v3  ;;  %v14333_v51 = vpop.f32.mrf.mxu1  ;;  %v7065_v14 = vsel %vm6668_vm2, %v17274_v49, 0.0 }
 0x2ab   :  { %7075 = vadd.xlane.f32.xlu1 %v7074_v62  ;;  %v6710_v61 = vpop.xlane.xlu1 %6709  ;;  %7066 = vadd.xlane.f32.xlu0 %v7065_v14  ;;  %v6810_v51 = vsel %vm6668_vm2, %v17272_v55, -inf }
 0x2ac   :  { %14967 = vpow2.f32 %v6941_v32  ;;  %v6874_v19 = vsub.f32 %v17052_v53, %v6710_v61  ;;  %v17281_v33 = vpop.f32.mrf.mxu0 }
 0x2ad   :  { %v6801_v9 = vsel %vm6668_vm2, %v17281_v33, -inf  ;;  %v17287_v2 = vpop.eup %14961 }
 0x2ae   :  { %v6951_v15 = vmul.f32 1.442695, %v6874_v19  ;;  %v14312_v3 = vpop.f32.mrf.mxu0  ;;  %v7080_v19 = vsel %vm6668_vm2, %v17287_v2, 0.0 }
 0x2af   :  { %6811 = vmax.xlane.f32.xlu1 %v6810_v51  ;;  %v6701_v63 = vpop.xlane.xlu0 %6700  ;;  %6802 = vmax.xlane.f32.xlu0 %v6801_v9 }
 0x2b0   :  { %v6871_v62 = vsub.f32 %v17067_v57, %v6701_v63  ;;  %v17290_v32 = vpop.f32.mrf.mxu1  ;;  %14969 = vpow2.f32 %v6951_v15 }
 0x2b1   :  { %v17292_v53 = vpop.eup %14963 }
 0x2b2   :  { %v6945_v14 = vmul.f32 1.442695, %v6871_v62  ;;  %v14347_v61 = vpop.f32.mrf.mxu1  ;;  %v7071_v3 = vsel %vm6668_vm2, %v17292_v53, 0.0  ;;  %v6816_v62 = vsel %vm6668_vm2, %v17290_v32, -inf }
 0x2b3   :  { %7081 = vadd.xlane.f32.xlu1 %v7080_v19  ;;  %v6716_v5 = vpop.xlane.xlu1 %6715  ;;  %7072 = vadd.xlane.f32.xlu0 %v7071_v3 }
 0x2b4   :  { %14971 = vpow2.f32 %v6945_v14  ;;  %v6876_v9 = vsub.f32 %v17082_v40, %v6716_v5  ;;  %v17299_v63 = vpop.f32.mrf.mxu0 }
 0x2b5   :  { %v6807_v57 = vsel %vm6668_vm2, %v17299_v63, -inf  ;;  %v17305_v61 = vpop.eup %14965 }
 0x2b6   :  { %v6955_v15 = vmul.f32 1.442695, %v6876_v9  ;;  %v14326_v51 = vpop.f32.mrf.mxu0  ;;  %v7086_v9 = vsel %vm6668_vm2, %v17305_v61, 0.0 }
 0x2b7   :  { %6817 = vmax.xlane.f32.xlu1 %v6816_v62  ;;  %v6707_v56 = vpop.xlane.xlu0 %6706  ;;  %6808 = vmax.xlane.f32.xlu0 %v6807_v57 }
 0x2b8   :  { %v6873_v19 = vsub.f32 %v17095_v1, %v6707_v56  ;;  %v17308_v14 = vpop.f32.mrf.mxu1  ;;  %14973 = vpow2.f32 %v6955_v15 }
 0x2b9   :  { %v17310_v5 = vpop.eup %14967 }
 0x2ba   :  { %v6949_v40 = vmul.f32 1.442695, %v6873_v19  ;;  %v14361_v3 = vpop.f32.mrf.mxu1  ;;  %v7077_v51 = vsel %vm6668_vm2, %v17310_v5, 0.0  ;;  %v6822_v19 = vsel %vm6668_vm2, %v17308_v14, -inf }
 0x2bb   :  { %7087 = vadd.xlane.f32.xlu1 %v7086_v9  ;;  %v6722_v31 = vpop.xlane.xlu1 %6721  ;;  %7078 = vadd.xlane.f32.xlu0 %v7077_v51 }
 0x2bc   :  { %14975 = vpow2.f32 %v6949_v40  ;;  %v6878_v57 = vsub.f32 %v17108_v58, %v6722_v31  ;;  %v17317_v56 = vpop.f32.mrf.mxu0 }
 0x2bd   :  { %v6813_v1 = vsel %vm6668_vm2, %v17317_v56, -inf  ;;  %v17323_v3 = vpop.eup %14969 }
 0x2be   :  { %v6959_v15 = vmul.f32 1.442695, %v6878_v57  ;;  %v14340_v62 = vpop.f32.mrf.mxu0  ;;  %18670 = vst [vmem:[#allocation22_spill] sm:$0xff] %v17323_v3  ;;  %v7092_v57 = vsel %vm6668_vm2, %v17323_v3, 0.0 }
 0x2bf   :  { %6823 = vmax.xlane.f32.xlu1 %v6822_v19  ;;  %v6713_v29 = vpop.xlane.xlu0 %6712  ;;  %6814 = vmax.xlane.f32.xlu0 %v6813_v1 }
 0x2c0   :  { %v6875_v9 = vsub.f32 %v17115_v11, %v6713_v29  ;;  %v17326_v40 = vpop.f32.mrf.mxu1  ;;  %14977 = vpow2.f32 %v6959_v15 }
 0x2c1   :  { %v17328_v31 = vpop.eup %14971  ;;  %v6828_v1 = vsel %vm6668_vm2, %v17326_v40, -inf }
 0x2c2   :  { %18671 = vst [vmem:[#allocation19_spill] sm:$0xff] %v17328_v31  ;;  %v6953_v58 = vmul.f32 1.442695, %v6875_v9  ;;  %v14375_v51 = vpop.f32.mrf.mxu1  ;;  %v7083_v62 = vsel %vm6668_vm2, %v17328_v31, 0.0 }
 0x2c3   :  { %7093 = vadd.xlane.f32.xlu1 %v7092_v57  ;;  %7084 = vadd.xlane.f32.xlu0 %v7083_v62 }
 0x2c4   :  { %14979 = vpow2.f32 %v6953_v58  ;;  %v17334_v19 = vpop.f32.mrf.mxu0 }
 0x2c5   :  { %v6819_v29 = vsel %vm6668_vm2, %v17334_v19, -inf  ;;  %v17340_v15 = vpop.eup %14973 }
 0x2c6   :  { %v14354_v11 = vpop.f32.mrf.mxu0  ;;  %18672 = vst [vmem:[#allocation20_spill] sm:$0xff] %v17340_v15  ;;  %v7098_v13 = vsel %vm6668_vm2, %v17340_v15, 0.0 }
 0x2c7   :  { %6829 = vmax.xlane.f32.xlu1 %v6828_v1  ;;  %v6719_v9 = vpop.xlane.xlu0 %6718  ;;  %6820 = vmax.xlane.f32.xlu0 %v6819_v29 }
 0x2c8   :  { %v6877_v51 = vsub.f32 %v17131_v27, %v6719_v9  ;;  %v17343_v47 = vpop.f32.mrf.mxu1 }
 0x2c9   :  { %v17345_v57 = vpop.eup %14975  ;;  %v6834_v9 = vsel %vm6668_vm2, %v17343_v47, -inf }
 0x2ca   :  { %18673 = vst [vmem:[#allocation21_spill] sm:$0xff] %v17345_v57  ;;  %v6957_v58 = vmul.f32 1.442695, %v6877_v51  ;;  %v14389_v62 = vpop.f32.mrf.mxu1  ;;  %v7089_v11 = vsel %vm6668_vm2, %v17345_v57, 0.0 }
 0x2cb   :  { %7099 = vadd.xlane.f32.xlu1 %v7098_v13  ;;  %7090 = vadd.xlane.f32.xlu0 %v7089_v11  ;;  %v6728_v13 = vpop.xlane.xlu1 %6727 }
 0x2cc   :  { %14981 = vpow2.f32 %v6957_v58  ;;  %v17351_v1 = vpop.f32.mrf.mxu0  ;;  %v6880_v31 = vsub.f32 %v17126_v43, %v6728_v13 }
 0x2cd   :  { %v6825_v27 = vsel %vm6668_vm2, %v17351_v1, -inf  ;;  %v17357_v51 = vpop.eup %14977 }
 0x2ce   :  { %v14368_v29 = vpop.f32.mrf.mxu0  ;;  %18674 = vst [vmem:[#allocation145_spill] sm:$0xff] %v17357_v51  ;;  %v7104_v58 = vsel %vm6668_vm2, %v17357_v51, 0.0 }
 0x2cf   :  { %6835 = vmax.xlane.f32.xlu1 %v6834_v9  ;;  %6826 = vmax.xlane.f32.xlu0 %v6825_v27  ;;  %v6734_v9 = vpop.xlane.xlu1 %6733 }
 0x2d0   :  { %v17359_v62 = vpop.f32.mrf.mxu1 }
 0x2d1   :  { %18675 = vst [vmem:[#allocation146_spill] sm:$0xff] %v17359_v62  ;;  %v17361_v15 = vpop.eup %14979 }
 0x2d2   :  { %18676 = vst [vmem:[#allocation147_spill] sm:$0xff] %v17361_v15  ;;  %v14403_v11 = vpop.f32.mrf.mxu1  ;;  %v7095_v57 = vsel %vm6668_vm2, %v17361_v15, 0.0 }
 0x2d3   :  { %7105 = vadd.xlane.f32.xlu1 %v7104_v58  ;;  %7096 = vadd.xlane.f32.xlu0 %v7095_v57  ;;  %v6840_v11 = vsel %vm6668_vm2, %v17359_v62, -inf  ;;  %v6963_v58 = vmul.f32 1.442695, %v6880_v31  ;;  %v6882_v57 = vsub.f32 %v17135_v36, %v6734_v9  ;;  %v6740_v13 = vpop.xlane.xlu1 %6739 }
 0x2d4   :  { %v17367_v29 = vpop.f32.mrf.mxu0  ;;  %v6884_v62 = vsub.f32 %v17143_v48, %v6740_v13 }
 0x2d5   :  { %18677 = vst [vmem:[#allocation148_spill] sm:$0xff] %v17367_v29  ;;  %v6831_v27 = vsel %vm6668_vm2, %v17367_v29, -inf  ;;  %14983 = vpow2.f32 %v6963_v58 }
 0x2d6   :  { %v14382_v3 = vpop.f32.mrf.mxu0 }
 0x2d7   :  { %6841 = vmax.xlane.f32.xlu1 %v6840_v11  ;;  %6832 = vmax.xlane.f32.xlu0 %v6831_v27  ;;  %v6967_v27 = vmul.f32 1.442695, %v6882_v57  ;;  %v6725_v11 = vpop.xlane.xlu0 %6724 }
 0x2d8   :  { %v17374_v51 = vpop.f32.mrf.mxu1 }
 0x2d9   :  { %18678 = vst [vmem:[#allocation149_spill] sm:$0xff] %v17374_v51  ;;  %v17376_v6 = vpop.eup %14981  ;;  %v6846_v43 = vsel %vm6668_vm2, %v17374_v51, -inf  ;;  %14985 = vpow2.f32 %v6967_v27 }
 0x2da   :  { %18679 = vst [vmem:[#allocation150_spill] sm:$0xff] %v17376_v6  ;;  %v14417_v15 = vpop.f32.mrf.mxu1  ;;  %v7101_v3 = vsel %vm6668_vm2, %v17376_v6, 0.0 }
 0x2db   :  { %6847 = vmax.xlane.f32.xlu1 %v6846_v43  ;;  %7102 = vadd.xlane.f32.xlu0 %v7101_v3  ;;  %v6746_v31 = vpop.xlane.xlu1 %6745  ;;  %v6879_v15 = vsub.f32 %v17139_v25, %v6725_v11  ;;  %v6971_v43 = vmul.f32 1.442695, %v6884_v62  ;;  %v6731_v3 = vpop.xlane.xlu0 %6730 }
 0x2dc   :  { %v17383_v29 = vpop.f32.mrf.mxu0  ;;  %v6886_v6 = vsub.f32 %v17151_v60, %v6746_v31 }
 0x2dd   :  { %18680 = vst [vmem:[#allocation151_spill] sm:$0xff] %v17383_v29  ;;  %v6837_v36 = vsel %vm6668_vm2, %v17383_v29, -inf  ;;  %v6961_v13 = vmul.f32 1.442695, %v6879_v15  ;;  %v6881_v29 = vsub.f32 %v17147_v46, %v6731_v3  ;;  %14987 = vpow2.f32 %v6971_v43 }
 0x2de   :  { %v14396_v9 = vpop.f32.mrf.mxu0  ;;  %v6975_v25 = vmul.f32 1.442695, %v6886_v6 }
 0x2df   :  { %6838 = vmax.xlane.f32.xlu0 %v6837_v36  ;;  %v6737_v11 = vpop.xlane.xlu0 %6736  ;;  %14989 = vpow2.f32 %v6961_v13  ;;  %v6965_v36 = vmul.f32 1.442695, %v6881_v29 }
 0x2e0   :  { %v17389_v51 = vpop.f32.mrf.mxu1  ;;  %v6883_v31 = vsub.f32 %v17155_v34, %v6737_v11  ;;  %14991 = vpow2.f32 %v6975_v25 }
 0x2e1   :  { %v6852_v58 = vsel %vm6668_vm2, %v17389_v51, -inf  ;;  %14993 = vpow2.f32 %v6965_v36 }
 0x2e2   :  { %v14431_v57 = vpop.f32.mrf.mxu1  ;;  %6853 = vmax.xlane.f32.xlu1 %v6852_v58  ;;  %v17405_v6 = vpop.eup %14983 }
 0x2e3   :  { %v6752_v48 = vpop.xlane.xlu1 %6751  ;;  %v6969_v57 = vmul.f32 1.442695, %v6883_v31  ;;  %v7110_v13 = vsel %vm6668_vm2, %v17405_v6, 0.0 }
 0x2e4   :  { %v17395_v9 = vpop.f32.mrf.mxu0  ;;  %v6888_v27 = vsub.f32 %v17159_v54, %v6752_v48 }
 0x2e5   :  { %v6843_v62 = vsel %vm6668_vm2, %v17395_v9, -inf }
 0x2e6   :  { %6844 = vmax.xlane.f32.xlu0 %v6843_v62  ;;  %v14410_v60 = vpop.f32.mrf.mxu0  ;;  %v6979_v46 = vmul.f32 1.442695, %v6888_v27  ;;  %v17415_v11 = vpop.eup %14985 }
 0x2e7   :  { %v6743_v43 = vpop.xlane.xlu0 %6742 }
 0x2e8   :  { %v17401_v58 = vpop.f32.mrf.mxu1  ;;  %14995 = vpow2.f32 %v6979_v46  ;;  %v6885_v34 = vsub.f32 %v17163_v16, %v6743_v43  ;;  %v7116_v16 = vsel %vm6668_vm2, %v17415_v11, 0.0 }
 0x2e9   :  { %v6858_v15 = vsel %vm6668_vm2, %v17401_v58, -inf  ;;  %14997 = vpow2.f32 %v6969_v57 }
 0x2ea   :  { %v14445_v54 = vpop.f32.mrf.mxu1  ;;  %6859 = vmax.xlane.f32.xlu1 %v6858_v15  ;;  %v17420_v31 = vpop.eup %14987 }
 0x2eb   :  { %v6758_v3 = vpop.xlane.xlu1 %6757  ;;  %v7122_v57 = vsel %vm6668_vm2, %v17420_v31, 0.0 }
 0x2ec   :  { %v6890_v48 = vsub.f32 %v17167_v10, %v6758_v3  ;;  %v17408_v29 = vpop.f32.mrf.mxu0  ;;  %v6973_v10 = vmul.f32 1.442695, %v6885_v34  ;;  %v17425_v54 = vpop.eup %14989 }
 0x2ed   :  { %v6849_v25 = vsel %vm6668_vm2, %v17408_v29, -inf }
 0x2ee   :  { %v6983_v27 = vmul.f32 1.442695, %v6890_v48  ;;  %7111 = vadd.xlane.f32.xlu1 %v7110_v13  ;;  %6850 = vmax.xlane.f32.xlu0 %v6849_v25  ;;  %v14424_v62 = vpop.f32.mrf.mxu0  ;;  %v17431_v48 = vpop.eup %14991 }
 0x2ef   :  { %v6749_v60 = vpop.xlane.xlu0 %6748  ;;  %v7128_v62 = vsel %vm6668_vm2, %v17431_v48, 0.0 }
 0x2f0   :  { %14999 = vpow2.f32 %v6983_v27  ;;  %v6887_v36 = vsub.f32 %v17171_v39, %v6749_v60  ;;  %v17434_v27 = vpop.eup %14993  ;;  %v7107_v60 = vsel %vm6668_vm2, %v17425_v54, 0.0 }
 0x2f1   :  { %15001 = vpow2.f32 %v6973_v10 }
 0x2f2   :  { %7117 = vadd.xlane.f32.xlu1 %v7116_v16  ;;  %v6977_v3 = vmul.f32 1.442695, %v6887_v36 }
 0x2f3   :  { %v6764_v46 = vpop.xlane.xlu1 %6763 }
 0x2f4   :  { %v6892_v15 = vsub.f32 %v17175_v50, %v6764_v46  ;;  %v17423_v43 = vpop.f32.mrf.mxu0 }
 0x2f5   :  { %v6855_v39 = vsel %vm6668_vm2, %v17423_v43, -inf  ;;  %v17440_v10 = vpop.eup %14995 }
 0x2f6   :  { %v6987_v34 = vmul.f32 1.442695, %v6892_v15  ;;  %7123 = vadd.xlane.f32.xlu1 %v7122_v57  ;;  %6856 = vmax.xlane.f32.xlu0 %v6855_v39  ;;  %v14438_v13 = vpop.f32.mrf.mxu0  ;;  %v17443_v15 = vpop.eup %14997 }
 0x2f7   :  { %v6755_v25 = vpop.xlane.xlu0 %6754 }
 0x2f8   :  { %15003 = vpow2.f32 %v6987_v34  ;;  %v6889_v50 = vsub.f32 %v17179_v21, %v6755_v25  ;;  %v7134_v21 = vsel %vm6668_vm2, %v17440_v10, 0.0  ;;  %v7119_v25 = vsel %vm6668_vm2, %v17443_v15, 0.0 }
 0x2f9   :  { %15005 = vpow2.f32 %v6977_v3  ;;  %v7113_v3 = vsel %vm6668_vm2, %v17434_v27, 0.0 }
 0x2fa   :  { %v6981_v36 = vmul.f32 1.442695, %v6889_v50  ;;  %7129 = vadd.xlane.f32.xlu1 %v7128_v62  ;;  %7108 = vadd.xlane.f32.xlu0 %v7107_v60 }
 0x2fb   :  { %v6770_v16 = vpop.xlane.xlu1 %6769 }
 0x2fc   :  { %v6894_v46 = vsub.f32 %v17183_v42, %v6770_v16  ;;  %15007 = vpow2.f32 %v6981_v36 }
 0x2fd   :  { %v17449_v57 = vpop.eup %14999 }
 0x2fe   :  { %v6991_v39 = vmul.f32 1.442695, %v6894_v46  ;;  %7135 = vadd.xlane.f32.xlu1 %v7134_v21  ;;  %7114 = vadd.xlane.f32.xlu0 %v7113_v3  ;;  %v7140_v42 = vsel %vm6668_vm2, %v17449_v57, 0.0  ;;  %v17456_v50 = vpop.eup %15001 }
 0x2ff   :  { %v6761_v34 = vpop.xlane.xlu0 %6760 }
 0x300   :  { %15009 = vpow2.f32 %v6991_v39  ;;  %v6891_v13 = vsub.f32 %v17187_v30, %v6761_v34  ;;  %v7125_v30 = vsel %vm6668_vm2, %v17456_v50, 0.0 }
 0x302   :  { %v6985_v62 = vmul.f32 1.442695, %v6891_v13  ;;  %7141 = vadd.xlane.f32.xlu1 %v7140_v42  ;;  %7120 = vadd.xlane.f32.xlu0 %v7119_v25 }
 0x303   :  { %v6776_v60 = vpop.xlane.xlu1 %6775 }
 0x304   :  { %15011 = vpow2.f32 %v6985_v62  ;;  %v6896_v36 = vsub.f32 %v17192_v23, %v6776_v60 }
 0x305   :  { %v17459_v16 = vpop.eup %15003 }
 0x306   :  { %v17463_v46 = vpop.eup %15005  ;;  %v6995_v21 = vmul.f32 1.442695, %v6896_v36  ;;  %7126 = vadd.xlane.f32.xlu0 %v7125_v30  ;;  %v7146_v3 = vsel %vm6668_vm2, %v17459_v16, 0.0 }
 0x307   :  { %7147 = vadd.xlane.f32.xlu1 %v7146_v3  ;;  %v6767_v39 = vpop.xlane.xlu0 %6766  ;;  %v7131_v23 = vsel %vm6668_vm2, %v17463_v46, 0.0 }
 0x308   :  { %15013 = vpow2.f32 %v6995_v21  ;;  %v6893_v34 = vsub.f32 %v17196_v37, %v6767_v39 }
 0x309   :  { %v17470_v13 = vpop.eup %15007 }
 0x30a   :  { %v6989_v42 = vmul.f32 1.442695, %v6893_v34  ;;  %7132 = vadd.xlane.f32.xlu0 %v7131_v23  ;;  %v7137_v36 = vsel %vm6668_vm2, %v17470_v13, 0.0 }
 0x30b   :  { %v6782_v25 = vpop.xlane.xlu1 %6781 }
 0x30c   :  { %15015 = vpow2.f32 %v6989_v42  ;;  %v6898_v62 = vsub.f32 %v17201_v18, %v6782_v25 }
 0x30d   :  { %v17473_v60 = vpop.eup %15009 }
 0x30e   :  { %v6999_v30 = vmul.f32 1.442695, %v6898_v62  ;;  %7138 = vadd.xlane.f32.xlu0 %v7137_v36  ;;  %v7152_v37 = vsel %vm6668_vm2, %v17473_v60, 0.0 }
 0x30f   :  { %7153 = vadd.xlane.f32.xlu1 %v7152_v37  ;;  %v6773_v21 = vpop.xlane.xlu0 %6772 }
 0x310   :  { %15017 = vpow2.f32 %v6999_v30  ;;  %v6895_v3 = vsub.f32 %v17205_v45, %v6773_v21 }
 0x311   :  { %v17480_v39 = vpop.eup %15011 }
 0x312   :  { %v6993_v34 = vmul.f32 1.442695, %v6895_v3  ;;  %v7143_v18 = vsel %vm6668_vm2, %v17480_v39, 0.0 }
 0x313   :  { %v6788_v23 = vpop.xlane.xlu1 %6787  ;;  %7144 = vadd.xlane.f32.xlu0 %v7143_v18 }
 0x314   :  { %15019 = vpow2.f32 %v6993_v34  ;;  %v6900_v42 = vsub.f32 %v17210_v26, %v6788_v23  ;;  %v7055_v25 = vpop.xlane.xlu0 %7054 }
 0x315   :  { %v17485_v62 = vpop.eup %15013  ;;  %15021 = vrcp.f32 %v7055_v25 }
 0x316   :  { %v7003_v36 = vmul.f32 1.442695, %v6900_v42  ;;  %v7158_v30 = vsel %vm6668_vm2, %v17485_v62, 0.0 }
 0x317   :  { %7159 = vadd.xlane.f32.xlu1 %v7158_v30 }
 0x318   :  { %15023 = vpow2.f32 %v7003_v36  ;;  %v6779_v45 = vpop.xlane.xlu0 %6778 }
 0x319   :  { %v17489_v37 = vpop.eup %15015  ;;  %v6897_v21 = vsub.f32 %v17219_v44, %v6779_v45 }
 0x31a   :  { %v7149_v3 = vsel %vm6668_vm2, %v17489_v37, 0.0 }
 0x31b   :  { %v6997_v34 = vmul.f32 1.442695, %v6897_v21  ;;  %v6794_v26 = vpop.xlane.xlu1 %6793  ;;  %7150 = vadd.xlane.f32.xlu0 %v7149_v3 }
 0x31c   :  { %v6902_v18 = vsub.f32 %v17224_v24, %v6794_v26 }
 0x31d   :  { %v17495_v23 = vpop.eup %15017  ;;  %15025 = vpow2.f32 %v6997_v34 }
 0x31e   :  { %18681 = vst [vmem:[#allocation152_spill] sm:$0xff] %v17495_v23  ;;  %v7007_v42 = vmul.f32 1.442695, %v6902_v18  ;;  %v7164_v25 = vsel %vm6668_vm2, %v17495_v23, 0.0 }
 0x31f   :  { %7165 = vadd.xlane.f32.xlu1 %v7164_v25  ;;  %v7058_v36 = vpop.xlane.xlu1 %7057  ;;  %v6785_v30 = vpop.xlane.xlu0 %6784 }
 0x320   :  { %15027 = vpow2.f32 %v7007_v42  ;;  %v6899_v44 = vsub.f32 %v17231_v59, %v6785_v30  ;;  %v18682_v42 = vld [vmem:[#allocation23_spill] sm:$0xff] }
 0x321   :  { %v17500_v45 = vpop.eup %15019  ;;  %15029 = vrcp.f32 %v7058_v36 }
 0x322   :  { %v15022_v21 = vpop.eup %15021  ;;  %v7001_v3 = vmul.f32 1.442695, %v6899_v44  ;;  %v7155_v24 = vsel %vm6668_vm2, %v17500_v45, 0.0 }
 0x323   :  { %v7246_v34 = vmul.f32 %v15022_v21, %v17212_v35  ;;  %v6800_v26 = vpop.xlane.xlu1 %6799  ;;  %7156 = vadd.xlane.f32.xlu0 %v7155_v24  ;;  %v18683_v35 = vld [vmem:[#allocation24_spill] sm:$0xff] }
 0x324   :  { %15031 = vpow2.f32 %v7001_v3  ;;  %v6904_v18 = vsub.f32 %v17238_v41, %v6800_v26  ;;  %v7061_v25 = vpop.xlane.xlu0 %7060 }
 0x325   :  { %v17506_v23 = vpop.eup %15023  ;;  %15033 = vrcp.f32 %v7061_v25  ;;  %14451 = vmatmul.mubr.msk.f32.vlgmr.msra.gmra.mxu0 %vm6668_vm2, %v7246_v34 }
 0x326   :  { %v7011_v59 = vmul.f32 1.442695, %v6904_v18  ;;  %14461 = vmatpush3.msra.mxu0 %v18682_v42  ;;  %v7170_v36 = vsel %vm6668_vm2, %v17506_v23, 0.0  ;;  %14464 = vmatprep.mubr.msk.f32.mxu0 %vm15414_vm1, %v18552_v17 }
 0x327   :  { %14462 = vmatprep.subr.mxu0 %v18552_v17  ;;  %7171 = vadd.xlane.f32.xlu1 %v7170_v36 }
 0x328   :  { %15035 = vpow2.f32 %v7011_v59  ;;  %14463 = vmatpush3.msra.mxu0 %v18683_v35  ;;  %v7070_v41 = vpop.xlane.xlu1 %7069  ;;  %v6791_v30 = vpop.xlane.xlu0 %6790 }
 0x329   :  { %v6901_v44 = vsub.f32 %v17247_v7, %v6791_v30  ;;  %14474 = vmatprep.subr.mxu0 %v18552_v17 }
 0x32a   :  { %v17518_v21 = vpop.eup %15025 }
 0x32b   :  { %v7005_v3 = vmul.f32 1.442695, %v6901_v44  ;;  %v7161_v24 = vsel %vm6668_vm2, %v17518_v21, 0.0 }
 0x32c   :  { %v6806_v34 = vpop.xlane.xlu1 %6805  ;;  %7162 = vadd.xlane.f32.xlu0 %v7161_v24 }
 0x32d   :  { %v17522_v26 = vpop.eup %15027  ;;  %15037 = vpow2.f32 %v7005_v3  ;;  %v6906_v18 = vsub.f32 %v17256_v12, %v6806_v34  ;;  %v18684_v12 = vld [vmem:[#allocation25_spill] sm:$0xff] }
 0x32e   :  { %v15030_v25 = vpop.eup %15029  ;;  %v7176_v59 = vsel %vm6668_vm2, %v17522_v26, 0.0 }
 0x32f   :  { %v7248_v7 = vmul.f32 %v15030_v25, %v17228_v52  ;;  %v7015_v42 = vmul.f32 1.442695, %v6906_v18  ;;  %7177 = vadd.xlane.f32.xlu1 %v7176_v59  ;;  %v6797_v36 = vpop.xlane.xlu0 %6796 }
 0x330   :  { %v6903_v35 = vsub.f32 %v17263_v38, %v6797_v36  ;;  %v7064_v30 = vpop.xlane.xlu1 %7063  ;;  %v18685_v38 = vld [vmem:[#allocation26_spill] sm:$0xff] }
 0x331   :  { %v17529_v44 = vpop.eup %15031  ;;  %15039 = vpow2.f32 %v7015_v42  ;;  %14458 = vmatmul.mubr.msk.f32.vlgmr.msra.gmra.mxu1 %vm6668_vm2, %v7248_v7  ;;  %v18686_v7 = vld [vmem:[#allocation27_spill] sm:$0xff]  ;;  %v18687_v42 = vld [vmem:[#allocation28_spill] sm:$0xff] }
 0x332   :  { %v15034_v3 = vpop.eup %15033  ;;  %v7009_v24 = vmul.f32 1.442695, %v6903_v35  ;;  %14468 = vmatpush3.msra.mxu1 %v18684_v12  ;;  %15041 = vrcp.f32 %v7064_v30  ;;  %v7167_v34 = vsel %vm6668_vm2, %v17529_v44, 0.0  ;;  %14471 = vmatprep.mubr.msk.f32.mxu1 %vm15414_vm1, %v18552_v17 }
 0x333   :  { %v7250_v52 = vmul.f32 %v15034_v3, %v17240_v0  ;;  %14469 = vmatprep.subr.mxu1 %v18552_v17  ;;  %7168 = vadd.xlane.f32.xlu0 %v7167_v34 }
 0x334   :  { %15043 = vpow2.f32 %v7009_v24  ;;  %14470 = vmatpush3.msra.mxu1 %v18685_v38  ;;  %v7076_v18 = vpop.xlane.xlu1 %7075  ;;  %v7067_v25 = vpop.xlane.xlu0 %7066 }
 0x335   :  { %v17540_v59 = vpop.eup %15035  ;;  %15045 = vrcp.f32 %v7070_v41  ;;  %14465 = vmatmul.mubr.msk.f32.vlgmr.msra.gmra.mxu0 %vm6668_vm2, %v7250_v52  ;;  %14481 = vmatprep.subr.mxu1 %v18552_v17 }
 0x336   :  { %15047 = vrcp.f32 %v7067_v25  ;;  %14475 = vmatpush3.msra.mxu0 %v18686_v7  ;;  %v7182_v0 = vsel %vm6668_vm2, %v17540_v59, 0.0  ;;  %14478 = vmatprep.mubr.msk.f32.mxu0 %vm15414_vm1, %v18552_v17 }
 0x337   :  { %14476 = vmatprep.subr.mxu0 %v18552_v17  ;;  %7183 = vadd.xlane.f32.xlu1 %v7182_v0  ;;  %15049 = vrcp.f32 %v7076_v18 }
 0x338   :  { %14477 = vmatpush3.msra.mxu0 %v18687_v42  ;;  %v6812_v36 = vpop.xlane.xlu1 %6811  ;;  %v6803_v41 = vpop.xlane.xlu0 %6802 }
 0x339   :  { %v6908_v35 = vsub.f32 %v17272_v55, %v6812_v36  ;;  %v6905_v30 = vsub.f32 %v17281_v33, %v6803_v41  ;;  %14488 = vmatprep.subr.mxu0 %v18552_v17 }
 0x33a   :  { %v17554_v3 = vpop.eup %15037 }
 0x33b   :  { %v7019_v24 = vmul.f32 1.442695, %v6908_v35  ;;  %v7013_v12 = vmul.f32 1.442695, %v6905_v30  ;;  %v7173_v34 = vsel %vm6668_vm2, %v17554_v3, 0.0 }
 0x33c   :  { %v7082_v52 = vpop.xlane.xlu1 %7081  ;;  %v7073_v38 = vpop.xlane.xlu0 %7072  ;;  %7174 = vadd.xlane.f32.xlu0 %v7173_v34 }
 0x33d   :  { %15051 = vpow2.f32 %v7019_v24 }
 0x33e   :  { %v17558_v25 = vpop.eup %15039  ;;  %15053 = vpow2.f32 %v7013_v12 }
 0x33f   :  { %v15042_v18 = vpop.eup %15041  ;;  %15055 = vrcp.f32 %v7082_v52  ;;  %v7188_v55 = vsel %vm6668_vm2, %v17558_v25, 0.0 }
 0x340   :  { %v7252_v33 = vmul.f32 %v15042_v18, %v17260_v28  ;;  %15057 = vrcp.f32 %v7073_v38  ;;  %7189 = vadd.xlane.f32.xlu1 %v7188_v55  ;;  %v6818_v7 = vpop.xlane.xlu1 %6817  ;;  %v6809_v0 = vpop.xlane.xlu0 %6808  ;;  %v18688_v28 = vld [vmem:[#allocation29_spill] sm:$0xff]  ;;  %v18689_v18 = vld [vmem:[#allocation30_spill] sm:$0xff] }
 0x341   :  { %v17563_v42 = vpop.eup %15043  ;;  %v6910_v36 = vsub.f32 %v17290_v32, %v6818_v7  ;;  %v6907_v41 = vsub.f32 %v17299_v63, %v6809_v0 }
 0x342   :  { %v15046_v35 = vpop.eup %15045  ;;  %14472 = vmatmul.mubr.msk.f32.vlgmr.msra.gmra.mxu1 %vm6668_vm2, %v7252_v33  ;;  %v7179_v30 = vsel %vm6668_vm2, %v17563_v42, 0.0  ;;  %v18691_v33 = vld [vmem:[#allocation33_spill] sm:$0xff] }
 0x343   :  { %v15048_v24 = vpop.eup %15047  ;;  %v7023_v12 = vmul.f32 1.442695, %v6910_v36  ;;  %v7017_v34 = vmul.f32 1.442695, %v6907_v41  ;;  %14482 = vmatpush3.msra.mxu1 %v18688_v28  ;;  %7180 = vadd.xlane.f32.xlu0 %v7179_v30  ;;  %v7256_v38 = vmul.f32 %v15046_v35, %v17249_v20  ;;  %v18692_v36 = vld [vmem:[#allocation32_spill] sm:$0xff] }
 0x344   :  { %v7254_v52 = vmul.f32 %v15048_v24, %v17274_v49  ;;  %14483 = vmatprep.subr.mxu1 %v18552_v17  ;;  %14485 = vmatprep.mubr.msk.f32.mxu1 %vm15414_vm1, %v18552_v17  ;;  %v7088_v32 = vpop.xlane.xlu1 %7087  ;;  %v7079_v63 = vpop.xlane.xlu0 %7078  ;;  %v18690_v49 = vld [vmem:[#allocation31_spill] sm:$0xff]  ;;  %v18693_v24 = vld [vmem:[#allocation34_spill] sm:$0xff] }
 0x345   :  { %15059 = vpow2.f32 %v7023_v12  ;;  %14484 = vmatpush3.msra.mxu1 %v18689_v18  ;;  %v15050_v55 = vpop.eup %15049 }
 0x346   :  { %15061 = vpow2.f32 %v7017_v34  ;;  %14495 = vmatprep.subr.mxu1 %v18552_v17  ;;  %14479 = vmatmul.mubr.msk.f32.vlgmr.msra.gmra.mxu0 %vm6668_vm2, %v7254_v52  ;;  %v7260_v0 = vmul.f32 %v15050_v55, %v17269_v4 }
 0x347   :  { %15063 = vrcp.f32 %v7088_v32  ;;  %14486 = vmatmul.mubr.msk.f32.vlgmr.msra.gmra.mxu1 %vm6668_vm2, %v7256_v38  ;;  %14489 = vmatpush3.msra.mxu0 %v18690_v49  ;;  %v18695_v49 = vld [vmem:[#allocation38_spill] sm:$0xff] }
 0x348   :  { %15065 = vrcp.f32 %v7079_v63  ;;  %14496 = vmatpush3.msra.mxu1 %v18691_v33  ;;  %14490 = vmatprep.subr.mxu0 %v18552_v17  ;;  %v6824_v20 = vpop.xlane.xlu1 %6823  ;;  %v6815_v7 = vpop.xlane.xlu0 %6814 }
 0x349   :  { %14497 = vmatprep.subr.mxu1 %v18552_v17  ;;  %14491 = vmatpush3.msra.mxu0 %v18692_v36  ;;  %v6912_v41 = vsub.f32 %v17308_v14, %v6824_v20  ;;  %v6909_v35 = vsub.f32 %v17317_v56, %v6815_v7  ;;  %v18694_v56 = vld [vmem:[#allocation37_spill] sm:$0xff]  ;;  %v18696_v20 = vld [vmem:[#allocation35_spill] sm:$0xff] }
 0x34a   :  { %v17588_v30 = vpop.eup %15051  ;;  %14498 = vmatpush3.msra.mxu1 %v18693_v24  ;;  %14499 = vmatprep.mubr.msk.f32.mxu1 %vm15414_vm1, %v18552_v17  ;;  %v18697_v36 = vld [vmem:[#allocation41_spill] sm:$0xff] }
 0x34b   :  { %v17593_v12 = vpop.eup %15053  ;;  %14509 = vmatprep.subr.mxu1 %v18552_v17  ;;  %v7027_v4 = vmul.f32 1.442695, %v6912_v41  ;;  %v7021_v34 = vmul.f32 1.442695, %v6909_v35  ;;  %14500 = vmatmul.mubr.msk.f32.vlgmr.msra.gmra.mxu1 %vm6668_vm2, %v7260_v0  ;;  %v7194_v14 = vsel %vm6668_vm2, %v17588_v30, 0.0  ;;  %v18698_v35 = vld [vmem:[#allocation36_spill] sm:$0xff] }
 0x34c   :  { %v15056_v28 = vpop.eup %15055  ;;  %14510 = vmatpush3.msra.mxu1 %v18694_v56  ;;  %14513 = vmatprep.mubr.msk.f32.mxu1 %vm15414_vm1, %v18552_v17  ;;  %v7094_v52 = vpop.xlane.xlu1 %7093  ;;  %v7185_v18 = vsel %vm6668_vm2, %v17593_v12, 0.0 }
 0x34d   :  { %v7085_v32 = vpop.xlane.xlu0 %7084  ;;  %v15058_v63 = vpop.eup %15057  ;;  %v7264_v38 = vmul.f32 %v15056_v28, %v17287_v2  ;;  %15067 = vpow2.f32 %v7027_v4  ;;  %14511 = vmatprep.subr.mxu1 %v18552_v17  ;;  %7195 = vadd.xlane.f32.xlu1 %v7194_v14 }
 0x34e   :  { %v7258_v55 = vmul.f32 %v15058_v63, %v17292_v53  ;;  %15069 = vpow2.f32 %v7021_v34  ;;  %14512 = vmatpush3.msra.mxu1 %v18695_v49  ;;  %14492 = vmatprep.mubr.msk.f32.mxu0 %vm15414_vm1, %v18552_v17  ;;  %v18699_v63 = vld [vmem:[#allocation39_spill] sm:$0xff] }
 0x34f   :  { %14523 = vmatprep.subr.mxu1 %v18552_v17  ;;  %15071 = vrcp.f32 %v7094_v52  ;;  %14502 = vmatprep.subr.mxu0 %v18552_v17 }
 0x350   :  { %15073 = vrcp.f32 %v7085_v32  ;;  %7186 = vadd.xlane.f32.xlu0 %v7185_v18  ;;  %14493 = vmatmul.mubr.msk.f32.vlgmr.msra.gmra.mxu0 %vm6668_vm2, %v7258_v55  ;;  %v6830_v2 = vpop.xlane.xlu1 %6829  ;;  %v18700_v55 = vld [vmem:[#allocation49_spill] sm:$0xff] }
 0x351   :  { %v6821_v33 = vpop.xlane.xlu0 %6820  ;;  %14503 = vmatpush3.msra.mxu0 %v18696_v20  ;;  %14514 = vmatmul.mubr.msk.f32.vlgmr.msra.gmra.mxu1 %vm6668_vm2, %v7264_v38  ;;  %v6914_v53 = vsub.f32 %v17326_v40, %v6830_v2  ;;  %v18701_v2 = vld [vmem:[#allocation40_spill] sm:$0xff] }
 0x352   :  { %v6911_v7 = vsub.f32 %v17334_v19, %v6821_v33  ;;  %v17617_v0 = vpop.eup %15059  ;;  %14524 = vmatpush3.msra.mxu1 %v18697_v36  ;;  %14504 = vmatprep.subr.mxu0 %v18552_v17 }
 0x353   :  { %v17621_v41 = vpop.eup %15061  ;;  %14525 = vmatprep.subr.mxu1 %v18552_v17  ;;  %14505 = vmatpush3.msra.mxu0 %v18698_v35  ;;  %v7031_v24 = vmul.f32 1.442695, %v6914_v53  ;;  %v7200_v34 = vsel %vm6668_vm2, %v17617_v0, 0.0  ;;  %v18702_v35 = vld [vmem:[#allocation22_spill] sm:$0xff] }
 0x354   :  { %v7025_v4 = vmul.f32 1.442695, %v6911_v7  ;;  %v15064_v40 = vpop.eup %15063  ;;  %14526 = vmatpush3.msra.mxu1 %v16273_v8  ;;  %14527 = vmatprep.mubr.msk.f32.mxu1 %vm15414_vm1, %v18552_v17  ;;  %v7100_v19 = vpop.xlane.xlu1 %7099  ;;  %v7191_v28 = vsel %vm6668_vm2, %v17621_v41, 0.0 }
 0x355   :  { %v7091_v14 = vpop.xlane.xlu0 %7090  ;;  %v15066_v56 = vpop.eup %15065  ;;  %v7268_v52 = vmul.f32 %v15064_v40, %v17305_v61  ;;  %15075 = vpow2.f32 %v7031_v24  ;;  %14537 = vmatprep.subr.mxu1 %v18552_v17  ;;  %7201 = vadd.xlane.f32.xlu1 %v7200_v34  ;;  %v18704_v40 = vld [vmem:[#allocation55_spill] sm:$0xff] }
 0x356   :  { %v7262_v32 = vmul.f32 %v15066_v56, %v17310_v5  ;;  %15077 = vpow2.f32 %v7025_v4  ;;  %14506 = vmatprep.mubr.msk.f32.mxu0 %vm15414_vm1, %v18552_v17  ;;  %14516 = vmatprep.subr.mxu0 %v18552_v17  ;;  %v18703_v4 = vld [vmem:[#allocation19_spill] sm:$0xff]  ;;  %v18706_v56 = vld [vmem:[#allocation146_spill] sm:$0xff] }
 0x357   :  { %15079 = vrcp.f32 %v7100_v19  ;;  %7192 = vadd.xlane.f32.xlu0 %v7191_v28  ;;  %14528 = vmatmul.mubr.msk.f32.vlgmr.msra.gmra.mxu1 %vm6668_vm2, %v7268_v52  ;;  %v18705_v28 = vld [vmem:[#allocation44_spill] sm:$0xff] }
 0x358   :  { %15081 = vrcp.f32 %v7091_v14  ;;  %14507 = vmatmul.mubr.msk.f32.vlgmr.msra.gmra.mxu0 %vm6668_vm2, %v7262_v32  ;;  %14538 = vmatpush3.msra.mxu1 %v16306_v22  ;;  %v6836_v8 = vpop.xlane.xlu1 %6835  ;;  %v18707_v32 = vld [vmem:[#allocation148_spill] sm:$0xff] }
 0x359   :  { %v6827_v61 = vpop.xlane.xlu0 %6826  ;;  %14517 = vmatpush3.msra.mxu0 %v18699_v63  ;;  %14539 = vmatprep.subr.mxu1 %v18552_v17  ;;  %v6916_v5 = vsub.f32 %v17343_v47, %v6836_v8  ;;  %v18708_v63 = vld [vmem:[#allocation57_spill] sm:$0xff] }
 0x35a   :  { %v6913_v38 = vsub.f32 %v17351_v1, %v6827_v61  ;;  %v17645_v18 = vpop.eup %15067  ;;  %14518 = vmatprep.subr.mxu0 %v18552_v17  ;;  %14540 = vmatpush3.msra.mxu1 %v18700_v55 }
 0x35b   :  { %v17649_v49 = vpop.eup %15069  ;;  %14519 = vmatpush3.msra.mxu0 %v18701_v2  ;;  %v7035_v22 = vmul.f32 1.442695, %v6916_v5  ;;  %14541 = vmatprep.mubr.msk.f32.mxu1 %vm15414_vm1, %v18552_v17  ;;  %v7206_v47 = vsel %vm6668_vm2, %v17645_v18, 0.0 }
 0x35c   :  { %v7029_v33 = vmul.f32 1.442695, %v6913_v38  ;;  %v15072_v20 = vpop.eup %15071  ;;  %14551 = vmatprep.subr.mxu1 %v18552_v17  ;;  %7207 = vadd.xlane.f32.xlu1 %v7206_v47  ;;  %v7106_v1 = vpop.xlane.xlu1 %7105  ;;  %v7197_v7 = vsel %vm6668_vm2, %v17649_v49, 0.0  ;;  %v18709_v38 = vld [vmem:[#allocation46_spill] sm:$0xff] }
 0x35d   :  { %v7097_v53 = vpop.xlane.xlu0 %7096  ;;  %v15074_v36 = vpop.eup %15073  ;;  %v7272_v24 = vmul.f32 %v15072_v20, %v18702_v35  ;;  %15083 = vpow2.f32 %v7035_v22  ;;  %14520 = vmatprep.mubr.msk.f32.mxu0 %vm15414_vm1, %v18552_v17  ;;  %14530 = vmatprep.subr.mxu0 %v18552_v17  ;;  %v18711_v35 = vld [vmem:[#allocation149_spill] sm:$0xff] }
 0x35e   :  { %v7266_v34 = vmul.f32 %v15074_v36, %v18703_v4  ;;  %15085 = vpow2.f32 %v7029_v33  ;;  %7198 = vadd.xlane.f32.xlu0 %v7197_v7  ;;  %v18710_v7 = vld [vmem:[#allocation20_spill] sm:$0xff]  ;;  %v18712_v4 = vld [vmem:[#allocation21_spill] sm:$0xff] }
 0x35f   :  { %15087 = vrcp.f32 %v7106_v1  ;;  %14542 = vmatmul.mubr.msk.f32.vlgmr.msra.gmra.mxu1 %vm6668_vm2, %v7272_v24 }
 0x360   :  { %15089 = vrcp.f32 %v7097_v53  ;;  %14521 = vmatmul.mubr.msk.f32.vlgmr.msra.gmra.mxu0 %vm6668_vm2, %v7266_v34  ;;  %14552 = vmatpush3.msra.mxu1 %v18704_v40  ;;  %v6842_v19 = vpop.xlane.xlu1 %6841 }
 0x361   :  { %v6833_v14 = vpop.xlane.xlu0 %6832  ;;  %14531 = vmatpush3.msra.mxu0 %v18705_v28  ;;  %14553 = vmatprep.subr.mxu1 %v18552_v17  ;;  %v6918_v52 = vsub.f32 %v18706_v56, %v6842_v19  ;;  %v18713_v19 = vld [vmem:[#allocation45_spill] sm:$0xff]  ;;  %v18714_v28 = vld [vmem:[#allocation51_spill] sm:$0xff] }
 0x362   :  { %v6915_v8 = vsub.f32 %v18707_v32, %v6833_v14  ;;  %v17671_v61 = vpop.eup %15075  ;;  %14532 = vmatprep.subr.mxu0 %v18552_v17  ;;  %14554 = vmatpush3.msra.mxu1 %v18708_v63  ;;  %v18715_v56 = vld [vmem:[#allocation151_spill] sm:$0xff] }
 0x363   :  { %v17675_v5 = vpop.eup %15077  ;;  %14533 = vmatpush3.msra.mxu0 %v18709_v38  ;;  %v7039_v55 = vmul.f32 1.442695, %v6918_v52  ;;  %14555 = vmatprep.mubr.msk.f32.mxu1 %vm15414_vm1, %v18552_v17  ;;  %v7212_v22 = vsel %vm6668_vm2, %v17671_v61, 0.0  ;;  %v18717_v38 = vld [vmem:[#allocation53_spill] sm:$0xff] }
 0x364   :  { %v7033_v2 = vmul.f32 1.442695, %v6915_v8  ;;  %v15080_v33 = vpop.eup %15079  ;;  %14565 = vmatprep.subr.mxu1 %v18552_v17  ;;  %7213 = vadd.xlane.f32.xlu1 %v7212_v22  ;;  %v6848_v47 = vpop.xlane.xlu1 %6847  ;;  %v7203_v1 = vsel %vm6668_vm2, %v17675_v5, 0.0  ;;  %v18716_v8 = vld [vmem:[#allocation47_spill] sm:$0xff] }
 0x365   :  { %v7103_v20 = vpop.xlane.xlu0 %7102  ;;  %v15082_v53 = vpop.eup %15081  ;;  %v7276_v36 = vmul.f32 %v15080_v33, %v18710_v7  ;;  %15091 = vpow2.f32 %v7039_v55  ;;  %v6920_v24 = vsub.f32 %v18711_v35, %v6848_v47  ;;  %14534 = vmatprep.mubr.msk.f32.mxu0 %vm15414_vm1, %v18552_v17  ;;  %14544 = vmatprep.subr.mxu0 %v18552_v17 }
 0x366   :  { %v7270_v34 = vmul.f32 %v15082_v53, %v18712_v4  ;;  %15093 = vpow2.f32 %v7033_v2  ;;  %7204 = vadd.xlane.f32.xlu0 %v7203_v1  ;;  %v18718_v53 = vld [vmem:[#allocation145_spill] sm:$0xff]  ;;  %v18720_v4 = vld [vmem:[#allocation52_spill] sm:$0xff] }
 0x367   :  { %v7043_v40 = vmul.f32 1.442695, %v6920_v24  ;;  %15095 = vrcp.f32 %v7103_v20  ;;  %14556 = vmatmul.mubr.msk.f32.vlgmr.msra.gmra.mxu1 %vm6668_vm2, %v7276_v36  ;;  %v18719_v36 = vld [vmem:[#allocation147_spill] sm:$0xff] }
 0x368   :  { %14535 = vmatmul.mubr.msk.f32.vlgmr.msra.gmra.mxu0 %vm6668_vm2, %v7270_v34  ;;  %14566 = vmatpush3.msra.mxu1 %v18713_v19 }
 0x369   :  { %v6839_v14 = vpop.xlane.xlu0 %6838  ;;  %15097 = vpow2.f32 %v7043_v40  ;;  %14545 = vmatpush3.msra.mxu0 %v18714_v28  ;;  %14567 = vmatprep.subr.mxu1 %v18552_v17  ;;  %v18721_v40 = vld [vmem:[#allocation42_spill] sm:$0xff] }
 0x36a   :  { %v6917_v52 = vsub.f32 %v18715_v56, %v6839_v14  ;;  %v17697_v32 = vpop.eup %15083  ;;  %14546 = vmatprep.subr.mxu0 %v18552_v17  ;;  %14568 = vmatpush3.msra.mxu1 %v18716_v8  ;;  %v18722_v14 = vld [vmem:[#allocation54_spill] sm:$0xff] }
 0x36b   :  { %v17701_v63 = vpop.eup %15085  ;;  %14547 = vmatpush3.msra.mxu0 %v18717_v38  ;;  %v6854_v2 = vpop.xlane.xlu1 %6853  ;;  %14569 = vmatprep.mubr.msk.f32.mxu1 %vm15414_vm1, %v18552_v17  ;;  %v7218_v22 = vsel %vm6668_vm2, %v17697_v32, 0.0 }
 0x36c   :  { %v7037_v55 = vmul.f32 1.442695, %v6917_v52  ;;  %v15088_v33 = vpop.eup %15087  ;;  %v6922_v47 = vsub.f32 %v17389_v51, %v6854_v2  ;;  %14579 = vmatprep.subr.mxu1 %v18552_v17  ;;  %7219 = vadd.xlane.f32.xlu1 %v7218_v22  ;;  %v7209_v20 = vsel %vm6668_vm2, %v17701_v63, 0.0  ;;  %v18723_v52 = vld [vmem:[#allocation43_spill] sm:$0xff]  ;;  %v18724_v22 = vld [vmem:[#allocation150_spill] sm:$0xff] }
 0x36d   :  { %v15090_v1 = vpop.eup %15089  ;;  %v7280_v7 = vmul.f32 %v15088_v33, %v18718_v53  ;;  %14548 = vmatprep.mubr.msk.f32.mxu0 %vm15414_vm1, %v18552_v17  ;;  %14558 = vmatprep.subr.mxu0 %v18552_v17 }
 0x36e   :  { %15099 = vpow2.f32 %v7037_v55  ;;  %v7274_v35 = vmul.f32 %v15090_v1, %v18719_v36  ;;  %v7047_v24 = vmul.f32 1.442695, %v6922_v47  ;;  %7210 = vadd.xlane.f32.xlu0 %v7209_v20 }
 0x36f   :  { %14570 = vmatmul.mubr.msk.f32.vlgmr.msra.gmra.mxu1 %vm6668_vm2, %v7280_v7  ;;  %v6845_v51 = vpop.xlane.xlu0 %6844  ;;  %v18725_v7 = vld [vmem:[#allocation48_spill] sm:$0xff] }
 0x370   :  { %15101 = vpow2.f32 %v7047_v24  ;;  %14549 = vmatmul.mubr.msk.f32.vlgmr.msra.gmra.mxu0 %vm6668_vm2, %v7274_v35  ;;  %14580 = vmatpush3.msra.mxu1 %v18720_v4  ;;  %v6919_v34 = vsub.f32 %v17395_v9, %v6845_v51  ;;  %v18726_v24 = vld [vmem:[#allocation50_spill] sm:$0xff] }
 0x371   :  { %14559 = vmatpush3.msra.mxu0 %v18721_v40  ;;  %14581 = vmatprep.subr.mxu1 %v18552_v17 }
 0x372   :  { %v17723_v19 = vpop.eup %15091  ;;  %14560 = vmatprep.subr.mxu0 %v18552_v17  ;;  %14582 = vmatpush3.msra.mxu1 %v18722_v14  ;;  %v7041_v28 = vmul.f32 1.442695, %v6919_v34 }
 0x373   :  { %v17727_v56 = vpop.eup %15093  ;;  %14561 = vmatpush3.msra.mxu0 %v18723_v52  ;;  %v6860_v8 = vpop.xlane.xlu1 %6859  ;;  %v7224_v38 = vsel %vm6668_vm2, %v17723_v19, 0.0  ;;  %14562 = vmatprep.mubr.msk.f32.mxu0 %vm15414_vm1, %v18552_v17 }
 0x374   :  { %v15096_v9 = vpop.eup %15095  ;;  %15103 = vpow2.f32 %v7041_v28  ;;  %v6924_v55 = vsub.f32 %v17401_v58, %v6860_v8  ;;  %7225 = vadd.xlane.f32.xlu1 %v7224_v38  ;;  %14572 = vmatprep.subr.mxu0 %v18552_v17  ;;  %v7215_v2 = vsel %vm6668_vm2, %v17727_v56, 0.0 }
 0x375   :  { %v7278_v33 = vmul.f32 %v15096_v9, %v18724_v22  ;;  %7216 = vadd.xlane.f32.xlu0 %v7215_v2  ;;  %14583 = vmatprep.mubr.msk.f32.mxu1 %vm15414_vm1, %v18552_v17 }
 0x376   :  { %v17741_v47 = vpop.eup %15097  ;;  %v7051_v20 = vmul.f32 1.442695, %v6924_v55  ;;  %14593 = vmatprep.subr.mxu1 %v18552_v17 }
 0x377   :  { %14563 = vmatmul.mubr.msk.f32.vlgmr.msra.gmra.mxu0 %vm6668_vm2, %v7278_v33  ;;  %v7112_v58 = vpop.xlane.xlu1 %7111  ;;  %v6851_v1 = vpop.xlane.xlu0 %6850  ;;  %v7230_v53 = vsel %vm6668_vm2, %v17741_v47, 0.0 }
 0x378   :  { %15105 = vpow2.f32 %v7051_v20  ;;  %14573 = vmatpush3.msra.mxu0 %v18725_v7  ;;  %v6921_v36 = vsub.f32 %v17408_v29, %v6851_v1  ;;  %7231 = vadd.xlane.f32.xlu1 %v7230_v53 }
 0x379   :  { %14574 = vmatprep.subr.mxu0 %v18552_v17  ;;  %15107 = vrcp.f32 %v7112_v58  ;;  %14576 = vmatprep.mubr.msk.f32.mxu0 %vm15414_vm1, %v18552_v17 }
 0x37a   :  { %14575 = vmatpush3.msra.mxu0 %v18726_v24  ;;  %v7045_v51 = vmul.f32 1.442695, %v6921_v36  ;;  %v18727_v36 = vld [vmem:[#allocation60_spill] sm:$0xff] }
 0x37b   :  { %v17752_v35 = vpop.eup %15099  ;;  %v7118_v4 = vpop.xlane.xlu1 %7117  ;;  %14586 = vmatprep.subr.mxu0 %v18552_v17 }
 0x37c   :  { %v7221_v34 = vsel %vm6668_vm2, %v17752_v35, 0.0  ;;  %15109 = vpow2.f32 %v7045_v51 }
 0x37d   :  { %7222 = vadd.xlane.f32.xlu0 %v7221_v34  ;;  %v17758_v29 = vpop.eup %15101  ;;  %15111 = vrcp.f32 %v7118_v4  ;;  %v18728_v34 = vld [vmem:[#allocation62_spill] sm:$0xff] }
 0x37e   :  { %v7236_v40 = vsel %vm6668_vm2, %v17758_v29, 0.0 }
 0x37f   :  { %7237 = vadd.xlane.f32.xlu1 %v7236_v40  ;;  %v7124_v14 = vpop.xlane.xlu1 %7123  ;;  %v6857_v28 = vpop.xlane.xlu0 %6856 }
 0x380   :  { %15113 = vrcp.f32 %v7124_v14  ;;  %v6923_v52 = vsub.f32 %v17423_v43, %v6857_v28  ;;  %v18729_v28 = vld [vmem:[#allocation68_spill] sm:$0xff] }
 0x381   :  { %v17763_v8 = vpop.eup %15103 }
 0x382   :  { %v7049_v38 = vmul.f32 1.442695, %v6923_v52  ;;  %v7227_v9 = vsel %vm6668_vm2, %v17763_v8, 0.0  ;;  %v18730_v52 = vld [vmem:[#allocation69_spill] sm:$0xff] }
 0x383   :  { %v7130_v55 = vpop.xlane.xlu1 %7129  ;;  %7228 = vadd.xlane.f32.xlu0 %v7227_v9  ;;  %v7109_v2 = vpop.xlane.xlu0 %7108 }
 0x384   :  { %15115 = vpow2.f32 %v7049_v38 }
 0x385   :  { %v17767_v22 = vpop.eup %15105  ;;  %15117 = vrcp.f32 %v7130_v55 }
 0x386   :  { %v15108_v33 = vpop.eup %15107  ;;  %15119 = vrcp.f32 %v7109_v2  ;;  %v7242_v20 = vsel %vm6668_vm2, %v17767_v22, 0.0 }
 0x387   :  { %v7284_v43 = vmul.f32 %v15108_v33, %v17405_v6  ;;  %7243 = vadd.xlane.f32.xlu1 %v7242_v20  ;;  %v7136_v58 = vpop.xlane.xlu1 %7135  ;;  %v7115_v1 = vpop.xlane.xlu0 %7114 }
 0x388   :  { %15121 = vrcp.f32 %v7136_v58 }
 0x389   :  { %v17772_v53 = vpop.eup %15109  ;;  %15123 = vrcp.f32 %v7115_v1  ;;  %14584 = vmatmul.mubr.msk.f32.vlgmr.msra.gmra.mxu1 %vm6668_vm2, %v7284_v43  ;;  %v18732_v1 = vld [vmem:[#allocation75_spill] sm:$0xff] }
 0x38a   :  { %v15112_v7 = vpop.eup %15111  ;;  %14594 = vmatpush3.msra.mxu1 %v18727_v36  ;;  %14597 = vmatprep.mubr.msk.f32.mxu1 %vm15414_vm1, %v18552_v17  ;;  %v7233_v24 = vsel %vm6668_vm2, %v17772_v53, 0.0 }
 0x38b   :  { %v7288_v6 = vmul.f32 %v15112_v7, %v17415_v11  ;;  %14595 = vmatprep.subr.mxu1 %v18552_v17  ;;  %v7142_v51 = vpop.xlane.xlu1 %7141  ;;  %7234 = vadd.xlane.f32.xlu0 %v7233_v24  ;;  %v7121_v4 = vpop.xlane.xlu0 %7120  ;;  %v18733_v24 = vld [vmem:[#allocation80_spill] sm:$0xff] }
 0x38c   :  { %14596 = vmatpush3.msra.mxu1 %v18728_v34  ;;  %15125 = vrcp.f32 %v7121_v4  ;;  %v18736_v34 = vld [vmem:[#allocation58_spill] sm:$0xff] }
 0x38d   :  { %v15114_v40 = vpop.eup %15113  ;;  %14607 = vmatprep.subr.mxu1 %v18552_v17  ;;  %14598 = vmatmul.mubr.msk.f32.vlgmr.msra.gmra.mxu1 %vm6668_vm2, %v7288_v6  ;;  %15127 = vrcp.f32 %v7142_v51  ;;  %v18734_v6 = vld [vmem:[#allocation56_spill] sm:$0xff]  ;;  %v18735_v51 = vld [vmem:[#allocation81_spill] sm:$0xff] }
 0x38e   :  { %v7292_v14 = vmul.f32 %v15114_v40, %v17420_v31  ;;  %14608 = vmatpush3.msra.mxu1 %v18729_v28  ;;  %14611 = vmatprep.mubr.msk.f32.mxu1 %vm15414_vm1, %v18552_v17  ;;  %v18731_v31 = vld [vmem:[#allocation74_spill] sm:$0xff] }
 0x38f   :  { %14609 = vmatprep.subr.mxu1 %v18552_v17  ;;  %v7127_v11 = vpop.xlane.xlu0 %7126 }
 0x390   :  { %14610 = vmatpush3.msra.mxu1 %v18730_v52  ;;  %v7148_v9 = vpop.xlane.xlu1 %7147  ;;  %15129 = vrcp.f32 %v7127_v11  ;;  %v18738_v11 = vld [vmem:[#allocation64_spill] sm:$0xff] }
 0x391   :  { %v17791_v38 = vpop.eup %15115  ;;  %14621 = vmatprep.subr.mxu1 %v18552_v17  ;;  %14612 = vmatmul.mubr.msk.f32.vlgmr.msra.gmra.mxu1 %vm6668_vm2, %v7292_v14  ;;  %15131 = vrcp.f32 %v7148_v9  ;;  %v18739_v9 = vld [vmem:[#allocation87_spill] sm:$0xff] }
 0x392   :  { %v15118_v55 = vpop.eup %15117  ;;  %14622 = vmatpush3.msra.mxu1 %v18731_v31  ;;  %14625 = vmatprep.mubr.msk.f32.mxu1 %vm15414_vm1, %v18552_v17  ;;  %v7239_v2 = vsel %vm6668_vm2, %v17791_v38, 0.0  ;;  %v18740_v31 = vld [vmem:[#allocation66_spill] sm:$0xff] }
 0x393   :  { %v15120_v33 = vpop.eup %15119  ;;  %v7296_v20 = vmul.f32 %v15118_v55, %v17431_v48  ;;  %14623 = vmatprep.subr.mxu1 %v18552_v17  ;;  %7240 = vadd.xlane.f32.xlu0 %v7239_v2  ;;  %v7133_v43 = vpop.xlane.xlu0 %7132 }
 0x394   :  { %v7282_v58 = vmul.f32 %v15120_v33, %v17425_v54  ;;  %14624 = vmatpush3.msra.mxu1 %v18732_v1  ;;  %15133 = vrcp.f32 %v7133_v43  ;;  %v18741_v33 = vld [vmem:[#allocation71_spill] sm:$0xff]  ;;  %v18742_v43 = vld [vmem:[#allocation92_spill] sm:$0xff] }
 0x395   :  { %v15122_v7 = vpop.eup %15121  ;;  %14635 = vmatprep.subr.mxu1 %v18552_v17  ;;  %14626 = vmatmul.mubr.msk.f32.vlgmr.msra.gmra.mxu1 %vm6668_vm2, %v7296_v20  ;;  %v18743_v1 = vld [vmem:[#allocation72_spill] sm:$0xff] }
 0x396   :  { %v15124_v36 = vpop.eup %15123  ;;  %14577 = vmatmul.mubr.msk.f32.vlgmr.msra.gmra.mxu0 %vm6668_vm2, %v7282_v58  ;;  %14636 = vmatpush3.msra.mxu1 %v18733_v24  ;;  %v7300_v48 = vmul.f32 %v15122_v7, %v17440_v10  ;;  %v18744_v24 = vld [vmem:[#allocation93_spill] sm:$0xff] }
 0x397   :  { %14587 = vmatpush3.msra.mxu0 %v18734_v6  ;;  %14637 = vmatprep.subr.mxu1 %v18552_v17  ;;  %v7286_v54 = vmul.f32 %v15124_v36, %v17434_v27  ;;  %v7139_v4 = vpop.xlane.xlu0 %7138  ;;  %v18737_v27 = vld [vmem:[#allocation86_spill] sm:$0xff] }
 0x398   :  { %14588 = vmatprep.subr.mxu0 %v18552_v17  ;;  %14638 = vmatpush3.msra.mxu1 %v18735_v51  ;;  %v7154_v10 = vpop.xlane.xlu1 %7153  ;;  %15135 = vrcp.f32 %v7139_v4  ;;  %v18747_v4 = vld [vmem:[#allocation78_spill] sm:$0xff] }
 0x399   :  { %14589 = vmatpush3.msra.mxu0 %v18736_v34  ;;  %14590 = vmatprep.mubr.msk.f32.mxu0 %vm15414_vm1, %v18552_v17  ;;  %v15126_v40 = vpop.eup %15125  ;;  %15137 = vrcp.f32 %v7154_v10  ;;  %v18748_v34 = vld [vmem:[#allocation65_spill] sm:$0xff] }
 0x39a   :  { %14600 = vmatprep.subr.mxu0 %v18552_v17  ;;  %14639 = vmatprep.mubr.msk.f32.mxu1 %vm15414_vm1, %v18552_v17  ;;  %v15128_v14 = vpop.eup %15127  ;;  %v7290_v28 = vmul.f32 %v15126_v40, %v17443_v15 }
 0x39b   :  { %14649 = vmatprep.subr.mxu1 %v18552_v17  ;;  %14640 = vmatmul.mubr.msk.f32.vlgmr.msra.gmra.mxu1 %vm6668_vm2, %v7300_v48  ;;  %v7304_v52 = vmul.f32 %v15128_v14, %v17449_v57  ;;  %v18749_v14 = vld [vmem:[#allocation83_spill] sm:$0xff] }
 0x39c   :  { %14650 = vmatpush3.msra.mxu1 %v18737_v27  ;;  %14591 = vmatmul.mubr.msk.f32.vlgmr.msra.gmra.mxu0 %vm6668_vm2, %v7286_v54  ;;  %v7145_v55 = vpop.xlane.xlu0 %7144  ;;  %v18746_v54 = vld [vmem:[#allocation63_spill] sm:$0xff] }
 0x39d   :  { %14601 = vmatpush3.msra.mxu0 %v18738_v11  ;;  %14651 = vmatprep.subr.mxu1 %v18552_v17  ;;  %v15130_v2 = vpop.eup %15129  ;;  %15139 = vrcp.f32 %v7145_v55  ;;  %v18753_v55 = vld [vmem:[#allocation90_spill] sm:$0xff] }
 0x39e   :  { %14602 = vmatprep.subr.mxu0 %v18552_v17  ;;  %14652 = vmatpush3.msra.mxu1 %v18739_v9  ;;  %v15132_v15 = vpop.eup %15131  ;;  %v7294_v20 = vmul.f32 %v15130_v2, %v17456_v50  ;;  %v18752_v9 = vld [vmem:[#allocation73_spill] sm:$0xff] }
 0x39f   :  { %14603 = vmatpush3.msra.mxu0 %v18740_v31  ;;  %14604 = vmatprep.mubr.msk.f32.mxu0 %vm15414_vm1, %v18552_v17  ;;  %v7308_v58 = vmul.f32 %v15132_v15, %v17459_v16  ;;  %v18745_v16 = vld [vmem:[#allocation77_spill] sm:$0xff]  ;;  %v18754_v15 = vld [vmem:[#allocation76_spill] sm:$0xff] }
 0x3a0   :  { %14614 = vmatprep.subr.mxu0 %v18552_v17  ;;  %14653 = vmatprep.mubr.msk.f32.mxu1 %vm15414_vm1, %v18552_v17  ;;  %v7160_v57 = vpop.xlane.xlu1 %7159 }
 0x3a1   :  { %14663 = vmatprep.subr.mxu1 %v18552_v17  ;;  %14605 = vmatmul.mubr.msk.f32.vlgmr.msra.gmra.mxu0 %vm6668_vm2, %v7290_v28  ;;  %15141 = vrcp.f32 %v7160_v57  ;;  %v15134_v36 = vpop.eup %15133  ;;  %v18755_v57 = vld [vmem:[#allocation59_spill] sm:$0xff] }
 0x3a2   :  { %14615 = vmatpush3.msra.mxu0 %v18741_v33  ;;  %14654 = vmatmul.mubr.msk.f32.vlgmr.msra.gmra.mxu1 %vm6668_vm2, %v7304_v52  ;;  %v7298_v50 = vmul.f32 %v15134_v36, %v17463_v46  ;;  %v18751_v52 = vld [vmem:[#allocation89_spill] sm:$0xff] }
 0x3a3   :  { %14664 = vmatpush3.msra.mxu1 %v18742_v43  ;;  %14616 = vmatprep.subr.mxu0 %v18552_v17 }
 0x3a4   :  { %14665 = vmatprep.subr.mxu1 %v18552_v17  ;;  %14617 = vmatpush3.msra.mxu0 %v18743_v1  ;;  %v7151_v7 = vpop.xlane.xlu0 %7150 }
 0x3a5   :  { %14666 = vmatpush3.msra.mxu1 %v18744_v24  ;;  %14618 = vmatprep.mubr.msk.f32.mxu0 %vm15414_vm1, %v18552_v17  ;;  %15143 = vrcp.f32 %v7151_v7  ;;  %v15136_v6 = vpop.eup %15135  ;;  %v18758_v7 = vld [vmem:[#allocation152_spill] sm:$0xff]  ;;  %v18760_v24 = vld [vmem:[#allocation67_spill] sm:$0xff] }
 0x3a6   :  { %14628 = vmatprep.subr.mxu0 %v18552_v17  ;;  %14667 = vmatprep.mubr.msk.f32.mxu1 %vm15414_vm1, %v18552_v17  ;;  %v15138_v51 = vpop.eup %15137  ;;  %v7302_v46 = vmul.f32 %v15136_v6, %v17470_v13  ;;  %v18750_v13 = vld [vmem:[#allocation84_spill] sm:$0xff]  ;;  %v18761_v6 = vld [vmem:[#allocation70_spill] sm:$0xff] }
 0x3a7   :  { %14677 = vmatprep.subr.mxu1 %v18552_v17  ;;  %14619 = vmatmul.mubr.msk.f32.vlgmr.msra.gmra.mxu0 %vm6668_vm2, %v7294_v20  ;;  %v7312_v10 = vmul.f32 %v15138_v51, %v17473_v60 }
 0x3a8   :  { %14629 = vmatpush3.msra.mxu0 %v18745_v16  ;;  %14668 = vmatmul.mubr.msk.f32.vlgmr.msra.gmra.mxu1 %vm6668_vm2, %v7308_v58  ;;  %v7166_v48 = vpop.xlane.xlu1 %7165  ;;  %v18757_v58 = vld [vmem:[#allocation85_spill] sm:$0xff] }
 0x3a9   :  { %14630 = vmatprep.subr.mxu0 %v18552_v17  ;;  %14678 = vmatpush3.msra.mxu1 %v18746_v54  ;;  %15145 = vrcp.f32 %v7166_v48  ;;  %v18762_v54 = vld [vmem:[#allocation97_spill] sm:$0xff] }
 0x3aa   :  { %14631 = vmatpush3.msra.mxu0 %v18747_v4  ;;  %14679 = vmatprep.subr.mxu1 %v18552_v17  ;;  %v15140_v27 = vpop.eup %15139  ;;  %v18763_v4 = vld [vmem:[#allocation100_spill] sm:$0xff] }
 0x3ab   :  { %14632 = vmatprep.mubr.msk.f32.mxu0 %vm15414_vm1, %v18552_v17  ;;  %14642 = vmatprep.subr.mxu0 %v18552_v17  ;;  %v7306_v11 = vmul.f32 %v15140_v27, %v17480_v39 }
 0x3ac   :  { %14680 = vmatpush3.msra.mxu1 %v18748_v34  ;;  %14633 = vmatmul.mubr.msk.f32.vlgmr.msra.gmra.mxu0 %vm6668_vm2, %v7298_v50  ;;  %v7157_v40 = vpop.xlane.xlu0 %7156 }
 0x3ad   :  { %14643 = vmatpush3.msra.mxu0 %v18749_v14  ;;  %14646 = vmatprep.mubr.msk.f32.mxu0 %vm15414_vm1, %v18552_v17  ;;  %15147 = vrcp.f32 %v7157_v40  ;;  %v18765_v40 = vld [vmem:[#allocation82_spill] sm:$0xff] }
 0x3ae   :  { %14644 = vmatprep.subr.mxu0 %v18552_v17  ;;  %14681 = vmatprep.mubr.msk.f32.mxu1 %vm15414_vm1, %v18552_v17  ;;  %v15142_v28 = vpop.eup %15141 }
 0x3af   :  { %14645 = vmatpush3.msra.mxu0 %v18750_v13  ;;  %14691 = vmatprep.subr.mxu1 %v18552_v17  ;;  %v7316_v2 = vmul.f32 %v15142_v28, %v17485_v62  ;;  %v18756_v62 = vld [vmem:[#allocation61_spill] sm:$0xff] }
 0x3b0   :  { %14656 = vmatprep.subr.mxu0 %v18552_v17  ;;  %14647 = vmatmul.mubr.msk.f32.vlgmr.msra.gmra.mxu0 %vm6668_vm2, %v7302_v46  ;;  %v7172_v60 = vpop.xlane.xlu1 %7171  ;;  %v18764_v46 = vld [vmem:[#allocation79_spill] sm:$0xff] }
 0x3b1   :  { %14657 = vmatpush3.msra.mxu0 %v18751_v52  ;;  %14682 = vmatmul.mubr.msk.f32.vlgmr.msra.gmra.mxu1 %vm6668_vm2, %v7312_v10  ;;  %15149 = vrcp.f32 %v7172_v60  ;;  %v18766_v10 = vld [vmem:[#allocation108_spill] sm:$0xff]  ;;  %v18767_v60 = vld [vmem:[#allocation111_spill] sm:$0xff]  ;;  %v18769_v52 = vld [vmem:[#allocation94_spill] sm:$0xff] }
 0x3b2   :  { %14658 = vmatprep.subr.mxu0 %v18552_v17  ;;  %14692 = vmatpush3.msra.mxu1 %v18752_v9  ;;  %v15144_v31 = vpop.eup %15143  ;;  %v18770_v9 = vld [vmem:[#allocation120_spill] sm:$0xff] }
 0x3b3   :  { %14659 = vmatpush3.msra.mxu0 %v18753_v55  ;;  %14693 = vmatprep.subr.mxu1 %v18552_v17  ;;  %v7310_v20 = vmul.f32 %v15144_v31, %v17489_v37  ;;  %v18759_v37 = vld [vmem:[#allocation88_spill] sm:$0xff]  ;;  %v18771_v31 = vld [vmem:[#allocation122_spill] sm:$0xff] }
 0x3b4   :  { %14694 = vmatpush3.msra.mxu1 %v18754_v15  ;;  %14660 = vmatprep.mubr.msk.f32.mxu0 %vm15414_vm1, %v18552_v17  ;;  %v18772_v15 = vld [vmem:[#allocation103_spill] sm:$0xff] }
 0x3b5   :  { %14670 = vmatprep.subr.mxu0 %v18552_v17  ;;  %14661 = vmatmul.mubr.msk.f32.vlgmr.msra.gmra.mxu0 %vm6668_vm2, %v7306_v11  ;;  %v7163_v39 = vpop.xlane.xlu0 %7162 }
 0x3b6   :  { %14671 = vmatpush3.msra.mxu0 %v18755_v57  ;;  %14695 = vmatprep.mubr.msk.f32.mxu1 %vm15414_vm1, %v18552_v17  ;;  %15151 = vrcp.f32 %v7163_v39  ;;  %v15146_v33 = vpop.eup %15145  ;;  %v18773_v39 = vld [vmem:[#allocation105_spill] sm:$0xff]  ;;  %v18774_v57 = vld [vmem:[#allocation128_spill] sm:$0xff] }
 0x3b7   :  { %14672 = vmatprep.subr.mxu0 %v18552_v17  ;;  %14705 = vmatprep.subr.mxu1 %v18552_v17  ;;  %v7320_v36 = vmul.f32 %v15146_v33, %v18758_v7 }
 0x3b8   :  { %14673 = vmatpush3.msra.mxu0 %v18756_v62  ;;  %14696 = vmatmul.mubr.msk.f32.vlgmr.msra.gmra.mxu1 %vm6668_vm2, %v7316_v2  ;;  %v7178_v43 = vpop.xlane.xlu1 %7177 }
 0x3b9   :  { %14706 = vmatpush3.msra.mxu1 %v18757_v58  ;;  %14674 = vmatprep.mubr.msk.f32.mxu0 %vm15414_vm1, %v18552_v17  ;;  %15153 = vrcp.f32 %v7178_v43  ;;  %v18776_v58 = vld [vmem:[#allocation114_spill] sm:$0xff] }
 0x3ba   :  { %v15148_v1 = vpop.eup %15147  ;;  %14707 = vmatprep.subr.mxu1 %v18552_v17  ;;  %14684 = vmatprep.subr.mxu0 %v18552_v17 }
 0x3bb   :  { %14708 = vmatpush3.msra.mxu1 %v18759_v37  ;;  %14675 = vmatmul.mubr.msk.f32.vlgmr.msra.gmra.mxu0 %vm6668_vm2, %v7310_v20  ;;  %v7314_v16 = vmul.f32 %v15148_v1, %v17500_v45  ;;  %v18775_v20 = vld [vmem:[#allocation130_spill] sm:$0xff] }
 0x3bc   :  { %14685 = vmatpush3.msra.mxu0 %v18760_v24  ;;  %14709 = vmatprep.mubr.msk.f32.mxu1 %vm15414_vm1, %v18552_v17  ;;  %v7169_v50 = vpop.xlane.xlu0 %7168  ;;  %v18778_v24 = vld [vmem:[#allocation136_spill] sm:$0xff] }
 0x3bd   :  { %14686 = vmatprep.subr.mxu0 %v18552_v17  ;;  %14719 = vmatprep.subr.mxu1 %v18552_v17  ;;  %15155 = vrcp.f32 %v7169_v50 }
 0x3be   :  { %v15150_v48 = vpop.eup %15149  ;;  %14687 = vmatpush3.msra.mxu0 %v18761_v6  ;;  %14710 = vmatmul.mubr.msk.f32.vlgmr.msra.gmra.mxu1 %vm6668_vm2, %v7320_v36 }
 0x3bf   :  { %14720 = vmatpush3.msra.mxu1 %v18762_v54  ;;  %14688 = vmatprep.mubr.msk.f32.mxu0 %vm15414_vm1, %v18552_v17  ;;  %v7324_v51 = vmul.f32 %v15150_v48, %v17506_v23  ;;  %v18781_v48 = vld [vmem:[#allocation126_spill] sm:$0xff] }
 0x3c0   :  { %14721 = vmatprep.subr.mxu1 %v18552_v17  ;;  %14698 = vmatprep.subr.mxu0 %v18552_v17  ;;  %v7184_v45 = vpop.xlane.xlu1 %7183 }
 0x3c1   :  { %14722 = vmatpush3.msra.mxu1 %v18763_v4  ;;  %14689 = vmatmul.mubr.msk.f32.vlgmr.msra.gmra.mxu0 %vm6668_vm2, %v7314_v16  ;;  %15157 = vrcp.f32 %v7184_v45  ;;  %v18780_v16 = vld [vmem:[#allocation124_spill] sm:$0xff] }
 0x3c2   :  { %14699 = vmatpush3.msra.mxu0 %v18764_v46  ;;  %14723 = vmatprep.mubr.msk.f32.mxu1 %vm15414_vm1, %v18552_v17 }
 0x3c3   :  { %v15152_v34 = vpop.eup %15151  ;;  %14700 = vmatprep.subr.mxu0 %v18552_v17  ;;  %14733 = vmatprep.subr.mxu1 %v18552_v17 }
 0x3c4   :  { %v7318_v23 = vmul.f32 %v15152_v34, %v17518_v21  ;;  %14701 = vmatpush3.msra.mxu0 %v18765_v40  ;;  %14724 = vmatmul.mubr.msk.f32.vlgmr.msra.gmra.mxu1 %vm6668_vm2, %v7324_v51  ;;  %v18768_v21 = vld [vmem:[#allocation91_spill] sm:$0xff]  ;;  %v18782_v40 = vld [vmem:[#allocation98_spill] sm:$0xff] }
 0x3c5   :  { %14734 = vmatpush3.msra.mxu1 %v18766_v10  ;;  %14702 = vmatprep.mubr.msk.f32.mxu0 %vm15414_vm1, %v18552_v17  ;;  %v7175_v14 = vpop.xlane.xlu0 %7174  ;;  %v18784_v10 = vld [vmem:[#allocation132_spill] sm:$0xff] }
 0x3c6   :  { %v15154_v27 = vpop.eup %15153  ;;  %14735 = vmatprep.subr.mxu1 %v18552_v17  ;;  %14712 = vmatprep.subr.mxu0 %v18552_v17  ;;  %15159 = vrcp.f32 %v7175_v14 }
 0x3c7   :  { %v7328_v13 = vmul.f32 %v15154_v27, %v17522_v26  ;;  %14736 = vmatpush3.msra.mxu1 %v18767_v60  ;;  %14703 = vmatmul.mubr.msk.f32.vlgmr.msra.gmra.mxu0 %vm6668_vm2, %v7318_v23  ;;  %v18785_v27 = vld [vmem:[#allocation134_spill] sm:$0xff] }
 0x3c8   :  { %14713 = vmatpush3.msra.mxu0 %v18768_v21  ;;  %14737 = vmatprep.mubr.msk.f32.mxu1 %vm15414_vm1, %v18552_v17 }
 0x3c9   :  { %14714 = vmatprep.subr.mxu0 %v18552_v17  ;;  %14747 = vmatprep.subr.mxu1 %v18552_v17  ;;  %v7190_v28 = vpop.xlane.xlu1 %7189 }
 0x3ca   :  { %v15156_v11 = vpop.eup %15155  ;;  %14715 = vmatpush3.msra.mxu0 %v18769_v52  ;;  %14738 = vmatmul.mubr.msk.f32.vlgmr.msra.gmra.mxu1 %vm6668_vm2, %v7328_v13  ;;  %15161 = vrcp.f32 %v7190_v28  ;;  %v18787_v52 = vld [vmem:[#allocation95_spill] sm:$0xff] }
 0x3cb   :  { %v7322_v26 = vmul.f32 %v15156_v11, %v17529_v44  ;;  %14748 = vmatpush3.msra.mxu1 %v18770_v9  ;;  %14716 = vmatprep.mubr.msk.f32.mxu0 %vm15414_vm1, %v18552_v17  ;;  %v18786_v11 = vld [vmem:[#allocation104_spill] sm:$0xff] }
 0x3cc   :  { %14749 = vmatprep.subr.mxu1 %v18552_v17  ;;  %14726 = vmatprep.subr.mxu0 %v18552_v17  ;;  %v7181_v55 = vpop.xlane.xlu0 %7180 }
 0x3cd   :  { %14750 = vmatpush3.msra.mxu1 %v18771_v31  ;;  %15163 = vrcp.f32 %v7181_v55  ;;  %14717 = vmatmul.mubr.msk.f32.vlgmr.msra.gmra.mxu0 %vm6668_vm2, %v7322_v26  ;;  %v18788_v26 = vld [vmem:[#allocation106_spill] sm:$0xff]  ;;  %v18789_v31 = vld [vmem:[#allocation96_spill] sm:$0xff] }
 0x3ce   :  { %v15158_v2 = vpop.eup %15157  ;;  %14727 = vmatpush3.msra.mxu0 %v18772_v15  ;;  %14751 = vmatprep.mubr.msk.f32.mxu1 %vm15414_vm1, %v18552_v17 }
 0x3cf   :  { %v7332_v44 = vmul.f32 %v15158_v2, %v17540_v59  ;;  %14728 = vmatprep.subr.mxu0 %v18552_v17  ;;  %14761 = vmatprep.subr.mxu1 %v18552_v17 }
 0x3d0   :  { %14729 = vmatpush3.msra.mxu0 %v18773_v39  ;;  %14730 = vmatprep.mubr.msk.f32.mxu0 %vm15414_vm1, %v18552_v17 }
 0x3d1   :  { %14752 = vmatmul.mubr.msk.f32.vlgmr.msra.gmra.mxu1 %vm6668_vm2, %v7332_v44  ;;  %14740 = vmatprep.subr.mxu0 %v18552_v17 }
 0x3d2   :  { %14762 = vmatpush3.msra.mxu1 %v18774_v57  ;;  %14765 = vmatprep.mubr.msk.f32.mxu1 %vm15414_vm1, %v18552_v17 }
 0x3d3   :  { %v15160_v33 = vpop.eup %15159  ;;  %14763 = vmatprep.subr.mxu1 %v18552_v17 }
 0x3d4   :  { %v7326_v59 = vmul.f32 %v15160_v33, %v17554_v3  ;;  %14764 = vmatpush3.msra.mxu1 %v18775_v20  ;;  %v18777_v3 = vld [vmem:[#allocation117_spill] sm:$0xff]  ;;  %v18790_v33 = vld [vmem:[#allocation110_spill] sm:$0xff]  ;;  %v18792_v20 = vld [vmem:[#allocation112_spill] sm:$0xff] }
 0x3d5   :  { %14775 = vmatprep.subr.mxu1 %v18552_v17 }
 0x3d6   :  { %v7196_v62 = vpop.xlane.xlu1 %7195  ;;  %14731 = vmatmul.mubr.msk.f32.vlgmr.msra.gmra.mxu0 %vm6668_vm2, %v7326_v59  ;;  %v18791_v59 = vld [vmem:[#allocation101_spill] sm:$0xff] }
 0x3d7   :  { %v15162_v43 = vpop.eup %15161  ;;  %15165 = vrcp.f32 %v7196_v62  ;;  %14741 = vmatpush3.msra.mxu0 %v18776_v58  ;;  %14744 = vmatprep.mubr.msk.f32.mxu0 %vm15414_vm1, %v18552_v17  ;;  %v18793_v62 = vld [vmem:[#allocation102_spill] sm:$0xff] }
 0x3d8   :  { %v7336_v1 = vmul.f32 %v15162_v43, %v17558_v25  ;;  %14742 = vmatprep.subr.mxu0 %v18552_v17  ;;  %v18779_v25 = vld [vmem:[#allocation138_spill] sm:$0xff] }
 0x3d9   :  { %v7187_v7 = vpop.xlane.xlu0 %7186  ;;  %14743 = vmatpush3.msra.mxu0 %v18777_v3 }
 0x3da   :  { %v15164_v36 = vpop.eup %15163  ;;  %15167 = vrcp.f32 %v7187_v7  ;;  %14766 = vmatmul.mubr.msk.f32.vlgmr.msra.gmra.mxu1 %vm6668_vm2, %v7336_v1  ;;  %14754 = vmatprep.subr.mxu0 %v18552_v17 }
 0x3db   :  { %v7330_v37 = vmul.f32 %v15164_v36, %v17563_v42  ;;  %14776 = vmatpush3.msra.mxu1 %v18778_v24  ;;  %14779 = vmatprep.mubr.msk.f32.mxu1 %vm15414_vm1, %v18552_v17  ;;  %v18794_v36 = vld [vmem:[#allocation116_spill] sm:$0xff] }
 0x3dc   :  { %14777 = vmatprep.subr.mxu1 %v18552_v17 }
 0x3dd   :  { %14778 = vmatpush3.msra.mxu1 %v18779_v25  ;;  %14745 = vmatmul.mubr.msk.f32.vlgmr.msra.gmra.mxu0 %vm6668_vm2, %v7330_v37  ;;  %v18796_v37 = vld [vmem:[#allocation118_spill] sm:$0xff] }
 0x3de   :  { %v7202_v50 = vpop.xlane.xlu1 %7201  ;;  %14755 = vmatpush3.msra.mxu0 %v18780_v16  ;;  %14789 = vmatprep.subr.mxu1 %v18552_v17 }
 0x3df   :  { %15169 = vrcp.f32 %v7202_v50  ;;  %14756 = vmatprep.subr.mxu0 %v18552_v17  ;;  %14758 = vmatprep.mubr.msk.f32.mxu0 %vm15414_vm1, %v18552_v17  ;;  %v18797_v50 = vld [vmem:[#allocation109_spill] sm:$0xff] }
 0x3e0   :  { %v7193_v42 = vpop.xlane.xlu0 %7192  ;;  %14757 = vmatpush3.msra.mxu0 %v18781_v48 }
 0x3e1   :  { %15171 = vrcp.f32 %v7193_v42  ;;  %14768 = vmatprep.subr.mxu0 %v18552_v17 }
 0x3e4   :  { %v15166_v6 = vpop.eup %15165 }
 0x3e5   :  { %v7340_v54 = vmul.f32 %v15166_v6, %v17588_v30  ;;  %v7208_v51 = vpop.xlane.xlu1 %7207  ;;  %v17996_v45 = vpop.f32.mrf.mxu0  ;;  %v18783_v30 = vld [vmem:[#allocation99_spill] sm:$0xff] }
 0x3e6   :  { %15173 = vrcp.f32 %v7208_v51 }
 0x3e7   :  { %v15168_v4 = vpop.eup %15167  ;;  %v7199_v46 = vpop.xlane.xlu0 %7198  ;;  %14780 = vmatmul.mubr.msk.f32.vlgmr.msra.gmra.mxu1 %vm6668_vm2, %v7340_v54 }
 0x3e8   :  { %v14452_v34 = vpop.f32.mrf.mxu0  ;;  %v7334_v23 = vmul.f32 %v15168_v4, %v17593_v12  ;;  %15175 = vrcp.f32 %v7199_v46  ;;  %14790 = vmatpush3.msra.mxu1 %v18782_v40  ;;  %14793 = vmatprep.mubr.msk.f32.mxu1 %vm15414_vm1, %v18552_v17  ;;  %v18798_v46 = vld [vmem:[#allocation123_spill] sm:$0xff]  ;;  %v18800_v40 = vld [vmem:[#allocation125_spill] sm:$0xff] }
 0x3e9   :  { %14791 = vmatprep.subr.mxu1 %v18552_v17 }
 0x3ea   :  { %14759 = vmatmul.mubr.msk.f32.vlgmr.msra.gmra.mxu0 %vm6668_vm2, %v7334_v23  ;;  %14792 = vmatpush3.msra.mxu1 %v18783_v30  ;;  %v18799_v23 = vld [vmem:[#allocation113_spill] sm:$0xff] }
 0x3eb   :  { %14769 = vmatpush3.msra.mxu0 %v18784_v10  ;;  %14803 = vmatprep.subr.mxu1 %v18552_v17  ;;  %v18801_v10 = vld [vmem:[#allocation115_spill] sm:$0xff] }
 0x3ec   :  { %v15170_v14 = vpop.eup %15169  ;;  %14770 = vmatprep.subr.mxu0 %v18552_v17  ;;  %14772 = vmatprep.mubr.msk.f32.mxu0 %vm15414_vm1, %v18552_v17 }
 0x3ed   :  { %v7344_v12 = vmul.f32 %v15170_v14, %v17617_v0  ;;  %14771 = vmatpush3.msra.mxu0 %v18785_v27  ;;  %v7214_v13 = vpop.xlane.xlu1 %7213 }
 0x3ee   :  { %v15172_v60 = vpop.eup %15171  ;;  %15177 = vrcp.f32 %v7214_v13  ;;  %14782 = vmatprep.subr.mxu0 %v18552_v17 }
 0x3ef   :  { %v7338_v21 = vmul.f32 %v15172_v60, %v17621_v41  ;;  %v7205_v28 = vpop.xlane.xlu0 %7204  ;;  %14794 = vmatmul.mubr.msk.f32.vlgmr.msra.gmra.mxu1 %vm6668_vm2, %v7344_v12 }
 0x3f0   :  { %15179 = vrcp.f32 %v7205_v28  ;;  %14804 = vmatpush3.msra.mxu1 %v18786_v11  ;;  %14807 = vmatprep.mubr.msk.f32.mxu1 %vm15414_vm1, %v18552_v17  ;;  %v18802_v11 = vld [vmem:[#allocation131_spill] sm:$0xff] }
 0x3f1   :  { %14773 = vmatmul.mubr.msk.f32.vlgmr.msra.gmra.mxu0 %vm6668_vm2, %v7338_v21  ;;  %14805 = vmatprep.subr.mxu1 %v18552_v17  ;;  %v18021_v0 = vpop.f32.mrf.mxu1 }
 0x3f2   :  { %14783 = vmatpush3.msra.mxu0 %v18787_v52  ;;  %14806 = vmatpush3.msra.mxu1 %v18788_v26 }
 0x3f3   :  { %v15174_v41 = vpop.eup %15173  ;;  %14784 = vmatprep.subr.mxu0 %v18552_v17  ;;  %v14459_v9 = vpop.f32.mrf.mxu1  ;;  %14817 = vmatprep.subr.mxu1 %v18552_v17 }
 0x3f4   :  { %v7348_v55 = vmul.f32 %v15174_v41, %v17645_v18  ;;  %14785 = vmatpush3.msra.mxu0 %v18789_v31  ;;  %14786 = vmatprep.mubr.msk.f32.mxu0 %vm15414_vm1, %v18552_v17  ;;  %v18803_v41 = vld [vmem:[#allocation119_spill] sm:$0xff]  ;;  %v18805_v31 = vld [vmem:[#allocation121_spill] sm:$0xff] }
 0x3f5   :  { %v15176_v2 = vpop.eup %15175  ;;  %v7220_v15 = vpop.xlane.xlu1 %7219  ;;  %14796 = vmatprep.subr.mxu0 %v18552_v17 }
 0x3f6   :  { %v18032_v44 = vpop.f32.mrf.mxu0  ;;  %v7342_v39 = vmul.f32 %v15176_v2, %v17649_v49  ;;  %15181 = vrcp.f32 %v7220_v15  ;;  %14808 = vmatmul.mubr.msk.f32.vlgmr.msra.gmra.mxu1 %vm6668_vm2, %v7348_v55 }
 0x3f7   :  { %v7211_v57 = vpop.xlane.xlu0 %7210  ;;  %14818 = vmatpush3.msra.mxu1 %v18790_v33  ;;  %14821 = vmatprep.mubr.msk.f32.mxu1 %vm15414_vm1, %v18552_v17 }
 0x3f8   :  { %v14466_v18 = vpop.f32.mrf.mxu0  ;;  %15183 = vrcp.f32 %v7211_v57  ;;  %14787 = vmatmul.mubr.msk.f32.vlgmr.msra.gmra.mxu0 %vm6668_vm2, %v7342_v39  ;;  %14819 = vmatprep.subr.mxu1 %v18552_v17  ;;  %v18806_v39 = vld [vmem:[#allocation139_spill] sm:$0xff] }
 0x3f9   :  { %14797 = vmatpush3.msra.mxu0 %v18791_v59  ;;  %14820 = vmatpush3.msra.mxu1 %v18792_v20  ;;  %v18807_v18 = vld [vmem:[#allocation140_spill] sm:$0xff] }
 0x3fa   :  { %14798 = vmatprep.subr.mxu0 %v18552_v17  ;;  %14831 = vmatprep.subr.mxu1 %v18552_v17 }
 0x3fb   :  { %v15178_v49 = vpop.eup %15177  ;;  %14799 = vmatpush3.msra.mxu0 %v18793_v62  ;;  %14800 = vmatprep.mubr.msk.f32.mxu0 %vm15414_vm1, %v18552_v17 }
 0x3fc   :  { %v7352_v43 = vmul.f32 %v15178_v49, %v17671_v61  ;;  %14810 = vmatprep.subr.mxu0 %v18552_v17  ;;  %v18795_v61 = vld [vmem:[#allocation107_spill] sm:$0xff] }
 0x3fd   :  { %v15180_v58 = vpop.eup %15179  ;;  %v7226_v1 = vpop.xlane.xlu1 %7225 }
 0x3fe   :  { %v7346_v7 = vmul.f32 %v15180_v58, %v17675_v5  ;;  %15185 = vrcp.f32 %v7226_v1  ;;  %v7217_v3 = vpop.xlane.xlu0 %7216  ;;  %14822 = vmatmul.mubr.msk.f32.vlgmr.msra.gmra.mxu1 %vm6668_vm2, %v7352_v43  ;;  %v18809_v43 = vld [vmem:[#allocation129_spill] sm:$0xff]  ;;  %v18810_v1 = vld [vmem:[#allocation143_spill] sm:$0xff] }
 0x3ff   :  { %15187 = vrcp.f32 %v7217_v3  ;;  %14832 = vmatpush3.msra.mxu1 %v18794_v36  ;;  %14835 = vmatprep.mubr.msk.f32.mxu1 %vm15414_vm1, %v18552_v17  ;;  %v18811_v3 = vld [vmem:[#allocation144_spill] sm:$0xff] }
 0x400   :  { %14801 = vmatmul.mubr.msk.f32.vlgmr.msra.gmra.mxu0 %vm6668_vm2, %v7346_v7  ;;  %14833 = vmatprep.subr.mxu1 %v18552_v17 }
 0x401   :  { %14811 = vmatpush3.msra.mxu0 %v18795_v61  ;;  %14834 = vmatpush3.msra.mxu1 %v18796_v37  ;;  %v7232_v24 = vpop.xlane.xlu1 %7231  ;;  %v18812_v37 = vld [vmem:[#allocation135_spill] sm:$0xff] }
 0x402   :  { %14812 = vmatprep.subr.mxu0 %v18552_v17  ;;  %v18060_v5 = vpop.f32.mrf.mxu1  ;;  %15189 = vrcp.f32 %v7232_v24  ;;  %14814 = vmatprep.mubr.msk.f32.mxu0 %vm15414_vm1, %v18552_v17 }
 0x403   :  { %v15182_v25 = vpop.eup %15181  ;;  %14813 = vmatpush3.msra.mxu0 %v18797_v50  ;;  %14845 = vmatprep.subr.mxu1 %v18552_v17  ;;  %v18813_v50 = vld [vmem:[#allocation137_spill] sm:$0xff] }
 0x404   :  { %v7356_v16 = vmul.f32 %v15182_v25, %v17697_v32  ;;  %v14473_v42 = vpop.f32.mrf.mxu1  ;;  %14824 = vmatprep.subr.mxu0 %v18552_v17 }
 0x405   :  { %v15184_v48 = vpop.eup %15183 }
 0x406   :  { %v7223_v6 = vpop.xlane.xlu0 %7222  ;;  %v7350_v54 = vmul.f32 %v15184_v48, %v17701_v63  ;;  %v18069_v51 = vpop.f32.mrf.mxu0  ;;  %14836 = vmatmul.mubr.msk.f32.vlgmr.msra.gmra.mxu1 %vm6668_vm2, %v7356_v16 }
 0x407   :  { %15191 = vrcp.f32 %v7223_v6  ;;  %v18072_v4 = vpop.f32.mrf.mxu1  ;;  %14846 = vmatpush3.msra.mxu1 %v18798_v46  ;;  %14849 = vmatprep.mubr.msk.f32.mxu1 %vm15414_vm1, %v18552_v17 }
 0x408   :  { %14815 = vmatmul.mubr.msk.f32.vlgmr.msra.gmra.mxu0 %vm6668_vm2, %v7350_v54  ;;  %v14480_v32 = vpop.f32.mrf.mxu0  ;;  %14847 = vmatprep.subr.mxu1 %v18552_v17  ;;  %v7238_v34 = vpop.xlane.xlu1 %7237 }
 0x409   :  { %14825 = vmatpush3.msra.mxu0 %v18799_v23  ;;  %v14487_v63 = vpop.f32.mrf.mxu1  ;;  %14848 = vmatpush3.msra.mxu1 %v18800_v40  ;;  %15193 = vrcp.f32 %v7238_v34  ;;  %v18815_v32 = vld [vmem:[#allocation142_spill] sm:$0xff] }
 0x40a   :  { %14826 = vmatprep.subr.mxu0 %v18552_v17  ;;  %14828 = vmatprep.mubr.msk.f32.mxu0 %vm15414_vm1, %v18552_v17 }
 0x40b   :  { %v15186_v30 = vpop.eup %15185  ;;  %14827 = vmatpush3.msra.mxu0 %v18801_v10  ;;  %v18085_v14 = vpop.f32.mrf.mxu1  ;;  %14859 = vmatprep.subr.mxu1 %v18552_v17 }
 0x40c   :  { %v15188_v12 = vpop.eup %15187  ;;  %v7360_v27 = vmul.f32 %v15186_v30, %v17723_v19  ;;  %v7229_v13 = vpop.xlane.xlu0 %7228  ;;  %14838 = vmatprep.subr.mxu0 %v18552_v17 }
 0x40d   :  { %v7354_v60 = vmul.f32 %v15188_v12, %v17727_v56  ;;  %v14501_v21 = vpop.f32.mrf.mxu1  ;;  %15195 = vrcp.f32 %v7229_v13  ;;  %v18804_v56 = vld [vmem:[#allocation133_spill] sm:$0xff] }
 0x40e   :  { %14850 = vmatmul.mubr.msk.f32.vlgmr.msra.gmra.mxu1 %vm6668_vm2, %v7360_v27  ;;  %v12119_v13 = vld [vmem:[#allocation10 + $0x58] sm:$0xff]  ;;  %v12118_v21 = vld [vmem:[#allocation10 + $0x50] sm:$0xff] }
 0x40f   :  { %v15190_v28 = vpop.eup %15189  ;;  %14829 = vmatmul.mubr.msk.f32.vlgmr.msra.gmra.mxu0 %vm6668_vm2, %v7354_v60  ;;  %14860 = vmatpush3.msra.mxu1 %v18802_v11 }
 0x410   :  { %v7364_v52 = vmul.f32 %v15190_v28, %v17741_v47  ;;  %v18095_v26 = vpop.f32.mrf.mxu0  ;;  %14839 = vmatpush3.msra.mxu0 %v18803_v41  ;;  %14861 = vmatprep.subr.mxu1 %v18552_v17  ;;  %v7244_v19 = vpop.xlane.xlu1 %7243  ;;  %v12117_v28 = vld [vmem:[#allocation10 + $0x48] sm:$0xff] }
 0x411   :  { %v18099_v9 = vpop.f32.mrf.mxu1  ;;  %14840 = vmatprep.subr.mxu0 %v18552_v17  ;;  %14862 = vmatpush3.msra.mxu1 %v18804_v56  ;;  %15197 = vrcp.f32 %v7244_v19 }
 0x412   :  { %v14494_v55 = vpop.f32.mrf.mxu0  ;;  %14841 = vmatpush3.msra.mxu0 %v18805_v31  ;;  %14863 = vmatprep.mubr.msk.f32.mxu1 %vm15414_vm1, %v18552_v17 }
 0x413   :  { %v14515_v2 = vpop.f32.mrf.mxu1  ;;  %14873 = vmatprep.subr.mxu1 %v18552_v17  ;;  %14864 = vmatmul.mubr.msk.f32.vlgmr.msra.gmra.mxu1 %vm6668_vm2, %v7364_v52 }
 0x414   :  { %v15192_v47 = vpop.eup %15191  ;;  %14874 = vmatpush3.msra.mxu1 %v18806_v39  ;;  %v7235_v57 = vpop.xlane.xlu0 %7234  ;;  %14842 = vmatprep.mubr.msk.f32.mxu0 %vm15414_vm1, %v18552_v17 }
 0x415   :  { %v7358_v15 = vmul.f32 %v15192_v47, %v17752_v35  ;;  %14875 = vmatprep.subr.mxu1 %v18552_v17  ;;  %15199 = vrcp.f32 %v7235_v57  ;;  %14852 = vmatprep.subr.mxu0 %v18552_v17  ;;  %v18808_v35 = vld [vmem:[#allocation127_spill] sm:$0xff] }
 0x416   :  { %v15194_v33 = vpop.eup %15193  ;;  %14876 = vmatpush3.msra.mxu1 %v18807_v18  ;;  %14877 = vmatprep.mubr.msk.f32.mxu1 %vm15414_vm1, %v18552_v17 }
 0x417   :  { %14843 = vmatmul.mubr.msk.f32.vlgmr.msra.gmra.mxu0 %vm6668_vm2, %v7358_v15  ;;  %v7368_v59 = vmul.f32 %v15194_v33, %v17758_v29  ;;  %v18117_v20 = vpop.f32.mrf.mxu1  ;;  %14887 = vmatprep.subr.mxu1 %v18552_v17 }
 0x418   :  { %14853 = vmatpush3.msra.mxu0 %v18808_v35  ;;  %v18122_v49 = vpop.f32.mrf.mxu0  ;;  %14856 = vmatprep.mubr.msk.f32.mxu0 %vm15414_vm1, %v18552_v17 }
 0x419   :  { %14854 = vmatprep.subr.mxu0 %v18552_v17  ;;  %v14529_v62 = vpop.f32.mrf.mxu1  ;;  %14878 = vmatmul.mubr.msk.f32.vlgmr.msra.gmra.mxu1 %vm6668_vm2, %v7368_v59 }
 0x41a   :  { %14855 = vmatpush3.msra.mxu0 %v18809_v43  ;;  %v15196_v58 = vpop.eup %15195  ;;  %v14508_v29 = vpop.f32.mrf.mxu0  ;;  %14888 = vmatpush3.msra.mxu1 %v18810_v1 }
 0x41b   :  { %v7362_v7 = vmul.f32 %v15196_v58, %v17763_v8  ;;  %14889 = vmatprep.subr.mxu1 %v18552_v17  ;;  %14866 = vmatprep.subr.mxu0 %v18552_v17 }
 0x41c   :  { %14890 = vmatpush3.msra.mxu1 %v18811_v3  ;;  %v7241_v36 = vpop.xlane.xlu0 %7240  ;;  %14891 = vmatprep.mubr.msk.f32.mxu1 %vm15414_vm1, %v18552_v17 }
 0x41d   :  { %15201 = vrcp.f32 %v7241_v36  ;;  %14857 = vmatmul.mubr.msk.f32.vlgmr.msra.gmra.mxu0 %vm6668_vm2, %v7362_v7 }
 0x41e   :  { %v15198_v61 = vpop.eup %15197  ;;  %14867 = vmatpush3.msra.mxu0 %v18812_v37  ;;  %14870 = vmatprep.mubr.msk.f32.mxu0 %vm15414_vm1, %v18552_v17 }
 0x41f   :  { %v7372_v8 = vmul.f32 %v15198_v61, %v17767_v22  ;;  %v18142_v24 = vpop.f32.mrf.mxu1  ;;  %14868 = vmatprep.subr.mxu0 %v18552_v17  ;;  %v18814_v22 = vld [vmem:[#allocation141_spill] sm:$0xff] }
 0x420   :  { %v18145_v25 = vpop.f32.mrf.mxu0  ;;  %14869 = vmatpush3.msra.mxu0 %v18813_v50 }
 0x421   :  { %v14543_v16 = vpop.f32.mrf.mxu1  ;;  %14892 = vmatmul.mubr.msk.f32.vlgmr.msra.gmra.mxu1 %vm6668_vm2, %v7372_v8  ;;  %14880 = vmatprep.subr.mxu0 %v18552_v17 }
 0x422   :  { %v15200_v42 = vpop.eup %15199  ;;  %v14522_v48 = vpop.f32.mrf.mxu0 }
 0x423   :  { %v7366_v6 = vmul.f32 %v15200_v42, %v17772_v53 }
 0x425   :  { %14871 = vmatmul.mubr.msk.f32.vlgmr.msra.gmra.mxu0 %vm6668_vm2, %v7366_v6 }
 0x426   :  { %14881 = vmatpush3.msra.mxu0 %v18814_v22  ;;  %14884 = vmatprep.mubr.msk.f32.mxu0 %vm15414_vm1, %v18552_v17 }
 0x427   :  { %v8537_v54 = vpop.f32.mrf.mxu1  ;;  %14882 = vmatprep.subr.mxu0 %v18552_v17 }
 0x428   :  { %v18156_v46 = vpop.f32.mrf.mxu0  ;;  %14883 = vmatpush3.msra.mxu0 %v18815_v32 }
 0x429   :  { %v14557_v34 = vpop.f32.mrf.mxu1  ;;  %14894 = vmatprep.subr.mxu0 %v12119_v13 }
 0x42a   :  { %v15202_v23 = vpop.eup %15201  ;;  %v14536_v63 = vpop.f32.mrf.mxu0 }
 0x42b   :  { %v7370_v40 = vmul.f32 %v15202_v23, %v17791_v38  ;;  %v12116_v38 = vld [vmem:[#allocation10 + $0x40] sm:$0xff] }
 0x42d   :  { %14885 = vmatmul.mubr.msk.f32.vlgmr.msra.gmra.mxu0 %vm6668_vm2, %v7370_v40 }
 0x42e   :  { %14895 = vmatpush3.msra.mxu0 %v12119_v13 }
 0x42f   :  { %v8683_v53 = vpop.f32.mrf.mxu1  ;;  %14896 = vmatprep.subr.mxu0 %v12118_v21 }
 0x430   :  { %v18161_v30 = vpop.f32.mrf.mxu0  ;;  %v12046_v10 = vadd.f32 %v8683_v53, %v18021_v0  ;;  %14897 = vmatpush3.msra.mxu0 %v12118_v21 }
 0x431   :  { %v14571_v12 = vpop.f32.mrf.mxu1  ;;  %14898 = vmatprep.subr.mxu0 %v12117_v28 }
 0x432   :  { %v14550_v27 = vpop.f32.mrf.mxu0  ;;  %14899 = vmatpush3.msra.mxu0 %v12117_v28 }
 0x433   :  { %14900 = vmatprep.subr.mxu0 %v12116_v38 }
 0x434   :  { %14901 = vmatpush3.msra.mxu0 %v12116_v38 }
 0x437   :  { %v18164_v17 = vpop.f32.mrf.mxu0 }
 0x439   :  { %v14564_v60 = vpop.f32.mrf.mxu0 }
 0x449   :  { %v8829_v11 = vpop.f32.mrf.mxu1 }
 0x44a   :  { %v12048_v48 = vadd.f32 %v8829_v11, %v18060_v5 }
 0x44b   :  { %v14585_v52 = vpop.f32.mrf.mxu1 }
 0x44d   :  { %v8975_v0 = vpop.f32.mrf.mxu1 }
 0x44e   :  { %v12050_v23 = vadd.f32 %v8975_v0, %v18072_v4 }
 0x44f   :  { %v14599_v41 = vpop.f32.mrf.mxu1 }
 0x451   :  { %v9121_v19 = vpop.f32.mrf.mxu1 }
 0x453   :  { %v14613_v56 = vpop.f32.mrf.mxu1 }
 0x455   :  { %v9267_v55 = vpop.f32.mrf.mxu1 }
 0x456   :  { %v18166_v31 = vpop.f32.mrf.mxu0  ;;  %v12054_v38 = vadd.f32 %v9267_v55, %v18099_v9 }
 0x457   :  { %v14627_v47 = vpop.f32.mrf.mxu1 }
 0x458   :  { %v14578_v2 = vpop.f32.mrf.mxu0 }
 0x45b   :  { %v9413_v15 = vpop.f32.mrf.mxu1 }
 0x45c   :  { %v18168_v39 = vpop.f32.mrf.mxu0 }
 0x45d   :  { %v14641_v57 = vpop.f32.mrf.mxu1 }
 0x45e   :  { %v14592_v33 = vpop.f32.mrf.mxu0 }
 0x461   :  { %v9048_v18 = vpop.f32.mrf.mxu0 }
 0x462   :  { %v9559_v59 = vpop.f32.mrf.mxu1  ;;  %v12051_v4 = vadd.f32 %v9048_v18, %v18095_v26 }
 0x463   :  { %v14606_v35 = vpop.f32.mrf.mxu0  ;;  %v12058_v55 = vadd.f32 %v9559_v59, %v18142_v24  ;;  %v12045_v24 = vadd.f32 %v18164_v17, %v17996_v45 }
 0x464   :  { %v14655_v62 = vpop.f32.mrf.mxu1 }
 0x467   :  { %v18170_v43 = vpop.f32.mrf.mxu0 }
 0x468   :  { %v9705_v58 = vpop.f32.mrf.mxu1 }
 0x469   :  { %v12060_v29 = vadd.f32 %v9705_v58, %v8537_v54  ;;  %v14620_v1 = vpop.f32.mrf.mxu0 }
 0x46a   :  { %v14669_v7 = vpop.f32.mrf.mxu1 }
 0x46c   :  { %v18172_v3 = vpop.f32.mrf.mxu0 }
 0x46e   :  { %v14634_v36 = vpop.f32.mrf.mxu0 }
 0x470   :  { %v18174_v61 = vpop.f32.mrf.mxu0 }
 0x471   :  { %v9851_v37 = vpop.f32.mrf.mxu1 }
 0x472   :  { %v12062_v8 = vadd.f32 %v12046_v10, %v9851_v37  ;;  %v14648_v50 = vpop.f32.mrf.mxu0  ;;  %v12052_v10 = vadd.f32 %v9121_v19, %v18085_v14  ;;  %v12056_v14 = vadd.f32 %v9413_v15, %v18117_v20 }
 0x473   :  { %v14683_v16 = vpop.f32.mrf.mxu1 }
 0x475   :  { %v18176_v42 = vpop.f32.mrf.mxu0 }
 0x477   :  { %v14662_v6 = vpop.f32.mrf.mxu0 }
 0x478   :  { %v9997_v22 = vpop.f32.mrf.mxu1 }
 0x479   :  { %v12064_v32 = vadd.f32 %v12048_v48, %v9997_v22 }
 0x47a   :  { %v14697_v34 = vpop.f32.mrf.mxu1 }
 0x47b   :  { %v9778_v54 = vpop.f32.mrf.mxu0 }
 0x47c   :  { %v12061_v22 = vadd.f32 %v12045_v24, %v9778_v54 }
 0x47d   :  { %v14676_v63 = vpop.f32.mrf.mxu0 }
 0x47e   :  { %v10143_v40 = vpop.f32.mrf.mxu1 }
 0x47f   :  { %v18180_v53 = vadd.f32 %v12050_v23, %v10143_v40  ;;  %v18209_v40 = vld [vmem:[#allocation11 + $0x6] ss:$0 sm:$0xff] }
 0x480   :  { %v14711_v12 = vpop.f32.mrf.mxu1 }
 0x481   :  { %v9924_v27 = vpop.f32.mrf.mxu0 }
 0x483   :  { %v14690_v13 = vpop.f32.mrf.mxu0 }
 0x484   :  { %v10289_v60 = vpop.f32.mrf.mxu1 }
 0x485   :  { %v18183_v21 = vadd.f32 %v12052_v10, %v10289_v60  ;;  %v12047_v60 = vadd.f32 %v18166_v31, %v18032_v44 }
 0x486   :  { %v14725_v5 = vpop.f32.mrf.mxu1 }
 0x487   :  { %v10070_v28 = vpop.f32.mrf.mxu0  ;;  %v12063_v17 = vadd.f32 %v12047_v60, %v9924_v27 }
 0x489   :  { %v14704_v11 = vpop.f32.mrf.mxu0 }
 0x48a   :  { %v10435_v52 = vpop.f32.mrf.mxu1 }
 0x48b   :  { %v18186_v41 = vadd.f32 %v12054_v38, %v10435_v52 }
 0x48c   :  { %v14739_v0 = vpop.f32.mrf.mxu1 }
 0x48d   :  { %v10216_v56 = vpop.f32.mrf.mxu0  ;;  %v12049_v0 = vadd.f32 %v18168_v39, %v18069_v51 }
 0x48e   :  { %v18189_v47 = vadd.f32 %v12051_v4, %v10216_v56 }
 0x48f   :  { %v14718_v2 = vpop.f32.mrf.mxu0  ;;  %v12065_v31 = vadd.f32 %v12049_v0, %v10070_v28  ;;  %v15238_v0 = vld [vmem:[#allocation2] sm:$0xff] }
 0x491   :  { %v10581_v19 = vpop.f32.mrf.mxu1 }
 0x492   :  { %v18192_v57 = vadd.f32 %v12056_v14, %v10581_v19 }
 0x493   :  { %v14753_v33 = vpop.f32.mrf.mxu1 }
 0x496   :  { %v18194_v35 = vpop.f32.mrf.mxu0 }
 0x498   :  { %v14732_v9 = vpop.f32.mrf.mxu0 }
 0x49a   :  { %v10727_v62 = vpop.f32.mrf.mxu1 }
 0x49b   :  { %v18197_v58 = vadd.f32 %v12058_v55, %v10727_v62 }
 0x49c   :  { %v14767_v26 = vpop.f32.mrf.mxu1 }
 0x49d   :  { %v18199_v18 = vpop.f32.mrf.mxu0  ;;  %v12053_v26 = vadd.f32 %v18170_v43, %v18122_v49  ;;  %v12055_v49 = vadd.f32 %v18172_v3, %v18145_v25  ;;  %v12057_v25 = vadd.f32 %v18174_v61, %v18156_v46 }
 0x49f   :  { %v14746_v1 = vpop.f32.mrf.mxu0 }
 0x4a7   :  { %v10873_v7 = vpop.f32.mrf.mxu1 }
 0x4a8   :  { %v18201_v36 = vadd.f32 %v12060_v29, %v10873_v7 }
 0x4a9   :  { %v14781_v20 = vpop.f32.mrf.mxu1 }
 0x4aa   :  { %v18203_v15 = vpop.f32.mrf.mxu0  ;;  %v12069_v20 = vadd.f32 %v12053_v26, %v18194_v35  ;;  %v12071_v35 = vadd.f32 %v12055_v49, %v18199_v18 }
 0x4ab   :  { %v12073_v18 = vadd.f32 %v12057_v25, %v18203_v15  ;;  %v15246_v25 = vld [vmem:[#allocation2 + $0x40] sm:$0xff] }
 0x4ac   :  { %v14760_v37 = vpop.f32.mrf.mxu0 }
 0x4af   :  { %v11019_v50 = vpop.f32.mrf.mxu1 }
 0x4b0   :  { %v12078_v34 = vadd.f32 %v12062_v8, %v11019_v50 }
 0x4b1   :  { %v18205_v16 = vpop.f32.mrf.mxu0  ;;  %v14795_v48 = vpop.f32.mrf.mxu1 }
 0x4b2   :  { %v12100_v13 = vadd.f32 %v18209_v40, %v12078_v34 }
 0x4b3   :  { %v14774_v6 = vpop.f32.mrf.mxu0 }
 0x4b6   :  { %v11165_v59 = vpop.f32.mrf.mxu1 }
 0x4b7   :  { %v12080_v8 = vadd.f32 %v12064_v32, %v11165_v59 }
 0x4b8   :  { %v10946_v23 = vpop.f32.mrf.mxu0  ;;  %v14809_v63 = vpop.f32.mrf.mxu1 }
 0x4b9   :  { %v12077_v29 = vadd.f32 %v12061_v22, %v10946_v23  ;;  %v12102_v4 = vadd.f32 %v18209_v40, %v12080_v8  ;;  %v12059_v8 = vadd.f32 %v18176_v42, %v18161_v30  ;;  %v18266_v30 = vld [vmem:[#allocation11 + $0x7] ss:$0 sm:$0xff] }
 0x4ba   :  { %v14788_v12 = vpop.f32.mrf.mxu0 }
 0x4bb   :  { %v12099_v10 = vadd.f32 %v18209_v40, %v12077_v29  ;;  %v12075_v46 = vadd.f32 %v12059_v8, %v18205_v16  ;;  %v15237_v16 = vld [vmem:[#allocation2 + $0x8] sm:$0xff] }
 0x4bd   :  { %14902 = vmatprep.mubr.msk.f32.mxu0 %vm270_vm0, %v12099_v10 }
 0x4be   :  { %14903 = vmatmul.mubr.msk.f32.vlgmr.msra.gmra.mxu0 %vm270_vm0, %v12100_v13  ;;  %v11311_v45 = vpop.f32.mrf.mxu1 }
 0x4bf   :  { %v12082_v27 = vadd.f32 %v18180_v53, %v11311_v45 }
 0x4c0   :  { %v11092_v54 = vpop.f32.mrf.mxu0  ;;  %v14823_v5 = vpop.f32.mrf.mxu1 }
 0x4c1   :  { %v12079_v38 = vadd.f32 %v12063_v17, %v11092_v54  ;;  %v12104_v33 = vadd.f32 %v18209_v40, %v12082_v27 }
 0x4c2   :  { %v14802_v11 = vpop.f32.mrf.mxu0 }
 0x4c3   :  { %v12101_v52 = vadd.f32 %v18209_v40, %v12079_v38 }
 0x4c5   :  { %14905 = vmatprep.mubr.msk.f32.mxu0 %vm270_vm0, %v12101_v52 }
 0x4c6   :  { %14906 = vmatmul.mubr.msk.f32.gmra.mxu0 %vm270_vm0, %v12102_v4  ;;  %v11457_v44 = vpop.f32.mrf.mxu1 }
 0x4c7   :  { %v12084_v39 = vadd.f32 %v18183_v21, %v11457_v44 }
 0x4c8   :  { %v11238_v32 = vpop.f32.mrf.mxu0  ;;  %v14837_v56 = vpop.f32.mrf.mxu1 }
 0x4c9   :  { %v12081_v2 = vadd.f32 %v12065_v31, %v11238_v32  ;;  %v12106_v1 = vadd.f32 %v18209_v40, %v12084_v39 }
 0x4ca   :  { %v14816_v14 = vpop.f32.mrf.mxu0 }
 0x4cb   :  { %v12103_v19 = vadd.f32 %v18209_v40, %v12081_v2  ;;  %v15239_v2 = vld [vmem:[#allocation2 + $0x18] sm:$0xff] }
 0x4cd   :  { %14908 = vmatprep.mubr.msk.f32.mxu0 %vm270_vm0, %v12103_v19 }
 0x4ce   :  { %14909 = vmatmul.mubr.msk.f32.gmra.mxu0 %vm270_vm0, %v12104_v33  ;;  %v11603_v51 = vpop.f32.mrf.mxu1  ;;  %v15240_v33 = vld [vmem:[#allocation2 + $0x10] sm:$0xff] }
 0x4cf   :  { %v11384_v9 = vpop.f32.mrf.mxu0  ;;  %v12086_v21 = vadd.f32 %v18186_v41, %v11603_v51 }
 0x4d0   :  { %v12083_v28 = vadd.f32 %v18189_v47, %v11384_v9  ;;  %v14851_v55 = vpop.f32.mrf.mxu1 }
 0x4d1   :  { %v14830_v53 = vpop.f32.mrf.mxu0  ;;  %v12108_v43 = vadd.f32 %v18209_v40, %v12086_v21 }
 0x4d2   :  { %v12105_v62 = vadd.f32 %v18209_v40, %v12083_v28 }
 0x4d3   :  { %v11749_v7 = vpop.f32.mrf.mxu1 }
 0x4d4   :  { %14911 = vmatprep.mubr.msk.f32.mxu0 %vm270_vm0, %v12105_v62  ;;  %v12088_v41 = vadd.f32 %v18192_v57, %v11749_v7  ;;  %v15241_v62 = vld [vmem:[#allocation2 + $0x28] sm:$0xff]  ;;  %v15242_v7 = vld [vmem:[#allocation2 + $0x20] sm:$0xff] }
 0x4d5   :  { %v14865_v37 = vpop.f32.mrf.mxu1  ;;  %14912 = vmatmul.mubr.msk.f32.gmra.mxu0 %vm270_vm0, %v12106_v1 }
 0x4d6   :  { %v12110_v29 = vadd.f32 %v18209_v40, %v12088_v41 }
 0x4d7   :  { %v11530_v47 = vpop.f32.mrf.mxu0 }
 0x4d8   :  { %v12085_v50 = vadd.f32 %v12069_v20, %v11530_v47 }
 0x4d9   :  { %v14844_v48 = vpop.f32.mrf.mxu0  ;;  %v11895_v24 = vpop.f32.mrf.mxu1 }
 0x4da   :  { %v12107_v6 = vadd.f32 %v18209_v40, %v12085_v50  ;;  %v12090_v57 = vadd.f32 %v18197_v58, %v11895_v24 }
 0x4db   :  { %v14879_v59 = vpop.f32.mrf.mxu1 }
 0x4dc   :  { %14914 = vmatprep.mubr.msk.f32.mxu0 %vm270_vm0, %v12107_v6  ;;  %v12112_v17 = vadd.f32 %v18209_v40, %v12090_v57  ;;  %v15243_v6 = vld [vmem:[#allocation2 + $0x38] sm:$0xff] }
 0x4dd   :  { %14915 = vmatmul.mubr.msk.f32.gmra.mxu0 %vm270_vm0, %v12108_v43  ;;  %v11676_v22 = vpop.f32.mrf.mxu0  ;;  %v15244_v43 = vld [vmem:[#allocation2 + $0x30] sm:$0xff] }
 0x4de   :  { %v12087_v34 = vadd.f32 %v12071_v35, %v11676_v22 }
 0x4df   :  { %v14858_v23 = vpop.f32.mrf.mxu0 }
 0x4e0   :  { %v12109_v63 = vadd.f32 %v18209_v40, %v12087_v34 }
 0x4e1   :  { %v12041_v12 = vpop.f32.mrf.mxu1 }
 0x4e2   :  { %14917 = vmatprep.mubr.msk.f32.mxu0 %vm270_vm0, %v12109_v63  ;;  %v12092_v61 = vadd.f32 %v18201_v36, %v12041_v12  ;;  %v15245_v63 = vld [vmem:[#allocation2 + $0x48] sm:$0xff] }
 0x4e3   :  { %v14893_v3 = vpop.f32.mrf.mxu1  ;;  %14918 = vmatmul.mubr.msk.f32.gmra.mxu0 %vm270_vm0, %v12110_v29 }
 0x4e4   :  { %v12114_v38 = vadd.f32 %v18209_v40, %v12092_v61 }
 0x4e5   :  { %v11822_v10 = vpop.f32.mrf.mxu0 }
 0x4e6   :  { %v12089_v13 = vadd.f32 %v12073_v18, %v11822_v10 }
 0x4e7   :  { %v14872_v60 = vpop.f32.mrf.mxu0 }
 0x4e8   :  { %v12111_v45 = vadd.f32 %v18209_v40, %v12089_v13 }
 0x4ea   :  { %14920 = vmatprep.mubr.msk.f32.mxu0 %vm270_vm0, %v12111_v45  ;;  %v15247_v45 = vld [vmem:[#allocation2 + $0x58] sm:$0xff] }
 0x4eb   :  { %14921 = vmatmul.mubr.msk.f32.gmra.mxu0 %vm270_vm0, %v12112_v17 }
 0x4ed   :  { %v11968_v15 = vpop.f32.mrf.mxu0 }
 0x4ee   :  { %v12091_v58 = vadd.f32 %v12075_v46, %v11968_v15  ;;  %v15248_v46 = vld [vmem:[#allocation2 + $0x50] sm:$0xff] }
 0x4ef   :  { %v14886_v54 = vpop.f32.mrf.mxu0 }
 0x4f0   :  { %v12113_v5 = vadd.f32 %v18209_v40, %v12091_v58 }
 0x4f2   :  { %14923 = vmatprep.mubr.msk.f32.mxu0 %vm270_vm0, %v12113_v5 }
 0x4f3   :  { %14924 = vmatmul.mubr.msk.f32.gmra.mxu0 %vm270_vm0, %v12114_v38 }
 0x57e   :  { %v14904_v42 = vpop.f32.mrf.mxu0 }
 0x57f   :  { %v12246_v11 = vadd.f32 %v14904_v42, %v18266_v30  ;;  %v15249_v42 = vld [vmem:[#allocation2 + $0x68] sm:$0xff] }
 0x580   :  { %v12240_v52 = vpop.f32.mrf.mxu0 }
 0x581   :  { %v18269_v4 = vadd.f32 %v15237_v16, %v12246_v11  ;;  %v12241_v36 = vadd.f32 %v18266_v30, %v12240_v52  ;;  %v15250_v16 = vld [vmem:[#allocation2 + $0x60] sm:$0xff] }
 0x583   :  { %v18272_v44 = vadd.f32 %v15238_v0, %v12241_v36  ;;  %v12338_v40 = vsel %vm270_vm0, %v18269_v4, 0.0 }
 0x584   :  { %12339 = vadd.xlane.f32.xlu1 %v12338_v40 }
 0x585   :  { %v12335_v31 = vsel %vm270_vm0, %v18272_v44, 0.0 }
 0x586   :  { %v14907_v27 = vpop.f32.mrf.mxu0  ;;  %12336 = vadd.xlane.f32.xlu0 %v12335_v31 }
 0x587   :  { %v12256_v32 = vadd.f32 %v14907_v27, %v18266_v30 }
 0x588   :  { %v12250_v56 = vpop.f32.mrf.mxu0 }
 0x589   :  { %v18279_v14 = vadd.f32 %v15239_v2, %v12256_v32  ;;  %v12251_v19 = vadd.f32 %v18266_v30, %v12250_v56  ;;  %v15251_v56 = vld [vmem:[#allocation2 + $0x78] sm:$0xff] }
 0x58b   :  { %v18282_v51 = vadd.f32 %v15240_v33, %v12251_v19  ;;  %v12344_v39 = vsel %vm270_vm0, %v18279_v14, 0.0  ;;  %v15252_v33 = vld [vmem:[#allocation2 + $0x70] sm:$0xff] }
 0x58c   :  { %12345 = vadd.xlane.f32.xlu1 %v12344_v39 }
 0x58d   :  { %v12341_v9 = vsel %vm270_vm0, %v18282_v51, 0.0 }
 0x58e   :  { %v14910_v28 = vpop.f32.mrf.mxu0  ;;  %12342 = vadd.xlane.f32.xlu0 %v12341_v9 }
 0x58f   :  { %v12266_v55 = vadd.f32 %v14910_v28, %v18266_v30 }
 0x590   :  { %v12260_v53 = vpop.f32.mrf.mxu0 }
 0x591   :  { %v18289_v26 = vadd.f32 %v15241_v62, %v12266_v55  ;;  %v12261_v1 = vadd.f32 %v18266_v30, %v12260_v53 }
 0x593   :  { %v18292_v20 = vadd.f32 %v15242_v7, %v12261_v1  ;;  %v12350_v37 = vsel %vm270_vm0, %v18289_v26, 0.0 }
 0x594   :  { %12351 = vadd.xlane.f32.xlu1 %v12350_v37 }
 0x595   :  { %v14913_v21 = vpop.f32.mrf.mxu0  ;;  %v12347_v47 = vsel %vm270_vm0, %v18292_v20, 0.0 }
 0x596   :  { %v12276_v50 = vadd.f32 %v14913_v21, %v18266_v30  ;;  %12348 = vadd.xlane.f32.xlu0 %v12347_v47 }
 0x597   :  { %v12270_v48 = vpop.f32.mrf.mxu0 }
 0x598   :  { %v18299_v24 = vadd.f32 %v15243_v6, %v12276_v50  ;;  %v12271_v49 = vadd.f32 %v18266_v30, %v12270_v48 }
 0x59a   :  { %v18302_v59 = vadd.f32 %v15244_v43, %v12271_v49  ;;  %v12356_v35 = vsel %vm270_vm0, %v18299_v24, 0.0 }
 0x59b   :  { %12357 = vadd.xlane.f32.xlu1 %v12356_v35 }
 0x59c   :  { %v12353_v22 = vsel %vm270_vm0, %v18302_v59, 0.0 }
 0x59d   :  { %v14916_v41 = vpop.f32.mrf.mxu0  ;;  %12354 = vadd.xlane.f32.xlu0 %v12353_v22 }
 0x59e   :  { %v12286_v34 = vadd.f32 %v14916_v41, %v18266_v30 }
 0x59f   :  { %v12280_v23 = vpop.f32.mrf.mxu0 }
 0x5a0   :  { %v18309_v29 = vadd.f32 %v15245_v63, %v12286_v34  ;;  %v12281_v12 = vadd.f32 %v18266_v30, %v12280_v23 }
 0x5a2   :  { %v18312_v3 = vadd.f32 %v15246_v25, %v12281_v12  ;;  %v12362_v18 = vsel %vm270_vm0, %v18309_v29, 0.0 }
 0x5a3   :  { %12363 = vadd.xlane.f32.xlu1 %v12362_v18  ;;  %v14919_v57 = vpop.f32.mrf.mxu0 }
 0x5a4   :  { %v12359_v10 = vsel %vm270_vm0, %v18312_v3, 0.0  ;;  %v12296_v13 = vadd.f32 %v14919_v57, %v18266_v30 }
 0x5a5   :  { %12360 = vadd.xlane.f32.xlu0 %v12359_v10  ;;  %v12290_v60 = vpop.f32.mrf.mxu0 }
 0x5a6   :  { %v18319_v17 = vadd.f32 %v15247_v45, %v12296_v13  ;;  %v12291_v8 = vadd.f32 %v18266_v30, %v12290_v60 }
 0x5a8   :  { %v18322_v61 = vadd.f32 %v15248_v46, %v12291_v8  ;;  %v12368_v15 = vsel %vm270_vm0, %v18319_v17, 0.0 }
 0x5a9   :  { %12369 = vadd.xlane.f32.xlu1 %v12368_v15 }
 0x5aa   :  { %v12365_v58 = vsel %vm270_vm0, %v18322_v61, 0.0 }
 0x5ab   :  { %v14922_v54 = vpop.f32.mrf.mxu0  ;;  %12366 = vadd.xlane.f32.xlu0 %v12365_v58 }
 0x5ac   :  { %v12306_v5 = vadd.f32 %v14922_v54, %v18266_v30 }
 0x5ad   :  { %v12300_v38 = vpop.f32.mrf.mxu0 }
 0x5ae   :  { %v18329_v11 = vadd.f32 %v15249_v42, %v12306_v5  ;;  %v12301_v52 = vadd.f32 %v18266_v30, %v12300_v38 }
 0x5b0   :  { %v18332_v36 = vadd.f32 %v15250_v16, %v12301_v52  ;;  %v12374_v0 = vsel %vm270_vm0, %v18329_v11, 0.0 }
 0x5b1   :  { %12375 = vadd.xlane.f32.xlu1 %v12374_v0 }
 0x5b2   :  { %v12371_v40 = vsel %vm270_vm0, %v18332_v36, 0.0 }
 0x5b3   :  { %v14925_v31 = vpop.f32.mrf.mxu0  ;;  %12372 = vadd.xlane.f32.xlu0 %v12371_v40 }
 0x5b4   :  { %v12316_v27 = vadd.f32 %v14925_v31, %v18266_v30 }
 0x5b5   :  { %v12310_v32 = vpop.f32.mrf.mxu0 }
 0x5b6   :  { %v18339_v2 = vadd.f32 %v15251_v56, %v12316_v27  ;;  %v12311_v19 = vadd.f32 %v18266_v30, %v12310_v32 }
 0x5b8   :  { %v18342_v39 = vadd.f32 %v15252_v33, %v12311_v19  ;;  %v12380_v9 = vsel %vm270_vm0, %v18339_v2, 0.0 }
 0x5b9   :  { %12381 = vadd.xlane.f32.xlu1 %v12380_v9 }
 0x5ba   :  { %v12377_v28 = vsel %vm270_vm0, %v18342_v39, 0.0 }
 0x5bb   :  { %12378 = vadd.xlane.f32.xlu0 %v12377_v28 }
 0x60d   :  { %v12340_v55 = vpop.xlane.xlu1 %12339 }
 0x60e   :  { %v12385_v53 = vmul.f32 0.03125, %v12340_v55 }
 0x60f   :  { %v12337_v62 = vpop.xlane.xlu0 %12336 }
 0x610   :  { %v18349_v1 = vsub.f32 %v18269_v4, %v12385_v53  ;;  %v12384_v7 = vmul.f32 0.03125, %v12337_v62 }
 0x612   :  { %v18352_v30 = vsub.f32 %v18272_v44, %v12384_v7  ;;  %v12417_v37 = vmul.f32 %v18349_v1, %v18349_v1 }
 0x614   :  { %v12435_v21 = vsel %vm270_vm0, %v12417_v37, 0.0  ;;  %v12416_v47 = vmul.f32 %v18352_v30, %v18352_v30 }
 0x615   :  { %v12346_v50 = vpop.xlane.xlu1 %12345  ;;  %12436 = vadd.xlane.f32.xlu1 %v12435_v21 }
 0x616   :  { %v12387_v48 = vmul.f32 0.03125, %v12346_v50  ;;  %v12432_v6 = vsel %vm270_vm0, %v12416_v47, 0.0 }
 0x617   :  { %12433 = vadd.xlane.f32.xlu0 %v12432_v6  ;;  %v12343_v4 = vpop.xlane.xlu0 %12342 }
 0x618   :  { %v18361_v49 = vsub.f32 %v18279_v14, %v12387_v48  ;;  %v12386_v44 = vmul.f32 0.03125, %v12343_v4 }
 0x61a   :  { %v18364_v43 = vsub.f32 %v18282_v51, %v12386_v44  ;;  %v12419_v35 = vmul.f32 %v18361_v49, %v18361_v49 }
 0x61c   :  { %v12441_v41 = vsel %vm270_vm0, %v12419_v35, 0.0  ;;  %v12418_v22 = vmul.f32 %v18364_v43, %v18364_v43 }
 0x61d   :  { %v12352_v34 = vpop.xlane.xlu1 %12351  ;;  %12442 = vadd.xlane.f32.xlu1 %v12441_v41 }
 0x61e   :  { %v12389_v23 = vmul.f32 0.03125, %v12352_v34  ;;  %v12438_v63 = vsel %vm270_vm0, %v12418_v22, 0.0 }
 0x61f   :  { %12439 = vadd.xlane.f32.xlu0 %v12438_v63  ;;  %v12349_v14 = vpop.xlane.xlu0 %12348 }
 0x620   :  { %v18373_v12 = vsub.f32 %v18289_v26, %v12389_v23  ;;  %v12388_v51 = vmul.f32 0.03125, %v12349_v14 }
 0x622   :  { %v18376_v25 = vsub.f32 %v18292_v20, %v12388_v51  ;;  %v12421_v18 = vmul.f32 %v18373_v12, %v18373_v12 }
 0x624   :  { %v12358_v57 = vpop.xlane.xlu1 %12357  ;;  %v12447_v10 = vsel %vm270_vm0, %v12421_v18, 0.0  ;;  %v12420_v13 = vmul.f32 %v18376_v25, %v18376_v25 }
 0x625   :  { %v12391_v60 = vmul.f32 0.03125, %v12358_v57  ;;  %12448 = vadd.xlane.f32.xlu1 %v12447_v10 }
 0x626   :  { %v12444_v45 = vsel %vm270_vm0, %v12420_v13, 0.0  ;;  %v12355_v8 = vpop.xlane.xlu0 %12354 }
 0x627   :  { %v18385_v26 = vsub.f32 %v18299_v24, %v12391_v60  ;;  %12445 = vadd.xlane.f32.xlu0 %v12444_v45  ;;  %v12390_v20 = vmul.f32 0.03125, %v12355_v8 }
 0x629   :  { %v18388_v46 = vsub.f32 %v18302_v59, %v12390_v20  ;;  %v12423_v15 = vmul.f32 %v18385_v26, %v18385_v26 }
 0x62b   :  { %v12453_v54 = vsel %vm270_vm0, %v12423_v15, 0.0  ;;  %v12422_v5 = vmul.f32 %v18388_v46, %v18388_v46 }
 0x62c   :  { %v12364_v58 = vpop.xlane.xlu1 %12363  ;;  %12454 = vadd.xlane.f32.xlu1 %v12453_v54 }
 0x62d   :  { %v12393_v38 = vmul.f32 0.03125, %v12364_v58  ;;  %v12450_v42 = vsel %vm270_vm0, %v12422_v5, 0.0  ;;  %v18444_v5 = vld [vmem:[#allocation11 + $0x8] ss:$0 sm:$0xff] }
 0x62e   :  { %v12361_v24 = vpop.xlane.xlu0 %12360  ;;  %12451 = vadd.xlane.f32.xlu0 %v12450_v42 }
 0x62f   :  { %v18397_v52 = vsub.f32 %v18309_v29, %v12393_v38  ;;  %v12392_v59 = vmul.f32 0.03125, %v12361_v24 }
 0x631   :  { %v18400_v16 = vsub.f32 %v18312_v3, %v12392_v59  ;;  %v12425_v0 = vmul.f32 %v18397_v52, %v18397_v52 }
 0x632   :  { %v12370_v40 = vpop.xlane.xlu1 %12369 }
 0x633   :  { %v12459_v31 = vsel %vm270_vm0, %v12425_v0, 0.0  ;;  %v12424_v27 = vmul.f32 %v18400_v16, %v18400_v16  ;;  %v12395_v32 = vmul.f32 0.03125, %v12370_v40  ;;  %v18447_v40 = vld [vmem:[#allocation11 + $0x9] ss:$0 sm:$0xff] }
 0x634   :  { %12460 = vadd.xlane.f32.xlu1 %v12459_v31  ;;  %v12367_v56 = vpop.xlane.xlu0 %12366 }
 0x635   :  { %v12456_v29 = vsel %vm270_vm0, %v12424_v27, 0.0  ;;  %v18409_v19 = vsub.f32 %v18319_v17, %v12395_v32  ;;  %v12394_v33 = vmul.f32 0.03125, %v12367_v56 }
 0x636   :  { %12457 = vadd.xlane.f32.xlu0 %v12456_v29 }
 0x637   :  { %v18412_v3 = vsub.f32 %v18322_v61, %v12394_v33  ;;  %v12427_v9 = vmul.f32 %v18409_v19, %v18409_v19 }
 0x639   :  { %v12465_v28 = vsel %vm270_vm0, %v12427_v9, 0.0  ;;  %v12426_v55 = vmul.f32 %v18412_v3, %v18412_v3 }
 0x63a   :  { %v12376_v53 = vpop.xlane.xlu1 %12375  ;;  %12466 = vadd.xlane.f32.xlu1 %v12465_v28 }
 0x63b   :  { %v12397_v62 = vmul.f32 0.03125, %v12376_v53  ;;  %v12462_v7 = vsel %vm270_vm0, %v12426_v55, 0.0 }
 0x63c   :  { %12463 = vadd.xlane.f32.xlu0 %v12462_v7  ;;  %v12373_v17 = vpop.xlane.xlu0 %12372 }
 0x63d   :  { %v18421_v37 = vsub.f32 %v18329_v11, %v12397_v62  ;;  %v12396_v61 = vmul.f32 0.03125, %v12373_v17 }
 0x63f   :  { %v18424_v21 = vsub.f32 %v18332_v36, %v12396_v61  ;;  %v12429_v47 = vmul.f32 %v18421_v37, %v18421_v37 }
 0x641   :  { %v12471_v50 = vsel %vm270_vm0, %v12429_v47, 0.0  ;;  %v12428_v48 = vmul.f32 %v18424_v21, %v18424_v21 }
 0x642   :  { %12472 = vadd.xlane.f32.xlu1 %v12471_v50  ;;  %v12382_v6 = vpop.xlane.xlu1 %12381 }
 0x643   :  { %v12399_v4 = vmul.f32 0.03125, %v12382_v6  ;;  %v12468_v44 = vsel %vm270_vm0, %v12428_v48, 0.0 }
 0x644   :  { %12469 = vadd.xlane.f32.xlu0 %v12468_v44  ;;  %v12379_v11 = vpop.xlane.xlu0 %12378 }
 0x645   :  { %v18433_v35 = vsub.f32 %v18339_v2, %v12399_v4  ;;  %v12398_v36 = vmul.f32 0.03125, %v12379_v11 }
 0x647   :  { %v18436_v41 = vsub.f32 %v18342_v39, %v12398_v36  ;;  %v12431_v22 = vmul.f32 %v18433_v35, %v18433_v35 }
 0x649   :  { %v12477_v34 = vsel %vm270_vm0, %v12431_v22, 0.0  ;;  %v12430_v23 = vmul.f32 %v18436_v41, %v18436_v41 }
 0x64a   :  { %12478 = vadd.xlane.f32.xlu1 %v12477_v34 }
 0x64b   :  { %v12474_v63 = vsel %vm270_vm0, %v12430_v23, 0.0 }
 0x64c   :  { %12475 = vadd.xlane.f32.xlu0 %v12474_v63 }
 0x69e   :  { %v12437_v14 = vpop.xlane.xlu1 %12436 }
 0x69f   :  { %v12481_v51 = vmul.f32 0.03125, %v12437_v14 }
 0x6a0   :  { %v12434_v2 = vpop.xlane.xlu0 %12433 }
 0x6a1   :  { %v12497_v18 = vadd.f32 1e-05, %v12481_v51  ;;  %v12480_v57 = vmul.f32 0.03125, %v12434_v2 }
 0x6a3   :  { %15203 = vrsqrt.f32 %v12497_v18  ;;  %v12496_v39 = vadd.f32 1e-05, %v12480_v57 }
 0x6a5   :  { %15205 = vrsqrt.f32 %v12496_v39 }
 0x6a6   :  { %v12443_v10 = vpop.xlane.xlu1 %12442 }
 0x6a7   :  { %v12483_v13 = vmul.f32 0.03125, %v12443_v10 }
 0x6a8   :  { %v12440_v60 = vpop.xlane.xlu0 %12439 }
 0x6a9   :  { %v12499_v45 = vadd.f32 1e-05, %v12483_v13  ;;  %v12482_v8 = vmul.f32 0.03125, %v12440_v60 }
 0x6ab   :  { %15207 = vrsqrt.f32 %v12499_v45  ;;  %v12498_v20 = vadd.f32 1e-05, %v12482_v8 }
 0x6ad   :  { %15209 = vrsqrt.f32 %v12498_v20 }
 0x6ae   :  { %v12449_v15 = vpop.xlane.xlu1 %12448 }
 0x6af   :  { %v12485_v58 = vmul.f32 0.03125, %v12449_v15 }
 0x6b0   :  { %v15204_v54 = vpop.eup %15203  ;;  %v12446_v38 = vpop.xlane.xlu0 %12445 }
 0x6b1   :  { %v12529_v42 = vmul.f32 %v15204_v54, %v18349_v1  ;;  %v12501_v24 = vadd.f32 1e-05, %v12485_v58  ;;  %v12484_v59 = vmul.f32 0.03125, %v12446_v38 }
 0x6b2   :  { %v15206_v0 = vpop.eup %15205 }
 0x6b3   :  { %v12551_v31 = vmul.f32 %v18444_v5, %v12529_v42  ;;  %v12528_v27 = vmul.f32 %v15206_v0, %v18352_v30  ;;  %15211 = vrsqrt.f32 %v12501_v24  ;;  %v12500_v32 = vadd.f32 1e-05, %v12484_v59 }
 0x6b5   :  { %v12573_v56 = vadd.f32 %v18447_v40, %v12551_v31  ;;  %v12550_v29 = vmul.f32 %v18444_v5, %v12528_v27  ;;  %15213 = vrsqrt.f32 %v12500_v32  ;;  %v12455_v33 = vpop.xlane.xlu1 %12454 }
 0x6b6   :  { %v12487_v9 = vmul.f32 0.03125, %v12455_v33 }
 0x6b7   :  { %12589 = vst.msk [vmem:[#allocation13 + $0x8] sm:$0xff] %vm270_vm0, %v12573_v56  ;;  %v12572_v1 = vadd.f32 %v18447_v40, %v12550_v29  ;;  %v12452_v28 = vpop.xlane.xlu0 %12451 }
 0x6b8   :  { %v15208_v55 = vpop.eup %15207  ;;  %v12503_v53 = vadd.f32 1e-05, %v12487_v9  ;;  %v12486_v62 = vmul.f32 0.03125, %v12452_v28 }
 0x6b9   :  { %12588 = vst.msk [vmem:[#allocation13] sm:$0xff] %vm270_vm0, %v12572_v1  ;;  %v12531_v30 = vmul.f32 %v15208_v55, %v18361_v49 }
 0x6ba   :  { %v15210_v7 = vpop.eup %15209  ;;  %15215 = vrsqrt.f32 %v12503_v53  ;;  %v12502_v17 = vadd.f32 1e-05, %v12486_v62 }
 0x6bb   :  { %v12553_v61 = vmul.f32 %v18444_v5, %v12531_v30  ;;  %v12530_v47 = vmul.f32 %v15210_v7, %v18364_v43 }
 0x6bc   :  { %15217 = vrsqrt.f32 %v12502_v17 }
 0x6bd   :  { %v12461_v50 = vpop.xlane.xlu1 %12460  ;;  %v12575_v48 = vadd.f32 %v18447_v40, %v12553_v61  ;;  %v12552_v6 = vmul.f32 %v18444_v5, %v12530_v47 }
 0x6be   :  { %v12489_v4 = vmul.f32 0.03125, %v12461_v50 }
 0x6bf   :  { %v12458_v44 = vpop.xlane.xlu0 %12457  ;;  %12591 = vst.msk [vmem:[#allocation13 + $0x18] sm:$0xff] %vm270_vm0, %v12575_v48  ;;  %v12574_v11 = vadd.f32 %v18447_v40, %v12552_v6 }
 0x6c0   :  { %v12505_v49 = vadd.f32 1e-05, %v12489_v4  ;;  %v12488_v36 = vmul.f32 0.03125, %v12458_v44  ;;  %v15212_v22 = vpop.eup %15211 }
 0x6c1   :  { %12590 = vst.msk [vmem:[#allocation13 + $0x10] sm:$0xff] %vm270_vm0, %v12574_v11  ;;  %v12533_v34 = vmul.f32 %v15212_v22, %v18373_v12 }
 0x6c2   :  { %15219 = vrsqrt.f32 %v12505_v49  ;;  %v12504_v43 = vadd.f32 1e-05, %v12488_v36  ;;  %v15214_v23 = vpop.eup %15213 }
 0x6c3   :  { %v12555_v63 = vmul.f32 %v18444_v5, %v12533_v34  ;;  %v12532_v14 = vmul.f32 %v15214_v23, %v18376_v25  ;;  %v12467_v51 = vpop.xlane.xlu1 %12466 }
 0x6c4   :  { %15221 = vrsqrt.f32 %v12504_v43  ;;  %v12491_v2 = vmul.f32 0.03125, %v12467_v51 }
 0x6c5   :  { %v12577_v18 = vadd.f32 %v18447_v40, %v12555_v63  ;;  %v12554_v57 = vmul.f32 %v18444_v5, %v12532_v14  ;;  %v12464_v39 = vpop.xlane.xlu0 %12463 }
 0x6c6   :  { %v12507_v10 = vadd.f32 1e-05, %v12491_v2  ;;  %v12490_v13 = vmul.f32 0.03125, %v12464_v39 }
 0x6c7   :  { %v15216_v60 = vpop.eup %15215  ;;  %12593 = vst.msk [vmem:[#allocation13 + $0x28] sm:$0xff] %vm270_vm0, %v12577_v18  ;;  %v12576_v12 = vadd.f32 %v18447_v40, %v12554_v57 }
 0x6c8   :  { %v12535_v45 = vmul.f32 %v15216_v60, %v18385_v26  ;;  %15223 = vrsqrt.f32 %v12507_v10  ;;  %v12506_v8 = vadd.f32 1e-05, %v12490_v13 }
 0x6c9   :  { %v15218_v25 = vpop.eup %15217  ;;  %12592 = vst.msk [vmem:[#allocation13 + $0x20] sm:$0xff] %vm270_vm0, %v12576_v12 }
 0x6ca   :  { %v12557_v20 = vmul.f32 %v18444_v5, %v12535_v45  ;;  %v12534_v15 = vmul.f32 %v15218_v25, %v18388_v46  ;;  %15225 = vrsqrt.f32 %v12506_v8 }
 0x6cb   :  { %v12473_v58 = vpop.xlane.xlu1 %12472 }
 0x6cc   :  { %v12579_v54 = vadd.f32 %v18447_v40, %v12557_v20  ;;  %v12556_v38 = vmul.f32 %v18444_v5, %v12534_v15  ;;  %v12493_v42 = vmul.f32 0.03125, %v12473_v58 }
 0x6cd   :  { %v12470_v24 = vpop.xlane.xlu0 %12469 }
 0x6ce   :  { %12595 = vst.msk [vmem:[#allocation13 + $0x38] sm:$0xff] %vm270_vm0, %v12579_v54  ;;  %v12578_v26 = vadd.f32 %v18447_v40, %v12556_v38  ;;  %v12509_v0 = vadd.f32 1e-05, %v12493_v42  ;;  %v12492_v31 = vmul.f32 0.03125, %v12470_v24 }
 0x6cf   :  { %v15220_v59 = vpop.eup %15219 }
 0x6d0   :  { %v12537_v27 = vmul.f32 %v15220_v59, %v18397_v52  ;;  %12594 = vst.msk [vmem:[#allocation13 + $0x30] sm:$0xff] %vm270_vm0, %v12578_v26  ;;  %15227 = vrsqrt.f32 %v12509_v0  ;;  %v12508_v46 = vadd.f32 1e-05, %v12492_v31 }
 0x6d1   :  { %v15222_v32 = vpop.eup %15221 }
 0x6d2   :  { %v12559_v56 = vmul.f32 %v18444_v5, %v12537_v27  ;;  %v12536_v29 = vmul.f32 %v15222_v32, %v18400_v16  ;;  %15229 = vrsqrt.f32 %v12508_v46 }
 0x6d3   :  { %v12479_v1 = vpop.xlane.xlu1 %12478 }
 0x6d4   :  { %v12581_v33 = vadd.f32 %v18447_v40, %v12559_v56  ;;  %v12558_v9 = vmul.f32 %v18444_v5, %v12536_v29  ;;  %v12495_v28 = vmul.f32 0.03125, %v12479_v1 }
 0x6d5   :  { %v15224_v55 = vpop.eup %15223  ;;  %v12476_v53 = vpop.xlane.xlu0 %12475 }
 0x6d6   :  { %12597 = vst.msk [vmem:[#allocation13 + $0x48] sm:$0xff] %vm270_vm0, %v12581_v33  ;;  %v12580_v52 = vadd.f32 %v18447_v40, %v12558_v9  ;;  %v12539_v62 = vmul.f32 %v15224_v55, %v18409_v19  ;;  %v12511_v30 = vadd.f32 1e-05, %v12495_v28  ;;  %v12494_v7 = vmul.f32 0.03125, %v12476_v53 }
 0x6d7   :  { %v15226_v17 = vpop.eup %15225 }
 0x6d8   :  { %12596 = vst.msk [vmem:[#allocation13 + $0x40] sm:$0xff] %vm270_vm0, %v12580_v52  ;;  %v12561_v16 = vmul.f32 %v18444_v5, %v12539_v62  ;;  %v12538_v61 = vmul.f32 %v15226_v17, %v18412_v3  ;;  %15231 = vrsqrt.f32 %v12511_v30  ;;  %v12510_v47 = vadd.f32 1e-05, %v12494_v7 }
 0x6da   :  { %v12583_v50 = vadd.f32 %v18447_v40, %v12561_v16  ;;  %v12560_v48 = vmul.f32 %v18444_v5, %v12538_v61  ;;  %15233 = vrsqrt.f32 %v12510_v47 }
 0x6dc   :  { %12599 = vst.msk [vmem:[#allocation13 + $0x58] sm:$0xff] %vm270_vm0, %v12583_v50  ;;  %v12582_v19 = vadd.f32 %v18447_v40, %v12560_v48 }
 0x6dd   :  { %v15228_v6 = vpop.eup %15227 }
 0x6de   :  { %12598 = vst.msk [vmem:[#allocation13 + $0x50] sm:$0xff] %vm270_vm0, %v12582_v19  ;;  %v12541_v4 = vmul.f32 %v15228_v6, %v18421_v37 }
 0x6df   :  { %v15230_v44 = vpop.eup %15229 }
 0x6e0   :  { %v12563_v11 = vmul.f32 %v18444_v5, %v12541_v4  ;;  %v12540_v3 = vmul.f32 %v15230_v44, %v18424_v21 }
 0x6e2   :  { %v12585_v49 = vadd.f32 %v18447_v40, %v12563_v11  ;;  %v12562_v36 = vmul.f32 %v18444_v5, %v12540_v3 }
 0x6e4   :  { %12601 = vst.msk [vmem:[#allocation13 + $0x68] sm:$0xff] %vm270_vm0, %v12585_v49  ;;  %v12584_v22 = vadd.f32 %v18447_v40, %v12562_v36 }
 0x6e5   :  { %v15232_v34 = vpop.eup %15231 }
 0x6e6   :  { %12600 = vst.msk [vmem:[#allocation13 + $0x60] sm:$0xff] %vm270_vm0, %v12584_v22  ;;  %v12543_v43 = vmul.f32 %v15232_v34, %v18433_v35 }
 0x6e7   :  { %v15234_v23 = vpop.eup %15233 }
 0x6e8   :  { %v12565_v37 = vmul.f32 %v18444_v5, %v12543_v43  ;;  %v12542_v63 = vmul.f32 %v15234_v23, %v18436_v41 }
 0x6ea   :  { %v12587_v21 = vadd.f32 %v18447_v40, %v12565_v37  ;;  %v12564_v14 = vmul.f32 %v18444_v5, %v12542_v63 }
 0x6ec   :  { %12603 = vst.msk [vmem:[#allocation13 + $0x78] sm:$0xff] %vm270_vm0, %v12587_v21  ;;  %v12586_v51 = vadd.f32 %v18447_v40, %v12564_v14 }
 0x6ee   :  { %12602 = vst.msk [vmem:[#allocation13 + $0x70] sm:$0xff] %vm270_vm0, %v12586_v51 }
 0x6ef   :  { %15384 = shalt.err (!%p15381_p6)
}
 0x6f0   :  { %12615 = dma.vmem_to_hbm [thread:$0]  %s12610_s5, 2048, %s18524_s6, [#allocation4], %s15405_s26, %s15405_s26, %s15406_s27  }
 0x6f1   :  { %15401 = dma.done.wait [#allocation4], 2048  }
 0x6f2   :  { %15402 = vsyncadd [#allocation4], 4294965248 }
 0x6f3   :  { %12619 = vsyncpa [#allocation3], 1 }
 0x6f4   :  { %12620 = vsyncpa [#allocation6], 1 }
 0x6f5   :  { %12621 = vsyncpa [#allocation9], 1 }
 0x6f6   :  { %12622 = vsyncpa [#allocation12], 1 }
 0x6f7   :  { %12623 = vsyncpa [#allocation4], 1 }

</bundles_post_ra>
